<compile_context>
chip_gen: v5e
topology: v5e:2x2
jax: 0.10.0
libtpu: 0.0.40
codegen_flags: <defaults>
</compile_context>

<pallas_src>
import functools

import jax
import jax.numpy as jnp
import numpy as np
from jax.experimental import pallas as pl
from jax.experimental.pallas import tpu as pltpu

# TODO(synk): the torch module draws shift_direction = +/-1 at random per instance;
# fixed deterministically to +1 here (forward() accepts either value; both are tested).
SHIFT = 1

_M, _K, _N = 256, 3 * 128, 28 * 28   # output channels, contraction dim, flattened (p,o)


def _contract_kernel(w_ref, s_ref, o_ref):
    """Single MXU matmul: bf16 (256,384) @ bf16 (384,784) -> f32 (256,784)."""
    o_ref[...] = jnp.dot(w_ref[...], s_ref[...], preferred_element_type=jnp.float32)


def prepare_weights(w):
    """One-time (numpy, outside jit) build of the banded weight matrix in bf16.

    W_full[l*8+m, j*128 + (l+k-1)*4 + i] = w[k, i, l, m, j], zero where l+k-1 falls
    outside [0, 32) (the zero padding of unfold #1 along the group axis).
    """
    w_np = np.asarray(w, dtype=np.float32)             # (k=3, i=4, l=32, m=8, j=3)
    w_full = np.zeros((_M, _K), dtype=np.float32)
    for k in range(3):
        for l in range(32):
            lp = l + k - 1
            if 0 <= lp < 32:
                for j in range(3):
                    # rows l*8 .. l*8+7 (m), cols j*128 + lp*4 .. +3 (i)
                    w_full[l * 8:(l + 1) * 8,
                           j * 128 + lp * 4: j * 128 + lp * 4 + 4] = w_np[k, :, l, :, j].T
    return jnp.asarray(w_full, dtype=jnp.bfloat16)


def _build_s(x, shift):
    """XLA-side prep: channel-sum, folded rolls, three j-shifted copies, bf16 lane-dense."""
    t = jnp.sum(x.reshape(2, 128, 28, 28).astype(jnp.float32), axis=0)   # (128, 28, 28)
    t = jnp.roll(t, shift, axis=1)        # fold the final output roll along p
    t = jnp.roll(t, shift, axis=2)        # fold the mid-pipeline roll along o
    tp = jnp.pad(t, ((0, 0), (0, 0), (1, 1)))                            # (128, 28, 30)
    sj = jnp.stack([tp[:, :, j:j + 28] for j in range(3)], axis=0)       # (3, 128, 28, 28)
    return sj.reshape(_K, _N).astype(jnp.bfloat16)                       # (384, 784)


_COST = pl.CostEstimate(
    flops=2 * _M * _K * _N,
    transcendentals=0,
    bytes_accessed=(_M * _K + _K * _N) * 2 + _M * _N * 4,
)


@functools.partial(jax.jit, static_argnums=(2,))
def forward(x, w_full, shift=SHIFT):
    # x: (1, 256, 28, 28) f32 NCHW ; w_full: (256, 384) bf16 from prepare_weights().
    s_full = _build_s(x, shift)
    out = pl.pallas_call(
        _contract_kernel,
        out_shape=jax.ShapeDtypeStruct((_M, _N), jnp.float32),
        grid=(1,),
        in_specs=[
            pl.BlockSpec((_M, _K), lambda g: (0, 0)),   # banded weights, full block
            pl.BlockSpec((_K, _N), lambda g: (0, 0)),   # shifted/rolled input planes
        ],
        out_specs=pl.BlockSpec((_M, _N), lambda g: (0, 0)),
        compiler_params=pltpu.CompilerParams(
            dimension_semantics=("arbitrary",),
        ),
        cost_estimate=_COST,
    )(w_full, s_full)
    return out.reshape(1, 256, 28, 28)


# ----------------------------- pure-JAX reference ------------------------------------
def _unfold_3x1(x):
    """torch.nn.functional.unfold(x, (3, 1), padding=(1, 0)) for NCHW x."""
    n, c, h, w = x.shape
    xp = jnp.pad(x, ((0, 0), (0, 0), (1, 1), (0, 0)))
    cols = jnp.stack([xp[:, :, dh:dh + h, :] for dh in range(3)], axis=2)   # (n, c, 3, h, w)
    return cols.reshape(n, c * 3, h * w)


@functools.partial(jax.jit, static_argnums=(2,))
def reference(x, w, shift):
    t2 = jnp.sum(x.reshape(1, 2, 128, 28, 28), axis=1)            # (1, 128, 28, 28)
    t3 = t2.reshape(1, 32, 4, 28, 28).reshape(1, 1, 32, 3136)
    t3 = _unfold_3x1(t3)                                           # (1, 3, 32*3136)
    t3 = t3.reshape(1, 3, 32, 4, 28, 28)
    t3 = jnp.roll(t3, shift, axis=5)
    t3 = t3.reshape(1, 10752, 28, 1)
    t3 = _unfold_3x1(t3)                                           # (1, 10752*3, 28)
    t3 = t3.reshape(1, 3, 32, 4, 28, 3, 28)
    t4 = jnp.einsum('nklipjo,kilmj->nlmpo', t3, w)
    t5 = t4.reshape(1, 256, 28, 28)
    t5 = jnp.roll(t5, shift, axis=2)
    return t5


if __name__ == "__main__":
    key = jax.random.PRNGKey(0)
    kx, kw = jax.random.split(key)
    x = jax.random.normal(kx, (1, 256, 28, 28), dtype=jnp.float32)
    w = jax.random.normal(kw, (3, 4, 32, 8, 3), dtype=jnp.float32)  # torch.randn([3,4,32,8,3])

    w_full = prepare_weights(w)   # one-time banded-weight build (hoisted out of forward)

    for shift in (SHIFT, -SHIFT):
        y = jax.block_until_ready(forward(x, w_full, shift))
        y_np = np.asarray(y)
        y_ref = np.asarray(reference(x, w, shift))
        # bf16 operands (f32 accumulate) on the MXU: a relative-L2 check is robust to that
        # rounding while still catching any indexing/layout error (which would be O(1)).
        rel = np.linalg.norm(y_np - y_ref) / np.linalg.norm(y_ref)
        if not rel < 2e-2:
            raise AssertionError(f"relative L2 error {rel} too large for shift={shift}")

    print("KERNEL_OK")
</pallas_src>

<mosaic_0001>
module attributes {stable_mosaic.version = 11 : i64} {
  func.func @_contract_kernel(%arg0: i32, %arg1: memref<256x384xbf16, #tpu.memory_space<vmem>>, %arg2: memref<384x784xbf16, #tpu.memory_space<vmem>>, %arg3: memref<256x784xf32, #tpu.memory_space<vmem>>) attributes {dimension_semantics = [#tpu.dimension_semantics<arbitrary>], iteration_bounds = array<i64: 1>, scalar_prefetch = 0 : i64, scratch_operands = 0 : i64, tpu.core_type = #tpu.core_type<tc>, window_params = [{pipeline_mode = #tpu.pipeline_mode<synchronous>, transform_indices = @transform_0, window_bounds = array<i64: 256, 384>}, {pipeline_mode = #tpu.pipeline_mode<synchronous>, transform_indices = @transform_1, window_bounds = array<i64: 384, 784>}, {pipeline_mode = #tpu.pipeline_mode<synchronous>, transform_indices = @transform_2, window_bounds = array<i64: 256, 784>}]} {
    %c0 = arith.constant 0 : index
    %c0_0 = arith.constant 0 : index
    %0 = vector.load %arg1[%c0, %c0_0] : memref<256x384xbf16, #tpu.memory_space<vmem>>, vector<256x384xbf16>
    %c0_1 = arith.constant 0 : index
    %c0_2 = arith.constant 0 : index
    %1 = vector.load %arg2[%c0_1, %c0_2] : memref<384x784xbf16, #tpu.memory_space<vmem>>, vector<384x784xbf16>
    %cst = arith.constant dense<0.000000e+00> : vector<256x784xf32>
    %2 = tpu.matmul %0, %1, %cst {dimension_numbers = #tpu.dot_dimension_numbers<[1], [0], [0], [1], [0, 0, 1, 1], [], []>} : vector<256x384xbf16>, vector<384x784xbf16>, vector<256x784xf32> -> vector<256x784xf32>
    %c0_3 = arith.constant 0 : index
    %c0_4 = arith.constant 0 : index
    %3 = vector.load %arg3[%c0_3, %c0_4] : memref<256x784xf32, #tpu.memory_space<vmem>>, vector<256x784xf32>
    tpu.vector_store %arg3[%c0_3, %c0_4], %2 {strides = array<i32>} : memref<256x784xf32, #tpu.memory_space<vmem>>, vector<256x784xf32>,
    return
  }
  func.func @transform_0(%arg0: i32) -> (i32, i32) {
    %c0_i32 = arith.constant 0 : i32
    %c0_i32_0 = arith.constant 0 : i32
    %c0_i32_1 = arith.constant 0 : i32
    return %c0_i32, %c0_i32_0 : i32, i32
  }
  func.func @transform_1(%arg0: i32) -> (i32, i32) {
    %c0_i32 = arith.constant 0 : i32
    %c0_i32_0 = arith.constant 0 : i32
    %c0_i32_1 = arith.constant 0 : i32
    return %c0_i32, %c0_i32_0 : i32, i32
  }
  func.func @transform_2(%arg0: i32) -> (i32, i32) {
    %c0_i32 = arith.constant 0 : i32
    %c0_i32_0 = arith.constant 0 : i32
    %c0_i32_1 = arith.constant 0 : i32
    return %c0_i32, %c0_i32_0 : i32, i32
  }
}

</mosaic_0001>

<bundles_post_ra>
// kernel: forward.1
= control target key start
LH: loop header
LB: loop body
LE: loop exit
PB: predicated region body
PF: predicated region fallthrough
CT: control target
= control target key end

     0   :  { %vm3262_vm0 = vcmask 130048   ;;  %s7420_s1 = inlined_call_operand.vmem [shape: bf16[384,784], index: 1, kind: input, shape index: {}]   ;;  %s7421_s0 = inlined_call_operand.vmem [shape: bf16[256,384], index: 0, kind: input, shape index: {}]   ;;  %s7422_s2 = inlined_call_operand.vmem [shape: f32[256,784], index: 2, kind: output, shape index: {}]  }
   0x1   :  { %v3875_v0 = vld [vmem:[%s7420_s1 + $0x188] sm:$0xf]  ;;  %v4449_v1 = vld [vmem:[%s7420_s1 + $0x1a0] sm:$0xf0]  ;;  %v3847_v2 = vld [vmem:[%s7420_s1 + $0x150] sm:$0xf] }
   0x2   :  { %v3876_v3 = vor.u32 %v4449_v1, %v3875_v0  ;;  %v4442_v4 = vld [vmem:[%s7420_s1 + $0x168] sm:$0xf0]  ;;  %v3819_v6 = vld [vmem:[%s7420_s1 + $0x118] sm:$0xf]  ;;  %v4435_v7 = vld [vmem:[%s7420_s1 + $0x130] sm:$0xf0] }
   0x3   :  { %v3848_v5 = vor.u32 %v4442_v4, %v3847_v2  ;;  %v3820_v8 = vor.u32 %v4435_v7, %v3819_v6  ;;  %v3791_v9 = vld [vmem:[%s7420_s1 + $0xe0] sm:$0xf]  ;;  %v4428_v10 = vld [vmem:[%s7420_s1 + $0xf8] sm:$0xf0]  ;;  %v3763_v12 = vld [vmem:[%s7420_s1 + $0xa8] sm:$0xf] }
   0x4   :  { %1387 = vmatpush.bf16.msra.mxu0 %v3876_v3  ;;  %4565 = vmatpush.bf16.msra.mxu1 %v3876_v3  ;;  %v3792_v11 = vor.u32 %v4428_v10, %v3791_v9  ;;  %v4421_v13 = vld [vmem:[%s7420_s1 + $0xc0] sm:$0xf0]  ;;  %v3735_v15 = vld [vmem:[%s7420_s1 + $0x70] sm:$0xf]  ;;  %v4414_v16 = vld [vmem:[%s7420_s1 + $0x88] sm:$0xf0] }
   0x5   :  { %4566 = vmatpush.bf16.msra.mxu2 %v3876_v3  ;;  %4567 = vmatpush.bf16.msra.mxu3 %v3876_v3  ;;  %v3764_v14 = vor.u32 %v4421_v13, %v3763_v12  ;;  %v3736_v17 = vor.u32 %v4414_v16, %v3735_v15  ;;  %v3707_v18 = vld [vmem:[%s7420_s1 + $0x38] sm:$0xf]  ;;  %v4407_v19 = vld [vmem:[%s7420_s1 + $0x50] sm:$0xf0]  ;;  %v3679_v21 = vld [vmem:[%s7420_s1] sm:$0xf] }
   0x6   :  { %v3708_v20 = vor.u32 %v4407_v19, %v3707_v18  ;;  %v4400_v22 = vld [vmem:[%s7420_s1 + $0x18] sm:$0xf0]  ;;  %v3487_v23 = vld [vmem:[%s7421_s0] sm:$0xf]  ;;  %v4350_v24 = vld [vmem:[%s7421_s0 + $0x8] sm:$0xf0] }
   0x7   :  { %v3535_v25 = vld [vmem:[%s7421_s0 + $0x60] sm:$0xf]  ;;  %v4362_v26 = vld [vmem:[%s7421_s0 + $0x68] sm:$0xf0]  ;;  %v4323_v27 = vld [vmem:[%s7420_s1 + $0x508] sm:$0xf]  ;;  %v3680_v31 = vor.u32 %v4400_v22, %v3679_v21  ;;  %v4703_v43 = vor.u32 %v4350_v24, %v3487_v23 }
   0x8   :  { %1388 = vmatpush.bf16.msra.mxu0 %v3848_v5  ;;  %4568 = vmatpush.bf16.msra.mxu1 %v3848_v5  ;;  %v4561_v28 = vld [vmem:[%s7420_s1 + $0x520] sm:$0xf0]  ;;  %v4446_v29 = vld [vmem:[%s7420_s1 + $0x18c] sm:$0xf]  ;;  %v3877_v30 = vld [vmem:[%s7420_s1 + $0x1a4] sm:$0xf0]  ;;  %v4705_v44 = vor.u32 %v4362_v26, %v3535_v25 }
   0x9   :  { %4569 = vmatpush.bf16.msra.mxu2 %v3848_v5  ;;  %4570 = vmatpush.bf16.msra.mxu3 %v3848_v5  ;;  %v3583_v32 = vld [vmem:[%s7421_s0 + $0xc0] sm:$0xf]  ;;  %v4374_v33 = vld [vmem:[%s7421_s0 + $0xc8] sm:$0xf0]  ;;  %v4099_v36 = vld [vmem:[%s7420_s1 + $0x348] sm:$0xf]  ;;  %v4324_v38 = vor.u32 %v4561_v28, %v4323_v27  ;;  %v3880_v39 = vor.u32 %v4446_v29, %v3877_v30 }
   0xa   :  { %v3631_v34 = vld [vmem:[%s7421_s0 + $0x120] sm:$0xf]  ;;  %v4386_v35 = vld [vmem:[%s7421_s0 + $0x128] sm:$0xf0]  ;;  %v4505_v37 = vld [vmem:[%s7420_s1 + $0x360] sm:$0xf0]  ;;  %v4716_v48 = vor.u32 %v4374_v33, %v3583_v32 }
   0xb   :  { %v4295_v40 = vld [vmem:[%s7420_s1 + $0x4d0] sm:$0xf]  ;;  %v4502_v41 = vld [vmem:[%s7420_s1 + $0x34c] sm:$0xf]  ;;  %v4101_v42 = vld [vmem:[%s7420_s1 + $0x364] sm:$0xf0]  ;;  %v4718_v49 = vor.u32 %v4386_v35, %v3631_v34  ;;  %v4100_v50 = vor.u32 %v4505_v37, %v4099_v36 }
   0xc   :  { %1389 = vmatpush.bf16.msra.mxu0 %v3820_v8  ;;  %4571 = vmatpush.bf16.msra.mxu1 %v3820_v8  ;;  %v4554_v45 = vld [vmem:[%s7420_s1 + $0x4e8] sm:$0xf0]  ;;  %v4439_v46 = vld [vmem:[%s7420_s1 + $0x154] sm:$0xf]  ;;  %v3849_v47 = vld [vmem:[%s7420_s1 + $0x16c] sm:$0xf0]  ;;  %v4104_v51 = vor.u32 %v4502_v41, %v4101_v42 }
   0xd   :  { %4572 = vmatpush.bf16.msra.mxu2 %v3820_v8  ;;  %4573 = vmatpush.bf16.msra.mxu3 %v3820_v8  ;;  %7493 = vst [vmem:[#allocation2_spill] sm:$0xff] %v4716_v48  ;;  %v4071_v52 = vld [vmem:[%s7420_s1 + $0x310] sm:$0xf]  ;;  %v4498_v53 = vld [vmem:[%s7420_s1 + $0x328] sm:$0xf0]  ;;  %v4296_v54 = vor.u32 %v4554_v45, %v4295_v40  ;;  %v3852_v55 = vor.u32 %v4439_v46, %v3849_v47 }
   0xe   :  { %7494 = vst [vmem:[#allocation3_spill] sm:$0xff] %v4718_v49  ;;  %v4267_v56 = vld [vmem:[%s7420_s1 + $0x498] sm:$0xf]  ;;  %v4495_v57 = vld [vmem:[%s7420_s1 + $0x314] sm:$0xf]  ;;  %v4072_v62 = vor.u32 %v4498_v53, %v4071_v52 }
   0xf   :  { %v4073_v58 = vld [vmem:[%s7420_s1 + $0x32c] sm:$0xf0]  ;;  %v4547_v59 = vld [vmem:[%s7420_s1 + $0x4b0] sm:$0xf0]  ;;  %v4432_v60 = vld [vmem:[%s7420_s1 + $0x11c] sm:$0xf] }
  0x10   :  { %1390 = vmatpush.bf16.msra.mxu0 %v3792_v11  ;;  %4574 = vmatpush.bf16.msra.mxu1 %v3792_v11  ;;  %v3821_v61 = vld [vmem:[%s7420_s1 + $0x134] sm:$0xf0]  ;;  %v4076_v63 = vor.u32 %v4495_v57, %v4073_v58  ;;  %v4491_v1 = vld [vmem:[%s7420_s1 + $0x2f0] sm:$0xf0]  ;;  %v4268_v2 = vor.u32 %v4547_v59, %v4267_v56  ;;  %v4239_v4 = vld [vmem:[%s7420_s1 + $0x460] sm:$0xf] }
  0x11   :  { %4575 = vmatpush.bf16.msra.mxu2 %v3792_v11  ;;  %4576 = vmatpush.bf16.msra.mxu3 %v3792_v11  ;;  %v4043_v0 = vld [vmem:[%s7420_s1 + $0x2d8] sm:$0xf]  ;;  %v3824_v3 = vor.u32 %v4432_v60, %v3821_v61  ;;  %v4488_v5 = vld [vmem:[%s7420_s1 + $0x2dc] sm:$0xf]  ;;  %v4425_v8 = vld [vmem:[%s7420_s1 + $0xe4] sm:$0xf] }
  0x12   :  { %v4045_v6 = vld [vmem:[%s7420_s1 + $0x2f4] sm:$0xf0]  ;;  %v4540_v7 = vld [vmem:[%s7420_s1 + $0x478] sm:$0xf0]  ;;  %v3793_v9 = vld [vmem:[%s7420_s1 + $0xfc] sm:$0xf0]  ;;  %v4044_v10 = vor.u32 %v4491_v1, %v4043_v0 }
  0x13   :  { %v4048_v11 = vor.u32 %v4488_v5, %v4045_v6  ;;  %v4015_v12 = vld [vmem:[%s7420_s1 + $0x2a0] sm:$0xf]  ;;  %v4484_v13 = vld [vmem:[%s7420_s1 + $0x2b8] sm:$0xf0]  ;;  %v4353_v15 = vld [vmem:[%s7421_s0 + $0x20] sm:$0xf0]  ;;  %v4240_v18 = vor.u32 %v4540_v7, %v4239_v4  ;;  %v3796_v19 = vor.u32 %v4425_v8, %v3793_v9 }
  0x14   :  { %1391 = vmatpush.bf16.msra.mxu0 %v3764_v14  ;;  %4577 = vmatpush.bf16.msra.mxu1 %v3764_v14  ;;  %v3547_v16 = vld [vmem:[%s7421_s0 + $0x78] sm:$0xf]  ;;  %v4481_v21 = vld [vmem:[%s7420_s1 + $0x2a4] sm:$0xf]  ;;  %v4017_v22 = vld [vmem:[%s7420_s1 + $0x2bc] sm:$0xf0]  ;;  %v4016_v30 = vor.u32 %v4484_v13, %v4015_v12 }
  0x15   :  { %4578 = vmatpush.bf16.msra.mxu2 %v3764_v14  ;;  %4579 = vmatpush.bf16.msra.mxu3 %v3764_v14  ;;  %v3499_v14 = vld [vmem:[%s7421_s0 + $0x18] sm:$0xf]  ;;  %v4533_v23 = vld [vmem:[%s7420_s1 + $0x440] sm:$0xf0]  ;;  %v4418_v24 = vld [vmem:[%s7420_s1 + $0xac] sm:$0xf] }
  0x16   :  { %v3765_v25 = vld [vmem:[%s7420_s1 + $0xc4] sm:$0xf0]  ;;  %v3595_v26 = vld [vmem:[%s7421_s0 + $0xd8] sm:$0xf]  ;;  %v4377_v27 = vld [vmem:[%s7421_s0 + $0xe0] sm:$0xf0] }
  0x17   :  { %v3643_v28 = vld [vmem:[%s7421_s0 + $0x138] sm:$0xf]  ;;  %v4389_v29 = vld [vmem:[%s7421_s0 + $0x140] sm:$0xf0]  ;;  %v3987_v32 = vld [vmem:[%s7420_s1 + $0x268] sm:$0xf]  ;;  %v3768_v35 = vor.u32 %v4418_v24, %v3765_v25  ;;  %v4848_v46 = vor.u32 %v4377_v27, %v3595_v26 }
  0x18   :  { %1392 = vmatpush.bf16.msra.mxu0 %v3736_v17  ;;  %4580 = vmatpush.bf16.msra.mxu1 %v3736_v17  ;;  %v4477_v33 = vld [vmem:[%s7420_s1 + $0x280] sm:$0xf0]  ;;  %v4183_v36 = vld [vmem:[%s7420_s1 + $0x3f0] sm:$0xf]  ;;  %v4474_v37 = vld [vmem:[%s7420_s1 + $0x26c] sm:$0xf]  ;;  %v4850_v47 = vor.u32 %v4389_v29, %v3643_v28 }
  0x19   :  { %4581 = vmatpush.bf16.msra.mxu2 %v3736_v17  ;;  %4582 = vmatpush.bf16.msra.mxu3 %v3736_v17  ;;  %v4365_v17 = vld [vmem:[%s7421_s0 + $0x80] sm:$0xf0]  ;;  %v4526_v41 = vld [vmem:[%s7420_s1 + $0x408] sm:$0xf0]  ;;  %v4411_v42 = vld [vmem:[%s7420_s1 + $0x74] sm:$0xf] }
  0x1a   :  { %v4837_v40 = vor.u32 %v4365_v17, %v3547_v16  ;;  %v3737_v45 = vld [vmem:[%s7420_s1 + $0x8c] sm:$0xf0]  ;;  %7496 = vst [vmem:[#allocation5_spill] sm:$0xff] %v4850_v47  ;;  %v4184_v52 = vor.u32 %v4526_v41, %v4183_v36  ;;  %v4155_v56 = vld [vmem:[%s7420_s1 + $0x3b8] sm:$0xf] }
  0x1b   :  { %v3740_v53 = vor.u32 %v4411_v42, %v3737_v45  ;;  %v4519_v58 = vld [vmem:[%s7420_s1 + $0x3d0] sm:$0xf0]  ;;  %v4404_v59 = vld [vmem:[%s7420_s1 + $0x3c] sm:$0xf]  ;;  %v3709_v60 = vld [vmem:[%s7420_s1 + $0x54] sm:$0xf0] }
  0x1c   :  { %1393 = vmatpush.bf16.msra.mxu0 %v3708_v20  ;;  %4583 = vmatpush.bf16.msra.mxu1 %v3708_v20  ;;  %7495 = vst [vmem:[#allocation4_spill] sm:$0xff] %v4837_v40  ;;  %v4156_v61 = vor.u32 %v4519_v58, %v4155_v56  ;;  %v3961_v0 = vld [vmem:[%s7420_s1 + $0x24c] sm:$0xf0]  ;;  %v3931_v1 = vld [vmem:[%s7420_s1 + $0x1f8] sm:$0xf] }
  0x1d   :  { %4584 = vmatpush.bf16.msra.mxu2 %v3708_v20  ;;  %4585 = vmatpush.bf16.msra.mxu3 %v3708_v20  ;;  %v4211_v20 = vld [vmem:[%s7420_s1 + $0x428] sm:$0xf]  ;;  %v4127_v4 = vld [vmem:[%s7420_s1 + $0x380] sm:$0xf]  ;;  %v4512_v5 = vld [vmem:[%s7420_s1 + $0x398] sm:$0xf0] }
  0x1e   :  { %v4212_v34 = vor.u32 %v4533_v23, %v4211_v20  ;;  %v4397_v6 = vld [vmem:[%s7420_s1 + $0x4] sm:$0xf]  ;;  %v3681_v7 = vld [vmem:[%s7420_s1 + $0x1c] sm:$0xf0]  ;;  %v4460_v8 = vld [vmem:[%s7420_s1 + $0x1fc] sm:$0xf]  ;;  %v4128_v12 = vor.u32 %v4512_v5, %v4127_v4 }
  0x1f   :  { %v3684_v13 = vor.u32 %v4397_v6, %v3681_v7  ;;  %v4453_v16 = vld [vmem:[%s7420_s1 + $0x1c4] sm:$0xf]  ;;  %v3905_v17 = vld [vmem:[%s7420_s1 + $0x1dc] sm:$0xf0]  ;;  %v3559_v20 = vld [vmem:[%s7421_s0 + $0x90] sm:$0xf] }
  0x20   :  { %1394 = vmatpush.bf16.msra.mxu0 %v3680_v31  ;;  %4586 = vmatpush.bf16.msra.mxu1 %v3680_v31  ;;  %v4380_v23 = vld [vmem:[%s7421_s0 + $0xf8] sm:$0xf0]  ;;  %v3655_v24 = vld [vmem:[%s7421_s0 + $0x150] sm:$0xf]  ;;  %v3908_v27 = vor.u32 %v4453_v16, %v3905_v17  ;;  %v4506_v36 = vld [vmem:[%s7420_s1 + $0x368] sm:$0xf0] }
  0x21   :  { %4587 = vmatpush.bf16.msra.mxu2 %v3680_v31  ;;  %4588 = vmatpush.bf16.msra.mxu3 %v3680_v31  ;;  %v4020_v31 = vor.u32 %v4481_v21, %v4017_v22  ;;  %v4368_v21 = vld [vmem:[%s7421_s0 + $0x98] sm:$0xf0]  ;;  %v3607_v22 = vld [vmem:[%s7421_s0 + $0xf0] sm:$0xf]  ;;  %v3619_v56 = vld [vmem:[%s7421_s0 + $0x108] sm:$0xf] }
  0x22   :  { %v4392_v25 = vld [vmem:[%s7421_s0 + $0x158] sm:$0xf0]  ;;  %v4942_v29 = vor.u32 %v4368_v21, %v3559_v20  ;;  %v4331_v45 = vld [vmem:[%s7420_s1 + $0x510] sm:$0xf]  ;;  %v3667_v58 = vld [vmem:[%s7421_s0 + $0x168] sm:$0xf] }
  0x23   :  { %1395 = vmatmul.bf16.vlgmr.msra.gmra.mxu0 %v4703_v43  ;;  %1415 = vmatmul.bf16.vlgmr.msra.gmra.mxu1 %v4705_v44  ;;  %v3855_v6 = vld [vmem:[%s7420_s1 + $0x158] sm:$0xf]  ;;  %v4443_v7 = vld [vmem:[%s7420_s1 + $0x170] sm:$0xf0]  ;;  %v3507_v20 = vld [vmem:[%s7421_s0 + $0x20] sm:$0xf] }
  0x24   :  { %1435 = vmatmul.bf16.vlgmr.msra.gmra.mxu2 %v4716_v48  ;;  %1455 = vmatmul.bf16.vlgmr.msra.gmra.mxu3 %v4718_v49  ;;  %7497 = vst [vmem:[#allocation6_spill] sm:$0xff] %v4942_v29  ;;  %v4555_v16 = vld [vmem:[%s7420_s1 + $0x4f0] sm:$0xf0]  ;;  %v4354_v21 = vld [vmem:[%s7421_s0 + $0x28] sm:$0xf0] }
  0x25   :  { %1565 = vmatpush.bf16.msrb.mxu2 %v4324_v38  ;;  %1654 = vmatpush.bf16.msrb.mxu3 %v3880_v39  ;;  %v3989_v38 = vld [vmem:[%s7420_s1 + $0x284] sm:$0xf0]  ;;  %v4835_v39 = vor.u32 %v4353_v15, %v3499_v14  ;;  %v4456_v15 = vld [vmem:[%s7420_s1 + $0x1d8] sm:$0xf0] }
  0x26   :  { %1476 = vmatpush.bf16.msrb.mxu1 %v4100_v50  ;;  %1743 = vmatpush.bf16.msrb.mxu0 %v4104_v51  ;;  %v3988_v50 = vor.u32 %v4477_v33, %v3987_v32  ;;  %v3992_v51 = vor.u32 %v4474_v37, %v3989_v38  ;;  %v3883_v32 = vld [vmem:[%s7420_s1 + $0x190] sm:$0xf]  ;;  %v4450_v33 = vld [vmem:[%s7420_s1 + $0x1a8] sm:$0xf0]  ;;  %v4325_v38 = vld [vmem:[%s7420_s1 + $0x524] sm:$0xf0] }
  0x27   :  { %v4558_v37 = vld [vmem:[%s7420_s1 + $0x50c] sm:$0xf] }
  0x28   :  { %v4328_v42 = vor.u32 %v4558_v37, %v4325_v38  ;;  %v4492_v38 = vld [vmem:[%s7420_s1 + $0x2f8] sm:$0xf0] }
  0x29   :  { %1566 = vmatpush.bf16.msrb.mxu2 %v4296_v54  ;;  %1655 = vmatpush.bf16.msrb.mxu3 %v3852_v55  ;;  %v3959_v54 = vld [vmem:[%s7420_s1 + $0x230] sm:$0xf]  ;;  %v4470_v55 = vld [vmem:[%s7420_s1 + $0x248] sm:$0xf0] }
  0x2a   :  { %1477 = vmatpush.bf16.msrb.mxu1 %v4072_v62  ;;  %1744 = vmatpush.bf16.msrb.mxu0 %v4076_v63  ;;  %v3960_v57 = vor.u32 %v4470_v55, %v3959_v54  ;;  %v3712_v62 = vor.u32 %v4404_v59, %v3709_v60  ;;  %v4467_v63 = vld [vmem:[%s7420_s1 + $0x234] sm:$0xf]  ;;  %v3571_v54 = vld [vmem:[%s7421_s0 + $0xa8] sm:$0xf] }
  0x2b   :  { %v4371_v55 = vld [vmem:[%s7421_s0 + $0xb0] sm:$0xf0] }
  0x2c   :  { %v4395_v59 = vld [vmem:[%s7421_s0 + $0x170] sm:$0xf0] }
  0x2d   :  { %1567 = vmatpush.bf16.msrb.mxu2 %v4268_v2  ;;  %1656 = vmatpush.bf16.msrb.mxu3 %v3824_v3  ;;  %v3964_v2 = vor.u32 %v4467_v63, %v3961_v0  ;;  %v4463_v3 = vld [vmem:[%s7420_s1 + $0x210] sm:$0xf0]  ;;  %v5006_v63 = vor.u32 %v4395_v59, %v3667_v58  ;;  %v4349_v0 = vld [vmem:[%s7421_s0 + $0x4] sm:$0xf] }
  0x2e   :  { %1478 = vmatpush.bf16.msrb.mxu1 %v4044_v10  ;;  %1745 = vmatpush.bf16.msrb.mxu0 %v4048_v11  ;;  %v3932_v9 = vor.u32 %v4463_v3, %v3931_v1  ;;  %v3933_v10 = vld [vmem:[%s7420_s1 + $0x214] sm:$0xf0]  ;;  %v3903_v11 = vld [vmem:[%s7420_s1 + $0x1c0] sm:$0xf]  ;;  %v3489_v1 = vld [vmem:[%s7421_s0 + $0xc] sm:$0xf0] }
  0x2f   :  { %v3936_v14 = vor.u32 %v4460_v8, %v3933_v10  ;;  %v3904_v26 = vor.u32 %v4456_v15, %v3903_v11  ;;  %v4351_v3 = vld [vmem:[%s7421_s0 + $0x10] sm:$0xf0]  ;;  %v5024_v4 = vor.u32 %v4349_v0, %v3489_v1  ;;  %v4079_v8 = vld [vmem:[%s7420_s1 + $0x318] sm:$0xf]  ;;  %v4361_v0 = vld [vmem:[%s7421_s0 + $0x64] sm:$0xf] }
  0x30   :  { %v4499_v10 = vld [vmem:[%s7420_s1 + $0x330] sm:$0xf0]  ;;  %v4303_v15 = vld [vmem:[%s7420_s1 + $0x4d8] sm:$0xf]  ;;  %v3537_v1 = vld [vmem:[%s7421_s0 + $0x6c] sm:$0xf0] }
  0x31   :  { %1568 = vmatpush.bf16.msrb.mxu2 %v4240_v18  ;;  %1657 = vmatpush.bf16.msrb.mxu3 %v3796_v19  ;;  %v3511_v18 = vld [vmem:[%s7421_s0 + $0x30] sm:$0xf]  ;;  %v4356_v19 = vld [vmem:[%s7421_s0 + $0x38] sm:$0xf0]  ;;  %7502 = vst [vmem:[#allocation11_spill] sm:$0xff] %v5024_v4  ;;  %v4304_v17 = vor.u32 %v4555_v16, %v4303_v15 }
  0x32   :  { %1479 = vmatpush.bf16.msrb.mxu1 %v4016_v30  ;;  %1746 = vmatpush.bf16.msrb.mxu0 %v4020_v31  ;;  %v4940_v28 = vor.u32 %v4356_v19, %v3511_v18  ;;  %v4944_v30 = vor.u32 %v4380_v23, %v3607_v22  ;;  %v4946_v31 = vor.u32 %v4392_v25, %v3655_v24  ;;  %v4551_v11 = vld [vmem:[%s7420_s1 + $0x4d4] sm:$0xf]  ;;  %v4352_v18 = vld [vmem:[%s7421_s0 + $0x1c] sm:$0xf]  ;;  %v3501_v19 = vld [vmem:[%s7421_s0 + $0x24] sm:$0xf0] }
  0x33   :  { %1400 = vmatmul.bf16.gmra.mxu0 %v4835_v39  ;;  %1420 = vmatmul.bf16.gmra.mxu1 %v4837_v40  ;;  %v5068_v22 = vor.u32 %v4352_v18, %v3501_v19  ;;  %v5070_v23 = vor.u32 %v4354_v21, %v3507_v20  ;;  %v4355_v24 = vld [vmem:[%s7421_s0 + $0x34] sm:$0xf]  ;;  %v3513_v25 = vld [vmem:[%s7421_s0 + $0x3c] sm:$0xf0]  ;;  %v4537_v20 = vld [vmem:[%s7420_s1 + $0x464] sm:$0xf] }
  0x34   :  { %1440 = vmatmul.bf16.gmra.mxu2 %v4848_v46  ;;  %1460 = vmatmul.bf16.gmra.mxu3 %v4850_v47  ;;  %7498 = vst [vmem:[#allocation7_spill] sm:$0xff] %v4944_v30  ;;  %v4241_v21 = vld [vmem:[%s7420_s1 + $0x47c] sm:$0xf0] }
  0x35   :  { %1569 = vmatpush.bf16.msrb.mxu2 %v4212_v34  ;;  %1658 = vmatpush.bf16.msrb.mxu3 %v3768_v35  ;;  %7499 = vst [vmem:[#allocation8_spill] sm:$0xff] %v4946_v31  ;;  %v4107_v34 = vld [vmem:[%s7420_s1 + $0x350] sm:$0xf]  ;;  %v3884_v35 = vor.u32 %v4450_v33, %v3883_v32  ;;  %v5088_v32 = vor.u32 %v4355_v24, %v3513_v25  ;;  %v4247_v24 = vld [vmem:[%s7420_s1 + $0x468] sm:$0xf] }
  0x36   :  { %1480 = vmatpush.bf16.msrb.mxu1 %v3988_v50  ;;  %1747 = vmatpush.bf16.msrb.mxu0 %v3992_v51  ;;  %v4108_v41 = vor.u32 %v4506_v36, %v4107_v34  ;;  %v4562_v50 = vld [vmem:[%s7420_s1 + $0x528] sm:$0xf0]  ;;  %v3827_v34 = vld [vmem:[%s7420_s1 + $0x120] sm:$0xf]  ;;  %v4244_v25 = vor.u32 %v4537_v20, %v4241_v21  ;;  %v3995_v20 = vld [vmem:[%s7420_s1 + $0x270] sm:$0xf] }
  0x37   :  { %v4332_v51 = vor.u32 %v4562_v50, %v4331_v45  ;;  %7503 = vst [vmem:[#allocation12_spill] sm:$0xff] %v5088_v32  ;;  %v4051_v36 = vld [vmem:[%s7420_s1 + $0x2e0] sm:$0xf]  ;;  %v4269_v45 = vld [vmem:[%s7420_s1 + $0x4b4] sm:$0xf0] }
  0x38   :  { %v4275_v50 = vld [vmem:[%s7420_s1 + $0x4a0] sm:$0xf] }
  0x39   :  { %1570 = vmatpush.bf16.msrb.mxu2 %v4184_v52  ;;  %1659 = vmatpush.bf16.msrb.mxu3 %v3740_v53  ;;  %v3523_v52 = vld [vmem:[%s7421_s0 + $0x48] sm:$0xf]  ;;  %v4359_v53 = vld [vmem:[%s7421_s0 + $0x50] sm:$0xf0] }
  0x3a   :  { %1481 = vmatpush.bf16.msrb.mxu1 %v3960_v57  ;;  %1748 = vmatpush.bf16.msrb.mxu0 %v3964_v2  ;;  %v4383_v57 = vld [vmem:[%s7421_s0 + $0x110] sm:$0xf0]  ;;  %v5000_v60 = vor.u32 %v4359_v53, %v3523_v52  ;;  %v3495_v2 = vld [vmem:[%s7421_s0 + $0x8] sm:$0xf]  ;;  %v4548_v52 = vld [vmem:[%s7420_s1 + $0x4b8] sm:$0xf0] }
  0x3b   :  { %v5026_v5 = vor.u32 %v4351_v3, %v3495_v2  ;;  %v4276_v53 = vor.u32 %v4548_v52, %v4275_v50  ;;  %v3543_v2 = vld [vmem:[%s7421_s0 + $0x68] sm:$0xf]  ;;  %v4363_v3 = vld [vmem:[%s7421_s0 + $0x70] sm:$0xf0] }
  0x3d   :  { %1571 = vmatpush.bf16.msrb.mxu2 %v4156_v61  ;;  %1660 = vmatpush.bf16.msrb.mxu3 %v3712_v62  ;;  %v5002_v61 = vor.u32 %v4371_v55, %v3571_v54  ;;  %v5004_v62 = vor.u32 %v4383_v57, %v3619_v56  ;;  %v4358_v54 = vld [vmem:[%s7421_s0 + $0x4c] sm:$0xf]  ;;  %v3525_v55 = vld [vmem:[%s7421_s0 + $0x54] sm:$0xf0]  ;;  %v3531_v56 = vld [vmem:[%s7421_s0 + $0x50] sm:$0xf] }
  0x3e   :  { %1482 = vmatpush.bf16.msrb.mxu1 %v3932_v9  ;;  %1749 = vmatpush.bf16.msrb.mxu0 %v3936_v14  ;;  %v3856_v9 = vor.u32 %v4443_v7, %v3855_v6  ;;  %v4360_v57 = vld [vmem:[%s7421_s0 + $0x58] sm:$0xf0]  ;;  %v5132_v58 = vor.u32 %v4358_v54, %v3525_v55  ;;  %v5152_v6 = vor.u32 %v4361_v0, %v3537_v1  ;;  %v3567_v0 = vld [vmem:[%s7421_s0 + $0x98] sm:$0xf]  ;;  %v4369_v1 = vld [vmem:[%s7421_s0 + $0xa0] sm:$0xf0] }
  0x3f   :  { %7500 = vst [vmem:[#allocation9_spill] sm:$0xff] %v5002_v61  ;;  %v5134_v59 = vor.u32 %v4360_v57, %v3531_v56  ;;  %v4367_v56 = vld [vmem:[%s7421_s0 + $0x94] sm:$0xf]  ;;  %v3561_v57 = vld [vmem:[%s7421_s0 + $0x9c] sm:$0xf0] }
  0x40   :  { %7501 = vst [vmem:[#allocation10_spill] sm:$0xff] %v5004_v62 }
  0x41   :  { %1572 = vmatpush.bf16.msrb.mxu2 %v4128_v12  ;;  %1661 = vmatpush.bf16.msrb.mxu3 %v3684_v13  ;;  %v4297_v12 = vld [vmem:[%s7420_s1 + $0x4ec] sm:$0xf0]  ;;  %v4080_v13 = vor.u32 %v4499_v10, %v4079_v8  ;;  %7504 = vst [vmem:[#allocation13_spill] sm:$0xff] %v5152_v6  ;;  %v3799_v10 = vld [vmem:[%s7420_s1 + $0xe8] sm:$0xf] }
  0x42   :  { %1483 = vmatpush.bf16.msrb.mxu1 %v3904_v26  ;;  %1750 = vmatpush.bf16.msrb.mxu0 %v3908_v27  ;;  %v4300_v14 = vor.u32 %v4551_v11, %v4297_v12  ;;  %v3519_v26 = vld [vmem:[%s7421_s0 + $0x38] sm:$0xf]  ;;  %v4357_v27 = vld [vmem:[%s7421_s0 + $0x40] sm:$0xf0]  ;;  %v4023_v12 = vld [vmem:[%s7420_s1 + $0x2a8] sm:$0xf] }
  0x43   :  { %1405 = vmatmul.bf16.gmra.mxu0 %v4940_v28  ;;  %1425 = vmatmul.bf16.gmra.mxu1 %v4942_v29  ;;  %v5090_v33 = vor.u32 %v4357_v27, %v3519_v26  ;;  %v4429_v11 = vld [vmem:[%s7420_s1 + $0x100] sm:$0xf0] }
  0x44   :  { %1445 = vmatmul.bf16.gmra.mxu2 %v4944_v30  ;;  %1465 = vmatmul.bf16.gmra.mxu3 %v4946_v31  ;;  %v4541_v26 = vld [vmem:[%s7420_s1 + $0x480] sm:$0xf0] }
  0x45   :  { %1921 = vmatpush.bf16.msra.mxu2 %v3884_v35  ;;  %2010 = vmatpush.bf16.msra.mxu3 %v4108_v41  ;;  %v4436_v35 = vld [vmem:[%s7420_s1 + $0x138] sm:$0xf0]  ;;  %v4052_v41 = vor.u32 %v4492_v38, %v4051_v36  ;;  %v4248_v27 = vor.u32 %v4541_v26, %v4247_v24  ;;  %v3555_v36 = vld [vmem:[%s7421_s0 + $0x80] sm:$0xf]  ;;  %v4478_v24 = vld [vmem:[%s7420_s1 + $0x288] sm:$0xf0] }
  0x46   :  { %1832 = vmatpush.bf16.msra.mxu1 %v4328_v42  ;;  %2099 = vmatpush.bf16.msra.mxu0 %v4332_v51  ;;  %v3828_v37 = vor.u32 %v4436_v35, %v3827_v34  ;;  %v4544_v42 = vld [vmem:[%s7420_s1 + $0x49c] sm:$0xf]  ;;  %v3549_v35 = vld [vmem:[%s7421_s0 + $0x84] sm:$0xf0] }
  0x47   :  { %v4272_v51 = vor.u32 %v4544_v42, %v4269_v45  ;;  %v4364_v34 = vld [vmem:[%s7421_s0 + $0x7c] sm:$0xf] }
  0x48   :  { %v5212_v42 = vor.u32 %v4364_v34, %v3549_v35 }
  0x49   :  { %1922 = vmatpush.bf16.msra.mxu2 %v3856_v9  ;;  %2011 = vmatpush.bf16.msra.mxu3 %v4080_v13  ;;  %v5158_v9 = vor.u32 %v4363_v3, %v3543_v2  ;;  %v3800_v13 = vor.u32 %v4429_v11, %v3799_v10  ;;  %v5248_v10 = vor.u32 %v4367_v56, %v3561_v57  ;;  %v4219_v56 = vld [vmem:[%s7420_s1 + $0x430] sm:$0xf] }
  0x4a   :  { %1833 = vmatpush.bf16.msra.mxu1 %v4300_v14  ;;  %2100 = vmatpush.bf16.msra.mxu0 %v4304_v17  ;;  %v4485_v14 = vld [vmem:[%s7420_s1 + $0x2c0] sm:$0xf0]  ;;  %7506 = vst [vmem:[#allocation15_spill] sm:$0xff] %v5212_v42 }
  0x4b   :  { %7505 = vst [vmem:[#allocation14_spill] sm:$0xff] %v5158_v9  ;;  %v4024_v15 = vor.u32 %v4485_v14, %v4023_v12  ;;  %v3771_v14 = vld [vmem:[%s7420_s1 + $0xb0] sm:$0xf] }
  0x4c   :  { %7510 = vst [vmem:[#allocation19_spill] sm:$0xff] %v5248_v10 }
  0x4d   :  { %1923 = vmatpush.bf16.msra.mxu2 %v3828_v37  ;;  %2012 = vmatpush.bf16.msra.mxu3 %v4052_v41  ;;  %v4366_v37 = vld [vmem:[%s7421_s0 + $0x88] sm:$0xf0] }
  0x4e   :  { %1834 = vmatpush.bf16.msra.mxu1 %v4272_v51  ;;  %2101 = vmatpush.bf16.msra.mxu0 %v4276_v53  ;;  %v5218_v51 = vor.u32 %v4366_v37, %v3555_v36  ;;  %v4530_v36 = vld [vmem:[%s7420_s1 + $0x42c] sm:$0xf]  ;;  %v4213_v37 = vld [vmem:[%s7420_s1 + $0x444] sm:$0xf0] }
  0x4f   :  { %v4216_v57 = vor.u32 %v4530_v36, %v4213_v37 }
  0x50   :  { %7507 = vst [vmem:[#allocation16_spill] sm:$0xff] %v5218_v51 }
  0x51   :  { %1924 = vmatpush.bf16.msra.mxu2 %v3800_v13  ;;  %2013 = vmatpush.bf16.msra.mxu3 %v4024_v15  ;;  %v5254_v13 = vor.u32 %v4369_v1, %v3567_v0  ;;  %v4422_v15 = vld [vmem:[%s7420_s1 + $0xc8] sm:$0xf0] }
  0x52   :  { %1835 = vmatpush.bf16.msra.mxu1 %v4244_v25  ;;  %2102 = vmatpush.bf16.msra.mxu0 %v4248_v27  ;;  %v3772_v21 = vor.u32 %v4422_v15, %v3771_v14  ;;  %v3996_v25 = vor.u32 %v4478_v24, %v3995_v20  ;;  %v4534_v0 = vld [vmem:[%s7420_s1 + $0x448] sm:$0xf0]  ;;  %v3573_v14 = vld [vmem:[%s7421_s0 + $0xb4] sm:$0xf0]  ;;  %v3579_v20 = vld [vmem:[%s7421_s0 + $0xb0] sm:$0xf] }
  0x53   :  { %1410 = vmatmul.bf16.gmra.mxu0 %v5000_v60  ;;  %1430 = vmatmul.bf16.gmra.mxu1 %v5002_v61  ;;  %7511 = vst [vmem:[#allocation20_spill] sm:$0xff] %v5254_v13  ;;  %v4370_v1 = vld [vmem:[%s7421_s0 + $0xac] sm:$0xf]  ;;  %v4220_v15 = vor.u32 %v4534_v0, %v4219_v56 }
  0x54   :  { %1450 = vmatmul.bf16.gmra.mxu2 %v5004_v62  ;;  %1470 = vmatmul.bf16.gmra.mxu3 %v5006_v63  ;;  %v5308_v36 = vor.u32 %v4370_v1, %v3573_v14 }
  0x55   :  { %1925 = vmatpush.bf16.msra.mxu2 %v3772_v21  ;;  %2014 = vmatpush.bf16.msra.mxu3 %v3996_v25  ;;  %v4372_v21 = vld [vmem:[%s7421_s0 + $0xb8] sm:$0xf0] }
  0x56   :  { %1836 = vmatpush.bf16.msra.mxu1 %v4216_v57  ;;  %2103 = vmatpush.bf16.msra.mxu0 %v4220_v15  ;;  %7514 = vst [vmem:[#allocation23_spill] sm:$0xff] %v5308_v36  ;;  %v5314_v56 = vor.u32 %v4372_v21, %v3579_v20  ;;  %v4373_v15 = vld [vmem:[%s7421_s0 + $0xc4] sm:$0xf]  ;;  %v3585_v20 = vld [vmem:[%s7421_s0 + $0xcc] sm:$0xf0] }
  0x57   :  { %v3591_v21 = vld [vmem:[%s7421_s0 + $0xc8] sm:$0xf] }
  0x58   :  { %7515 = vst [vmem:[#allocation24_spill] sm:$0xff] %v5314_v56 }
  0x63   :  { %1484 = vmatmul.bf16.vlgmr.msrb.gmra.mxu1 %v5024_v4  ;;  %1751 = vmatmul.bf16.vlgmr.msrb.gmra.mxu0 %v5024_v4 }
  0x64   :  { %1573 = vmatmul.bf16.vlgmr.msrb.gmra.mxu2 %v5026_v5  ;;  %1662 = vmatmul.bf16.vlgmr.msrb.gmra.mxu3 %v4703_v43 }
  0x73   :  { %1489 = vmatmul.bf16.gmra.mxu1 %v5068_v22  ;;  %1756 = vmatmul.bf16.gmra.mxu0 %v5068_v22 }
  0x74   :  { %1578 = vmatmul.bf16.gmra.mxu2 %v5070_v23  ;;  %1667 = vmatmul.bf16.gmra.mxu3 %v4835_v39 }
  0x83   :  { %1494 = vmatmul.bf16.gmra.mxu1 %v5088_v32  ;;  %1761 = vmatmul.bf16.gmra.mxu0 %v5088_v32 }
  0x84   :  { %1583 = vmatmul.bf16.gmra.mxu2 %v5090_v33  ;;  %1672 = vmatmul.bf16.gmra.mxu3 %v4940_v28 }
  0x93   :  { %1499 = vmatmul.bf16.gmra.mxu1 %v5132_v58  ;;  %1766 = vmatmul.bf16.gmra.mxu0 %v5132_v58 }
  0x94   :  { %1588 = vmatmul.bf16.gmra.mxu2 %v5134_v59  ;;  %1677 = vmatmul.bf16.gmra.mxu3 %v5000_v60 }
  0xa0   :  { %v5154_v7 = vpop.f32.mrf.mxu0  ;;  %v5156_v8 = vpop.f32.mrf.mxu1 }
  0xa3   :  { %1504 = vmatmul.bf16.gmra.mxu1 %v5152_v6  ;;  %1771 = vmatmul.bf16.gmra.mxu0 %v5152_v6 }
  0xa4   :  { %1593 = vmatmul.bf16.gmra.mxu2 %v5158_v9  ;;  %1682 = vmatmul.bf16.gmra.mxu3 %v4705_v44 }
  0xa7   :  { %v5176_v16 = vpop.f32.mrf.mxu2  ;;  %v5178_v17 = vpop.f32.mrf.mxu3 }
  0xa8   :  { %v5180_v18 = vpop.f32.mrf.mxu0  ;;  %v5182_v19 = vpop.f32.mrf.mxu1 }
  0xaf   :  { %v5208_v38 = vpop.f32.mrf.mxu2  ;;  %v5210_v41 = vpop.f32.mrf.mxu3 }
  0xb0   :  { %v5214_v45 = vpop.f32.mrf.mxu0  ;;  %v5216_v50 = vpop.f32.mrf.mxu1 }
  0xb3   :  { %1509 = vmatmul.bf16.gmra.mxu1 %v5212_v42  ;;  %1776 = vmatmul.bf16.gmra.mxu0 %v5212_v42 }
  0xb4   :  { %1598 = vmatmul.bf16.gmra.mxu2 %v5218_v51  ;;  %1687 = vmatmul.bf16.gmra.mxu3 %v4837_v40 }
  0xb7   :  { %v5224_v52 = vpop.f32.mrf.mxu2  ;;  %v5226_v53 = vpop.f32.mrf.mxu3 }
  0xb8   :  { %7508 = vst [vmem:[#allocation17_spill] sm:$0xff] %v5226_v53  ;;  %v5228_v54 = vpop.f32.mrf.mxu0  ;;  %v5230_v55 = vpop.f32.mrf.mxu1 }
  0xbf   :  { %v5244_v2 = vpop.f32.mrf.mxu2  ;;  %v5246_v3 = vpop.f32.mrf.mxu3 }
  0xc0   :  { %7509 = vst [vmem:[#allocation18_spill] sm:$0xff] %v5246_v3  ;;  %v5250_v11 = vpop.f32.mrf.mxu0  ;;  %v5252_v12 = vpop.f32.mrf.mxu1 }
  0xc3   :  { %1514 = vmatmul.bf16.gmra.mxu1 %v5248_v10  ;;  %1781 = vmatmul.bf16.gmra.mxu0 %v5248_v10 }
  0xc4   :  { %1603 = vmatmul.bf16.gmra.mxu2 %v5254_v13  ;;  %1692 = vmatmul.bf16.gmra.mxu3 %v4942_v29  ;;  %v3743_v13 = vld [vmem:[%s7420_s1 + $0x78] sm:$0xf] }
  0xc7   :  { %v5272_v26 = vpop.f32.mrf.mxu2  ;;  %v5274_v27 = vpop.f32.mrf.mxu3 }
  0xc8   :  { %7512 = vst [vmem:[#allocation21_spill] sm:$0xff] %v5274_v27  ;;  %v5276_v34 = vpop.f32.mrf.mxu0  ;;  %v5278_v35 = vpop.f32.mrf.mxu1 }
  0xcf   :  { %v5304_v24 = vpop.f32.mrf.mxu2  ;;  %v5306_v25 = vpop.f32.mrf.mxu3 }
  0xd0   :  { %7513 = vst [vmem:[#allocation22_spill] sm:$0xff] %v5306_v25  ;;  %v5310_v37 = vpop.f32.mrf.mxu0  ;;  %v5312_v27 = vpop.f32.mrf.mxu1 }
  0xd3   :  { %1519 = vmatmul.bf16.gmra.mxu1 %v5308_v36  ;;  %1786 = vmatmul.bf16.gmra.mxu0 %v5308_v36 }
  0xd4   :  { %1608 = vmatmul.bf16.gmra.mxu2 %v5314_v56  ;;  %1697 = vmatmul.bf16.gmra.mxu3 %v5002_v61  ;;  %v5344_v56 = vor.u32 %v4373_v15, %v3585_v20  ;;  %v4415_v15 = vld [vmem:[%s7420_s1 + $0x90] sm:$0xf0] }
  0xd5   :  { %v3744_v20 = vor.u32 %v4415_v15, %v3743_v13  ;;  %v4523_v13 = vld [vmem:[%s7420_s1 + $0x3f4] sm:$0xf]  ;;  %v4378_v15 = vld [vmem:[%s7421_s0 + $0xe8] sm:$0xf0] }
  0xd6   :  { %7518 = vst [vmem:[#allocation27_spill] sm:$0xff] %v5344_v56 }
  0xd7   :  { %v5320_v57 = vpop.f32.mrf.mxu2  ;;  %v5322_v0 = vpop.f32.mrf.mxu3  ;;  %1926 = vmatpush.bf16.msra.mxu2 %v3744_v20 }
  0xd8   :  { %7516 = vst [vmem:[#allocation25_spill] sm:$0xff] %v5322_v0  ;;  %v5324_v1 = vpop.f32.mrf.mxu0  ;;  %v5326_v14 = vpop.f32.mrf.mxu1  ;;  %v4375_v0 = vld [vmem:[%s7421_s0 + $0xd0] sm:$0xf0] }
  0xd9   :  { %v5346_v29 = vor.u32 %v4375_v0, %v3591_v21  ;;  %v3967_v0 = vld [vmem:[%s7420_s1 + $0x238] sm:$0xf]  ;;  %v4471_v21 = vld [vmem:[%s7420_s1 + $0x250] sm:$0xf0] }
  0xdb   :  { %7519 = vst [vmem:[#allocation28_spill] sm:$0xff] %v5346_v29 }
  0xdf   :  { %v5340_v36 = vpop.f32.mrf.mxu2  ;;  %v5342_v61 = vpop.f32.mrf.mxu3 }
  0xe0   :  { %7517 = vst [vmem:[#allocation26_spill] sm:$0xff] %v5342_v61  ;;  %v1485_v25 = vpop.f32.mrf.mxu1  ;;  %v1752_v10 = vpop.f32.mrf.mxu0 }
  0xe3   :  { %1524 = vmatmul.bf16.gmra.mxu1 %v5344_v56  ;;  %1791 = vmatmul.bf16.gmra.mxu0 %v5344_v56  ;;  %v1486_v56 = vadd.f32 %v1485_v25, %v5154_v7  ;;  %v4185_v7 = vld [vmem:[%s7420_s1 + $0x40c] sm:$0xf0] }
  0xe4   :  { %1613 = vmatmul.bf16.gmra.mxu2 %v5346_v29  ;;  %1702 = vmatmul.bf16.gmra.mxu3 %v4716_v48  ;;  %v3968_v48 = vor.u32 %v4471_v21, %v3967_v0 }
  0xe6   :  { %2015 = vmatpush.bf16.msra.mxu3 %v3968_v48  ;;  %v4527_v48 = vld [vmem:[%s7420_s1 + $0x410] sm:$0xf0] }
  0xe7   :  { %v1574_v29 = vpop.f32.mrf.mxu2  ;;  %v1663_v61 = vpop.f32.mrf.mxu3 }
  0xe8   :  { %v1575_v3 = vadd.f32 %v1574_v29, %v1486_v56  ;;  %v5365_v53 = vadd.f32 %v1752_v10, %v1663_v61  ;;  %v1487_v42 = vpop.f32.mrf.mxu1  ;;  %v1754_v40 = vpop.f32.mrf.mxu0  ;;  %v4191_v29 = vld [vmem:[%s7420_s1 + $0x3f8] sm:$0xf]  ;;  %v4188_v61 = vor.u32 %v4523_v13, %v4185_v7  ;;  %v3597_v10 = vld [vmem:[%s7421_s0 + $0xe4] sm:$0xf0]  ;;  %v3603_v56 = vld [vmem:[%s7421_s0 + $0xe0] sm:$0xf] }
  0xe9   :  { %v4192_v25 = vor.u32 %v4527_v48, %v4191_v29  ;;  %v1488_v0 = vadd.f32 %v1487_v42, %v5180_v18  ;;  %v5399_v51 = vor.u32 %v4378_v15, %v3603_v56  ;;  %v4379_v56 = vld [vmem:[%s7421_s0 + $0xf4] sm:$0xf]  ;;  %v3609_v15 = vld [vmem:[%s7421_s0 + $0xfc] sm:$0xf0] }
  0xea   :  { %7520 = vst [vmem:[#allocation29_spill] sm:$0xff] %v5365_v53  ;;  %1837 = vmatpush.bf16.msra.mxu1 %v4188_v61 }
  0xeb   :  { %3256 = vst [vmem:[%s7422_s2] sm:$0xff] %v1575_v3  ;;  %v4376_v3 = vld [vmem:[%s7421_s0 + $0xdc] sm:$0xf]  ;;  %2104 = vmatpush.bf16.msra.mxu0 %v4192_v25 }
  0xec   :  { %v5395_v13 = vor.u32 %v4376_v3, %v3597_v10 }
  0xef   :  { %v1576_v20 = vpop.f32.mrf.mxu2  ;;  %v1665_v21 = vpop.f32.mrf.mxu3 }
  0xf0   :  { %v1577_v7 = vadd.f32 %v1576_v20, %v1488_v0  ;;  %v5397_v53 = vadd.f32 %v1754_v40, %v1665_v21  ;;  %v1490_v29 = vpop.f32.mrf.mxu1  ;;  %v1757_v48 = vpop.f32.mrf.mxu0  ;;  %v4381_v0 = vld [vmem:[%s7421_s0 + $0x100] sm:$0xf0] }
  0xf1   :  { %v1491_v18 = vadd.f32 %v1490_v29, %v5214_v45  ;;  %v3615_v45 = vld [vmem:[%s7421_s0 + $0xf8] sm:$0xf]  ;;  %v5427_v29 = vor.u32 %v4379_v56, %v3609_v15  ;;  %v4464_v15 = vld [vmem:[%s7420_s1 + $0x218] sm:$0xf0] }
  0xf2   :  { %3264 = vst [vmem:[%s7422_s2 + $0x38] sm:$0xff] %v1577_v7 }
  0xf3   :  { %1529 = vmatmul.bf16.gmra.mxu1 %v5395_v13  ;;  %1796 = vmatmul.bf16.gmra.mxu0 %v5395_v13  ;;  %7521 = vst [vmem:[#allocation30_spill] sm:$0xff] %v5427_v29 }
  0xf4   :  { %1618 = vmatmul.bf16.gmra.mxu2 %v5399_v51  ;;  %1707 = vmatmul.bf16.gmra.mxu3 %v4848_v46 }
  0xf7   :  { %v1579_v40 = vpop.f32.mrf.mxu2  ;;  %v1668_v42 = vpop.f32.mrf.mxu3 }
  0xf8   :  { %v1580_v61 = vadd.f32 %v1579_v40, %v1491_v18  ;;  %v5409_v3 = vadd.f32 %v1757_v48, %v1668_v42  ;;  %v1492_v10 = vpop.f32.mrf.mxu1  ;;  %v1759_v25 = vpop.f32.mrf.mxu0 }
  0xf9   :  { %v1493_v20 = vadd.f32 %v1492_v10, %v5228_v54  ;;  %v3715_v54 = vld [vmem:[%s7420_s1 + $0x40] sm:$0xf]  ;;  %v4408_v10 = vld [vmem:[%s7420_s1 + $0x58] sm:$0xf0] }
  0xfa   :  { %3271 = vst [vmem:[%s7422_s2 + $0x70] sm:$0xff] %v1580_v61  ;;  %v5431_v61 = vor.u32 %v4381_v0, %v3615_v45  ;;  %v3716_v56 = vor.u32 %v4408_v10, %v3715_v54  ;;  %v4516_v54 = vld [vmem:[%s7420_s1 + $0x3bc] sm:$0xf] }
  0xfb   :  { %v4520_v10 = vld [vmem:[%s7420_s1 + $0x3d8] sm:$0xf0] }
  0xfc   :  { %7522 = vst [vmem:[#allocation31_spill] sm:$0xff] %v5431_v61  ;;  %1927 = vmatpush.bf16.msra.mxu2 %v3716_v56  ;;  %v3621_v56 = vld [vmem:[%s7421_s0 + $0x114] sm:$0xf0] }
  0xff   :  { %v1581_v21 = vpop.f32.mrf.mxu2  ;;  %v1670_v7 = vpop.f32.mrf.mxu3 }
 0x100   :  { %v1582_v48 = vadd.f32 %v1581_v21, %v1493_v20  ;;  %v5429_v18 = vadd.f32 %v1759_v25, %v1670_v7  ;;  %v1495_v40 = vpop.f32.mrf.mxu1  ;;  %v1762_v42 = vpop.f32.mrf.mxu0  ;;  %v3939_v25 = vld [vmem:[%s7420_s1 + $0x200] sm:$0xf] }
 0x101   :  { %v1496_v45 = vadd.f32 %v1495_v40, %v5250_v11  ;;  %v3940_v0 = vor.u32 %v4464_v15, %v3939_v25  ;;  %v4157_v11 = vld [vmem:[%s7420_s1 + $0x3d4] sm:$0xf0]  ;;  %v4382_v25 = vld [vmem:[%s7421_s0 + $0x10c] sm:$0xf] }
 0x102   :  { %3278 = vst [vmem:[%s7422_s2 + $0xa8] sm:$0xff] %v1582_v48  ;;  %v4160_v40 = vor.u32 %v4516_v54, %v4157_v11  ;;  %v5483_v54 = vor.u32 %v4382_v25, %v3621_v56 }
 0x103   :  { %1534 = vmatmul.bf16.gmra.mxu1 %v5427_v29  ;;  %1801 = vmatmul.bf16.gmra.mxu0 %v5427_v29 }
 0x104   :  { %1623 = vmatmul.bf16.gmra.mxu2 %v5431_v61  ;;  %1712 = vmatmul.bf16.gmra.mxu3 %v4944_v30  ;;  %7524 = vst [vmem:[#allocation33_spill] sm:$0xff] %v5483_v54 }
 0x105   :  { %2016 = vmatpush.bf16.msra.mxu3 %v3940_v0  ;;  %v4384_v0 = vld [vmem:[%s7421_s0 + $0x118] sm:$0xf0]  ;;  %1838 = vmatpush.bf16.msra.mxu1 %v4160_v40 }
 0x107   :  { %v1584_v20 = vpop.f32.mrf.mxu2  ;;  %v1673_v21 = vpop.f32.mrf.mxu3 }
 0x108   :  { %v1585_v7 = vadd.f32 %v1584_v20, %v1496_v45  ;;  %v5453_v48 = vadd.f32 %v1762_v42, %v1673_v21  ;;  %v1497_v29 = vpop.f32.mrf.mxu1  ;;  %v1764_v30 = vpop.f32.mrf.mxu0  ;;  %v4163_v42 = vld [vmem:[%s7420_s1 + $0x3c0] sm:$0xf]  ;;  %v3627_v45 = vld [vmem:[%s7421_s0 + $0x110] sm:$0xf] }
 0x109   :  { %v4164_v15 = vor.u32 %v4520_v10, %v4163_v42  ;;  %v1498_v20 = vadd.f32 %v1497_v29, %v5276_v34 }
 0x10a   :  { %7523 = vst [vmem:[#allocation32_spill] sm:$0xff] %v5453_v48  ;;  %v5487_v48 = vor.u32 %v4384_v0, %v3627_v45  ;;  %v4385_v45 = vld [vmem:[%s7421_s0 + $0x124] sm:$0xf]  ;;  %v3633_v0 = vld [vmem:[%s7421_s0 + $0x12c] sm:$0xf0] }
 0x10b   :  { %3285 = vst [vmem:[%s7422_s2 + $0xe0] sm:$0xff] %v1585_v7  ;;  %2105 = vmatpush.bf16.msra.mxu0 %v4164_v15 }
 0x10f   :  { %v1586_v21 = vpop.f32.mrf.mxu2  ;;  %v1675_v7 = vpop.f32.mrf.mxu3 }
 0x110   :  { %v1587_v11 = vadd.f32 %v1586_v21, %v1498_v20  ;;  %v5485_v61 = vadd.f32 %v1764_v30, %v1675_v7  ;;  %v1500_v42 = vpop.f32.mrf.mxu1  ;;  %v1767_v10 = vpop.f32.mrf.mxu0  ;;  %v4387_v20 = vld [vmem:[%s7421_s0 + $0x130] sm:$0xf0] }
 0x111   :  { %v1501_v34 = vadd.f32 %v1500_v42, %v5310_v37  ;;  %v3639_v37 = vld [vmem:[%s7421_s0 + $0x128] sm:$0xf]  ;;  %v5515_v42 = vor.u32 %v4385_v45, %v3633_v0  ;;  %v4457_v0 = vld [vmem:[%s7420_s1 + $0x1e0] sm:$0xf0] }
 0x112   :  { %3292 = vst [vmem:[%s7422_s2 + $0x118] sm:$0xff] %v1587_v11 }
 0x113   :  { %1539 = vmatmul.bf16.gmra.mxu1 %v5483_v54  ;;  %1806 = vmatmul.bf16.gmra.mxu0 %v5483_v54  ;;  %7525 = vst [vmem:[#allocation34_spill] sm:$0xff] %v5515_v42 }
 0x114   :  { %1628 = vmatmul.bf16.gmra.mxu2 %v5487_v48  ;;  %1717 = vmatmul.bf16.gmra.mxu3 %v5004_v62 }
 0x117   :  { %v1589_v30 = vpop.f32.mrf.mxu2  ;;  %v1678_v29 = vpop.f32.mrf.mxu3 }
 0x118   :  { %v1590_v40 = vadd.f32 %v1589_v30, %v1501_v34  ;;  %v5497_v25 = vadd.f32 %v1767_v10, %v1678_v29  ;;  %v1502_v56 = vpop.f32.mrf.mxu1  ;;  %v1769_v15 = vpop.f32.mrf.mxu0 }
 0x119   :  { %v1503_v21 = vadd.f32 %v1502_v56, %v5324_v1  ;;  %v3687_v1 = vld [vmem:[%s7420_s1 + $0x8] sm:$0xf]  ;;  %v4401_v56 = vld [vmem:[%s7420_s1 + $0x20] sm:$0xf0] }
 0x11a   :  { %3299 = vst [vmem:[%s7422_s2 + $0x150] sm:$0xff] %v1590_v40  ;;  %v5519_v40 = vor.u32 %v4387_v20, %v3639_v37  ;;  %v3688_v45 = vor.u32 %v4401_v56, %v3687_v1  ;;  %v4509_v1 = vld [vmem:[%s7420_s1 + $0x384] sm:$0xf] }
 0x11b   :  { %v4513_v56 = vld [vmem:[%s7420_s1 + $0x3a0] sm:$0xf0] }
 0x11c   :  { %7526 = vst [vmem:[#allocation35_spill] sm:$0xff] %v5519_v40  ;;  %1928 = vmatpush.bf16.msra.mxu2 %v3688_v45  ;;  %v3645_v45 = vld [vmem:[%s7421_s0 + $0x144] sm:$0xf0] }
 0x11f   :  { %v1591_v7 = vpop.f32.mrf.mxu2  ;;  %v1680_v11 = vpop.f32.mrf.mxu3 }
 0x120   :  { %v1592_v10 = vadd.f32 %v1591_v7, %v1503_v21  ;;  %v5517_v34 = vadd.f32 %v1769_v15, %v1680_v11  ;;  %v1505_v30 = vpop.f32.mrf.mxu1  ;;  %v1772_v29 = vpop.f32.mrf.mxu0  ;;  %v3911_v15 = vld [vmem:[%s7420_s1 + $0x1c8] sm:$0xf] }
 0x121   :  { %v1506_v37 = vadd.f32 %v1505_v30, %v5156_v8  ;;  %v3912_v20 = vor.u32 %v4457_v0, %v3911_v15  ;;  %v4129_v8 = vld [vmem:[%s7420_s1 + $0x39c] sm:$0xf0]  ;;  %v4388_v15 = vld [vmem:[%s7421_s0 + $0x13c] sm:$0xf] }
 0x122   :  { %3306 = vst [vmem:[%s7422_s2 + $0x188] sm:$0xff] %v1592_v10  ;;  %v4132_v30 = vor.u32 %v4509_v1, %v4129_v8  ;;  %v5571_v1 = vor.u32 %v4388_v15, %v3645_v45 }
 0x123   :  { %1544 = vmatmul.bf16.gmra.mxu1 %v5515_v42  ;;  %1811 = vmatmul.bf16.gmra.mxu0 %v5515_v42 }
 0x124   :  { %1633 = vmatmul.bf16.gmra.mxu2 %v5519_v40  ;;  %1722 = vmatmul.bf16.gmra.mxu3 %v4718_v49  ;;  %7528 = vst [vmem:[#allocation37_spill] sm:$0xff] %v5571_v1 }
 0x125   :  { %2017 = vmatpush.bf16.msra.mxu3 %v3912_v20  ;;  %v4390_v20 = vld [vmem:[%s7421_s0 + $0x148] sm:$0xf0]  ;;  %1839 = vmatpush.bf16.msra.mxu1 %v4132_v30 }
 0x127   :  { %v1594_v21 = vpop.f32.mrf.mxu2  ;;  %v1683_v7 = vpop.f32.mrf.mxu3 }
 0x128   :  { %v1595_v11 = vadd.f32 %v1594_v21, %v1506_v37  ;;  %v5541_v10 = vadd.f32 %v1772_v29, %v1683_v7  ;;  %v1507_v42 = vpop.f32.mrf.mxu1  ;;  %v1774_v49 = vpop.f32.mrf.mxu0  ;;  %v4135_v29 = vld [vmem:[%s7420_s1 + $0x388] sm:$0xf]  ;;  %v3651_v37 = vld [vmem:[%s7421_s0 + $0x140] sm:$0xf] }
 0x129   :  { %v4136_v0 = vor.u32 %v4513_v56, %v4135_v29  ;;  %v1508_v21 = vadd.f32 %v1507_v42, %v5182_v19 }
 0x12a   :  { %7527 = vst [vmem:[#allocation36_spill] sm:$0xff] %v5541_v10  ;;  %v5575_v10 = vor.u32 %v4390_v20, %v3651_v37  ;;  %v4391_v37 = vld [vmem:[%s7421_s0 + $0x154] sm:$0xf]  ;;  %v3657_v20 = vld [vmem:[%s7421_s0 + $0x15c] sm:$0xf0] }
 0x12b   :  { %3313 = vst [vmem:[%s7422_s2 + $0x1c0] sm:$0xff] %v1595_v11  ;;  %2106 = vmatpush.bf16.msra.mxu0 %v4136_v0 }
 0x12f   :  { %v1596_v7 = vpop.f32.mrf.mxu2  ;;  %v1685_v11 = vpop.f32.mrf.mxu3 }
 0x130   :  { %v1597_v8 = vadd.f32 %v1596_v7, %v1508_v21  ;;  %v5573_v40 = vadd.f32 %v1774_v49, %v1685_v11  ;;  %v1510_v29 = vpop.f32.mrf.mxu1  ;;  %v1777_v56 = vpop.f32.mrf.mxu0  ;;  %v4393_v21 = vld [vmem:[%s7421_s0 + $0x160] sm:$0xf0] }
 0x131   :  { %v1511_v19 = vadd.f32 %v1510_v29, %v5216_v50  ;;  %v3663_v50 = vld [vmem:[%s7421_s0 + $0x158] sm:$0xf]  ;;  %v5603_v29 = vor.u32 %v4391_v37, %v3657_v20  ;;  %v4333_v20 = vld [vmem:[%s7420_s1 + $0x52c] sm:$0xf0] }
 0x132   :  { %3320 = vst [vmem:[%s7422_s2 + $0x1f8] sm:$0xff] %v1597_v8 }
 0x133   :  { %1549 = vmatmul.bf16.gmra.mxu1 %v5571_v1  ;;  %1816 = vmatmul.bf16.gmra.mxu0 %v5571_v1  ;;  %7529 = vst [vmem:[#allocation38_spill] sm:$0xff] %v5603_v29 }
 0x134   :  { %1638 = vmatmul.bf16.gmra.mxu2 %v5575_v10  ;;  %1727 = vmatmul.bf16.gmra.mxu3 %v4850_v47 }
 0x137   :  { %v1599_v49 = vpop.f32.mrf.mxu2  ;;  %v1688_v42 = vpop.f32.mrf.mxu3 }
 0x138   :  { %v1600_v30 = vadd.f32 %v1599_v49, %v1511_v19  ;;  %v5585_v15 = vadd.f32 %v1777_v56, %v1688_v42  ;;  %v1512_v45 = vpop.f32.mrf.mxu1  ;;  %v1779_v0 = vpop.f32.mrf.mxu0 }
 0x139   :  { %v1513_v7 = vadd.f32 %v1512_v45, %v5230_v55  ;;  %v4503_v55 = vld [vmem:[%s7420_s1 + $0x354] sm:$0xf]  ;;  %v4109_v45 = vld [vmem:[%s7420_s1 + $0x36c] sm:$0xf0] }
 0x13a   :  { %3327 = vst [vmem:[%s7422_s2 + $0x230] sm:$0xff] %v1600_v30  ;;  %v5607_v30 = vor.u32 %v4393_v21, %v3663_v50  ;;  %v4112_v37 = vor.u32 %v4503_v55, %v4109_v45  ;;  %v4447_v55 = vld [vmem:[%s7420_s1 + $0x194] sm:$0xf] }
 0x13b   :  { %v4451_v45 = vld [vmem:[%s7420_s1 + $0x1b0] sm:$0xf0] }
 0x13c   :  { %7530 = vst [vmem:[#allocation39_spill] sm:$0xff] %v5607_v30  ;;  %2277 = vmatpush.bf16.msrb.mxu2 %v4112_v37  ;;  %v3669_v37 = vld [vmem:[%s7421_s0 + $0x174] sm:$0xf0] }
 0x13f   :  { %v1601_v11 = vpop.f32.mrf.mxu2  ;;  %v1690_v8 = vpop.f32.mrf.mxu3 }
 0x140   :  { %v1602_v56 = vadd.f32 %v1601_v11, %v1513_v7  ;;  %v5605_v19 = vadd.f32 %v1779_v0, %v1690_v8  ;;  %v1515_v49 = vpop.f32.mrf.mxu1  ;;  %v1782_v42 = vpop.f32.mrf.mxu0  ;;  %v4559_v0 = vld [vmem:[%s7420_s1 + $0x514] sm:$0xf] }
 0x141   :  { %v1516_v50 = vadd.f32 %v1515_v49, %v5252_v12  ;;  %v4336_v21 = vor.u32 %v4559_v0, %v4333_v20  ;;  %v3885_v12 = vld [vmem:[%s7420_s1 + $0x1ac] sm:$0xf0]  ;;  %v4394_v0 = vld [vmem:[%s7421_s0 + $0x16c] sm:$0xf] }
 0x142   :  { %3334 = vst [vmem:[%s7422_s2 + $0x268] sm:$0xff] %v1602_v56  ;;  %v3888_v49 = vor.u32 %v4447_v55, %v3885_v12  ;;  %v5659_v55 = vor.u32 %v4394_v0, %v3669_v37 }
 0x143   :  { %1554 = vmatmul.bf16.gmra.mxu1 %v5603_v29  ;;  %1821 = vmatmul.bf16.gmra.mxu0 %v5603_v29 }
 0x144   :  { %1643 = vmatmul.bf16.gmra.mxu2 %v5607_v30  ;;  %1732 = vmatmul.bf16.gmra.mxu3 %v4946_v31  ;;  %7532 = vst [vmem:[#allocation41_spill] sm:$0xff] %v5659_v55 }
 0x145   :  { %2366 = vmatpush.bf16.msrb.mxu3 %v4336_v21  ;;  %v4396_v21 = vld [vmem:[%s7421_s0 + $0x178] sm:$0xf0]  ;;  %2188 = vmatpush.bf16.msrb.mxu1 %v3888_v49 }
 0x147   :  { %v1604_v7 = vpop.f32.mrf.mxu2  ;;  %v1693_v11 = vpop.f32.mrf.mxu3 }
 0x148   :  { %v1605_v8 = vadd.f32 %v1604_v7, %v1516_v50  ;;  %v5629_v56 = vadd.f32 %v1782_v42, %v1693_v11  ;;  %v1517_v29 = vpop.f32.mrf.mxu1  ;;  %v1784_v31 = vpop.f32.mrf.mxu0  ;;  %v3891_v42 = vld [vmem:[%s7420_s1 + $0x198] sm:$0xf]  ;;  %v3675_v50 = vld [vmem:[%s7421_s0 + $0x170] sm:$0xf] }
 0x149   :  { %v3892_v20 = vor.u32 %v4451_v45, %v3891_v42  ;;  %v1518_v7 = vadd.f32 %v1517_v29, %v5278_v35 }
 0x14a   :  { %7531 = vst [vmem:[#allocation40_spill] sm:$0xff] %v5629_v56  ;;  %v5663_v56 = vor.u32 %v4396_v21, %v3675_v50 }
 0x14b   :  { %3341 = vst [vmem:[%s7422_s2 + $0x2a0] sm:$0xff] %v1605_v8  ;;  %2455 = vmatpush.bf16.msrb.mxu0 %v3892_v20 }
 0x14f   :  { %v1606_v11 = vpop.f32.mrf.mxu2  ;;  %v1695_v8 = vpop.f32.mrf.mxu3 }
 0x150   :  { %v1607_v12 = vadd.f32 %v1606_v11, %v1518_v7  ;;  %v5661_v30 = vadd.f32 %v1784_v31, %v1695_v8  ;;  %v1520_v42 = vpop.f32.mrf.mxu1  ;;  %v1787_v45 = vpop.f32.mrf.mxu0 }
 0x151   :  { %v1521_v35 = vadd.f32 %v1520_v42, %v5312_v27  ;;  %v4081_v42 = vld [vmem:[%s7420_s1 + $0x334] sm:$0xf0] }
 0x152   :  { %3348 = vst [vmem:[%s7422_s2 + $0x2d8] sm:$0xff] %v1607_v12 }
 0x153   :  { %1559 = vmatmul.bf16.gmra.mxu1 %v5659_v55  ;;  %1826 = vmatmul.bf16.gmra.mxu0 %v5659_v55 }
 0x154   :  { %1648 = vmatmul.bf16.gmra.mxu2 %v5663_v56  ;;  %1737 = vmatmul.bf16.gmra.mxu3 %v5006_v63 }
 0x157   :  { %v1609_v31 = vpop.f32.mrf.mxu2  ;;  %v1698_v29 = vpop.f32.mrf.mxu3 }
 0x158   :  { %v1610_v49 = vadd.f32 %v1609_v31, %v1521_v35  ;;  %v5673_v0 = vadd.f32 %v1787_v45, %v1698_v29  ;;  %v1522_v37 = vpop.f32.mrf.mxu1  ;;  %v1789_v20 = vpop.f32.mrf.mxu0  ;;  %v4552_v45 = vld [vmem:[%s7420_s1 + $0x4dc] sm:$0xf]  ;;  %v4305_v31 = vld [vmem:[%s7420_s1 + $0x4f4] sm:$0xf0] }
 0x159   :  { %v1523_v50 = vadd.f32 %v1522_v37, %v5326_v14  ;;  %v4496_v14 = vld [vmem:[%s7420_s1 + $0x31c] sm:$0xf] }
 0x15a   :  { %3355 = vst [vmem:[%s7422_s2 + $0x310] sm:$0xff] %v1610_v49  ;;  %v4084_v35 = vor.u32 %v4496_v14, %v4081_v42  ;;  %v4308_v49 = vor.u32 %v4552_v45, %v4305_v31  ;;  %v4440_v14 = vld [vmem:[%s7420_s1 + $0x15c] sm:$0xf] }
 0x15b   :  { %v4444_v42 = vld [vmem:[%s7420_s1 + $0x178] sm:$0xf0] }
 0x15c   :  { %2278 = vmatpush.bf16.msrb.mxu2 %v4084_v35  ;;  %2367 = vmatpush.bf16.msrb.mxu3 %v4308_v49 }
 0x15f   :  { %v1611_v21 = vpop.f32.mrf.mxu2  ;;  %v1700_v7 = vpop.f32.mrf.mxu3 }
 0x160   :  { %v1612_v11 = vadd.f32 %v1611_v21, %v1523_v50  ;;  %v5679_v8 = vadd.f32 %v1789_v20, %v1700_v7  ;;  %v1525_v12 = vpop.f32.mrf.mxu1  ;;  %v1792_v27 = vpop.f32.mrf.mxu0 }
 0x161   :  { %v1526_v29 = vadd.f32 %v1525_v12, %v5176_v16  ;;  %v3857_v16 = vld [vmem:[%s7420_s1 + $0x174] sm:$0xf0] }
 0x162   :  { %3362 = vst [vmem:[%s7422_s2 + $0x348] sm:$0xff] %v1612_v11  ;;  %v3860_v12 = vor.u32 %v4440_v14, %v3857_v16 }
 0x163   :  { %1840 = vmatmul.bf16.vlgmr.msra.gmra.mxu1 %v5026_v5  ;;  %2107 = vmatmul.bf16.vlgmr.msra.gmra.mxu0 %v5026_v5 }
 0x164   :  { %1929 = vmatmul.bf16.vlgmr.msra.gmra.mxu2 %v4703_v43  ;;  %2018 = vmatmul.bf16.vlgmr.msra.gmra.mxu3 %v5024_v4 }
 0x165   :  { %2189 = vmatpush.bf16.msrb.mxu1 %v3860_v12 }
 0x167   :  { %v1614_v37 = vpop.f32.mrf.mxu2  ;;  %v1703_v20 = vpop.f32.mrf.mxu3 }
 0x168   :  { %v1615_v50 = vadd.f32 %v1614_v37, %v1526_v29  ;;  %v5701_v21 = vadd.f32 %v1792_v27, %v1703_v20  ;;  %v1527_v7 = vpop.f32.mrf.mxu1  ;;  %v1794_v11 = vpop.f32.mrf.mxu0  ;;  %v3863_v27 = vld [vmem:[%s7420_s1 + $0x160] sm:$0xf] }
 0x169   :  { %v3864_v45 = vor.u32 %v4444_v42, %v3863_v27  ;;  %v1528_v35 = vadd.f32 %v1527_v7, %v5208_v38 }
 0x16a   :  { %3369 = vst [vmem:[%s7422_s2 + $0x380] sm:$0xff] %v1615_v50 }
 0x16b   :  { %2456 = vmatpush.bf16.msrb.mxu0 %v3864_v45 }
 0x16f   :  { %v1616_v31 = vpop.f32.mrf.mxu2  ;;  %v1705_v29 = vpop.f32.mrf.mxu3 }
 0x170   :  { %v1617_v49 = vadd.f32 %v1616_v31, %v1528_v35  ;;  %v5719_v37 = vadd.f32 %v1794_v11, %v1705_v29  ;;  %v1530_v20 = vpop.f32.mrf.mxu1  ;;  %v1797_v50 = vpop.f32.mrf.mxu0 }
 0x171   :  { %v1531_v38 = vadd.f32 %v1530_v20, %v5224_v52  ;;  %v4053_v20 = vld [vmem:[%s7420_s1 + $0x2fc] sm:$0xf0] }
 0x172   :  { %3376 = vst [vmem:[%s7422_s2 + $0x3b8] sm:$0xff] %v1617_v49 }
 0x173   :  { %1845 = vmatmul.bf16.gmra.mxu1 %v5070_v23  ;;  %2112 = vmatmul.bf16.gmra.mxu0 %v5070_v23 }
 0x174   :  { %1934 = vmatmul.bf16.gmra.mxu2 %v4835_v39  ;;  %2023 = vmatmul.bf16.gmra.mxu3 %v5068_v22 }
 0x177   :  { %v1619_v7 = vpop.f32.mrf.mxu2  ;;  %v1708_v14 = vpop.f32.mrf.mxu3 }
 0x178   :  { %v1620_v11 = vadd.f32 %v1619_v7, %v1531_v38  ;;  %v5729_v16 = vadd.f32 %v1797_v50, %v1708_v14  ;;  %v1532_v12 = vpop.f32.mrf.mxu1  ;;  %v1799_v27 = vpop.f32.mrf.mxu0  ;;  %v4545_v50 = vld [vmem:[%s7420_s1 + $0x4a4] sm:$0xf]  ;;  %v4277_v7 = vld [vmem:[%s7420_s1 + $0x4bc] sm:$0xf0] }
 0x179   :  { %v1533_v42 = vadd.f32 %v1532_v12, %v5244_v2  ;;  %v4489_v2 = vld [vmem:[%s7420_s1 + $0x2e4] sm:$0xf] }
 0x17a   :  { %3383 = vst [vmem:[%s7422_s2 + $0x3f0] sm:$0xff] %v1620_v11  ;;  %v4056_v38 = vor.u32 %v4489_v2, %v4053_v20  ;;  %v4280_v11 = vor.u32 %v4545_v50, %v4277_v7  ;;  %v4433_v2 = vld [vmem:[%s7420_s1 + $0x124] sm:$0xf] }
 0x17b   :  { %v4437_v20 = vld [vmem:[%s7420_s1 + $0x140] sm:$0xf0] }
 0x17c   :  { %2279 = vmatpush.bf16.msrb.mxu2 %v4056_v38  ;;  %2368 = vmatpush.bf16.msrb.mxu3 %v4280_v11 }
 0x17f   :  { %v1621_v45 = vpop.f32.mrf.mxu2  ;;  %v1710_v35 = vpop.f32.mrf.mxu3 }
 0x180   :  { %v1622_v31 = vadd.f32 %v1621_v45, %v1533_v42  ;;  %v5735_v29 = vadd.f32 %v1799_v27, %v1710_v35  ;;  %v1535_v49 = vpop.f32.mrf.mxu1  ;;  %v1802_v52 = vpop.f32.mrf.mxu0 }
 0x181   :  { %v1536_v14 = vadd.f32 %v1535_v49, %v5272_v26  ;;  %v3829_v26 = vld [vmem:[%s7420_s1 + $0x13c] sm:$0xf0] }
 0x182   :  { %3390 = vst [vmem:[%s7422_s2 + $0x428] sm:$0xff] %v1622_v31  ;;  %v3832_v49 = vor.u32 %v4433_v2, %v3829_v26 }
 0x183   :  { %1850 = vmatmul.bf16.gmra.mxu1 %v5090_v33  ;;  %2117 = vmatmul.bf16.gmra.mxu0 %v5090_v33 }
 0x184   :  { %1939 = vmatmul.bf16.gmra.mxu2 %v4940_v28  ;;  %2028 = vmatmul.bf16.gmra.mxu3 %v5088_v32 }
 0x185   :  { %2190 = vmatpush.bf16.msrb.mxu1 %v3832_v49 }
 0x187   :  { %v1624_v12 = vpop.f32.mrf.mxu2  ;;  %v1713_v27 = vpop.f32.mrf.mxu3 }
 0x188   :  { %v1625_v42 = vadd.f32 %v1624_v12, %v1536_v14  ;;  %v5757_v45 = vadd.f32 %v1802_v52, %v1713_v27  ;;  %v1537_v35 = vpop.f32.mrf.mxu1  ;;  %v1804_v31 = vpop.f32.mrf.mxu0  ;;  %v3835_v52 = vld [vmem:[%s7420_s1 + $0x128] sm:$0xf] }
 0x189   :  { %v3836_v50 = vor.u32 %v4437_v20, %v3835_v52  ;;  %v1538_v38 = vadd.f32 %v1537_v35, %v5304_v24 }
 0x18a   :  { %3397 = vst [vmem:[%s7422_s2 + $0x460] sm:$0xff] %v1625_v42 }
 0x18b   :  { %2457 = vmatpush.bf16.msrb.mxu0 %v3836_v50 }
 0x18f   :  { %v1626_v7 = vpop.f32.mrf.mxu2  ;;  %v1715_v14 = vpop.f32.mrf.mxu3 }
 0x190   :  { %v1627_v11 = vadd.f32 %v1626_v7, %v1538_v38  ;;  %v5775_v12 = vadd.f32 %v1804_v31, %v1715_v14  ;;  %v1540_v27 = vpop.f32.mrf.mxu1  ;;  %v1807_v42 = vpop.f32.mrf.mxu0 }
 0x191   :  { %v1541_v24 = vadd.f32 %v1540_v27, %v5320_v57  ;;  %v4025_v27 = vld [vmem:[%s7420_s1 + $0x2c4] sm:$0xf0] }
 0x192   :  { %3404 = vst [vmem:[%s7422_s2 + $0x498] sm:$0xff] %v1627_v11 }
 0x193   :  { %1855 = vmatmul.bf16.gmra.mxu1 %v5134_v59  ;;  %2122 = vmatmul.bf16.gmra.mxu0 %v5134_v59 }
 0x194   :  { %1944 = vmatmul.bf16.gmra.mxu2 %v5000_v60  ;;  %2033 = vmatmul.bf16.gmra.mxu3 %v5132_v58 }
 0x197   :  { %v1629_v35 = vpop.f32.mrf.mxu2  ;;  %v1718_v2 = vpop.f32.mrf.mxu3 }
 0x198   :  { %v1630_v31 = vadd.f32 %v1629_v35, %v1541_v24  ;;  %v5785_v26 = vadd.f32 %v1807_v42, %v1718_v2  ;;  %v1542_v49 = vpop.f32.mrf.mxu1  ;;  %v1809_v52 = vpop.f32.mrf.mxu0  ;;  %v4538_v42 = vld [vmem:[%s7420_s1 + $0x46c] sm:$0xf]  ;;  %v4249_v35 = vld [vmem:[%s7420_s1 + $0x484] sm:$0xf0] }
 0x199   :  { %v1543_v20 = vadd.f32 %v1542_v49, %v5340_v36  ;;  %v4482_v36 = vld [vmem:[%s7420_s1 + $0x2ac] sm:$0xf] }
 0x19a   :  { %3411 = vst [vmem:[%s7422_s2 + $0x4d0] sm:$0xff] %v1630_v31  ;;  %v4028_v24 = vor.u32 %v4482_v36, %v4025_v27  ;;  %v4252_v31 = vor.u32 %v4538_v42, %v4249_v35  ;;  %v4426_v36 = vld [vmem:[%s7420_s1 + $0xec] sm:$0xf] }
 0x19b   :  { %v4430_v27 = vld [vmem:[%s7420_s1 + $0x108] sm:$0xf0] }
 0x19c   :  { %2280 = vmatpush.bf16.msrb.mxu2 %v4028_v24  ;;  %2369 = vmatpush.bf16.msrb.mxu3 %v4252_v31 }
 0x19f   :  { %v1631_v50 = vpop.f32.mrf.mxu2  ;;  %v1720_v38 = vpop.f32.mrf.mxu3 }
 0x1a0   :  { %v1632_v7 = vadd.f32 %v1631_v50, %v1543_v20  ;;  %v5791_v14 = vadd.f32 %v1809_v52, %v1720_v38  ;;  %v1545_v11 = vpop.f32.mrf.mxu1  ;;  %v1812_v57 = vpop.f32.mrf.mxu0 }
 0x1a1   :  { %v1546_v2 = vadd.f32 %v1545_v11, %v5178_v17  ;;  %v3801_v17 = vld [vmem:[%s7420_s1 + $0x104] sm:$0xf0] }
 0x1a2   :  { %3418 = vst [vmem:[%s7422_s2 + $0x508] sm:$0xff] %v1632_v7  ;;  %v3804_v11 = vor.u32 %v4426_v36, %v3801_v17  ;;  %v7534_v36 = vld [vmem:[#allocation16_spill] sm:$0xff] }
 0x1a3   :  { %1860 = vmatmul.bf16.gmra.mxu1 %v5158_v9  ;;  %2127 = vmatmul.bf16.gmra.mxu0 %v5158_v9  ;;  %v7535_v17 = vld [vmem:[#allocation4_spill] sm:$0xff] }
 0x1a4   :  { %1949 = vmatmul.bf16.gmra.mxu2 %v4705_v44  ;;  %2038 = vmatmul.bf16.gmra.mxu3 %v5152_v6 }
 0x1a5   :  { %2191 = vmatpush.bf16.msrb.mxu1 %v3804_v11  ;;  %v7536_v11 = vld [vmem:[#allocation15_spill] sm:$0xff] }
 0x1a7   :  { %v1634_v49 = vpop.f32.mrf.mxu2  ;;  %v1723_v52 = vpop.f32.mrf.mxu3 }
 0x1a8   :  { %v1635_v20 = vadd.f32 %v1634_v49, %v1546_v2  ;;  %v5813_v50 = vadd.f32 %v1812_v57, %v1723_v52  ;;  %v1547_v38 = vpop.f32.mrf.mxu1  ;;  %v1814_v7 = vpop.f32.mrf.mxu0  ;;  %v3807_v57 = vld [vmem:[%s7420_s1 + $0xf0] sm:$0xf] }
 0x1a9   :  { %v3808_v42 = vor.u32 %v4430_v27, %v3807_v57  ;;  %v1548_v24 = vadd.f32 %v1547_v38, %v5210_v41  ;;  %v7537_v41 = vld [vmem:[#allocation17_spill] sm:$0xff] }
 0x1aa   :  { %3425 = vst [vmem:[%s7422_s2 + $0x540] sm:$0xff] %v1635_v20 }
 0x1ab   :  { %2458 = vmatpush.bf16.msrb.mxu0 %v3808_v42 }
 0x1af   :  { %v1636_v35 = vpop.f32.mrf.mxu2  ;;  %v1725_v2 = vpop.f32.mrf.mxu3 }
 0x1b0   :  { %v1637_v31 = vadd.f32 %v1636_v35, %v1548_v24  ;;  %v5831_v49 = vadd.f32 %v1814_v7, %v1725_v2  ;;  %v1550_v52 = vpop.f32.mrf.mxu1  ;;  %v1817_v20 = vpop.f32.mrf.mxu0  ;;  %v7539_v2 = vld [vmem:[#allocation18_spill] sm:$0xff] }
 0x1b1   :  { %v1551_v38 = vadd.f32 %v1550_v52, %v7537_v41  ;;  %v7542_v41 = vld [vmem:[#allocation6_spill] sm:$0xff] }
 0x1b2   :  { %7533 = vst [vmem:[#allocation42_spill] sm:$0xff] %v5831_v49 }
 0x1b3   :  { %3432 = vst [vmem:[%s7422_s2 + $0x578] sm:$0xff] %v1637_v31  ;;  %1865 = vmatmul.bf16.gmra.mxu1 %v7534_v36  ;;  %2132 = vmatmul.bf16.gmra.mxu0 %v7534_v36 }
 0x1b4   :  { %1954 = vmatmul.bf16.gmra.mxu2 %v7535_v17  ;;  %2043 = vmatmul.bf16.gmra.mxu3 %v7536_v11 }
 0x1b7   :  { %v1639_v57 = vpop.f32.mrf.mxu2  ;;  %v1728_v27 = vpop.f32.mrf.mxu3 }
 0x1b8   :  { %v1640_v7 = vadd.f32 %v1639_v57, %v1551_v38  ;;  %v5841_v42 = vadd.f32 %v1817_v20, %v1728_v27  ;;  %v1552_v24 = vpop.f32.mrf.mxu1  ;;  %v1819_v35 = vpop.f32.mrf.mxu0  ;;  %v7541_v20 = vld [vmem:[#allocation20_spill] sm:$0xff]  ;;  %v7543_v38 = vld [vmem:[#allocation19_spill] sm:$0xff] }
 0x1b9   :  { %v1553_v31 = vadd.f32 %v1552_v24, %v7539_v2  ;;  %v4221_v27 = vld [vmem:[%s7420_s1 + $0x44c] sm:$0xf0] }
 0x1ba   :  { %7538 = vst [vmem:[#allocation17_spill] sm:$0xff] %v5841_v42 }
 0x1bb   :  { %3439 = vst [vmem:[%s7422_s2 + $0x5b0] sm:$0xff] %v1640_v7  ;;  %v7544_v7 = vld [vmem:[#allocation21_spill] sm:$0xff] }
 0x1bf   :  { %v1641_v36 = vpop.f32.mrf.mxu2  ;;  %v1730_v49 = vpop.f32.mrf.mxu3 }
 0x1c0   :  { %v1642_v17 = vadd.f32 %v1641_v36, %v1553_v31  ;;  %v5847_v9 = vadd.f32 %v1819_v35, %v1730_v49  ;;  %v1555_v11 = vpop.f32.mrf.mxu1  ;;  %v1822_v52 = vpop.f32.mrf.mxu0  ;;  %v4475_v36 = vld [vmem:[%s7420_s1 + $0x274] sm:$0xf]  ;;  %v3997_v49 = vld [vmem:[%s7420_s1 + $0x28c] sm:$0xf0] }
 0x1c1   :  { %v4000_v57 = vor.u32 %v4475_v36, %v3997_v49  ;;  %v1556_v24 = vadd.f32 %v1555_v11, %v7544_v7  ;;  %v4419_v36 = vld [vmem:[%s7420_s1 + $0xb4] sm:$0xf]  ;;  %v3773_v11 = vld [vmem:[%s7420_s1 + $0xcc] sm:$0xf0] }
 0x1c2   :  { %7540 = vst [vmem:[#allocation18_spill] sm:$0xff] %v5847_v9  ;;  %v3776_v49 = vor.u32 %v4419_v36, %v3773_v11  ;;  %v7548_v36 = vld [vmem:[#allocation24_spill] sm:$0xff]  ;;  %v7549_v11 = vld [vmem:[#allocation9_spill] sm:$0xff] }
 0x1c3   :  { %3446 = vst [vmem:[%s7422_s2 + $0x5e8] sm:$0xff] %v1642_v17  ;;  %1870 = vmatmul.bf16.gmra.mxu1 %v7541_v20  ;;  %2137 = vmatmul.bf16.gmra.mxu0 %v7541_v20  ;;  %v4531_v17 = vld [vmem:[%s7420_s1 + $0x434] sm:$0xf] }
 0x1c4   :  { %1959 = vmatmul.bf16.gmra.mxu2 %v7542_v41  ;;  %2048 = vmatmul.bf16.gmra.mxu3 %v7543_v38  ;;  %v4224_v35 = vor.u32 %v4531_v17, %v4221_v27  ;;  %v4423_v17 = vld [vmem:[%s7420_s1 + $0xd0] sm:$0xf0] }
 0x1c5   :  { %2281 = vmatpush.bf16.msrb.mxu2 %v4000_v57  ;;  %v7546_v57 = vld [vmem:[#allocation22_spill] sm:$0xff]  ;;  %2192 = vmatpush.bf16.msrb.mxu1 %v3776_v49 }
 0x1c6   :  { %2370 = vmatpush.bf16.msrb.mxu3 %v4224_v35 }
 0x1c7   :  { %v1644_v2 = vpop.f32.mrf.mxu2  ;;  %v1733_v31 = vpop.f32.mrf.mxu3 }
 0x1c8   :  { %v1645_v20 = vadd.f32 %v1644_v2, %v1556_v24  ;;  %v5869_v38 = vadd.f32 %v1822_v52, %v1733_v31  ;;  %v1557_v41 = vpop.f32.mrf.mxu1  ;;  %v1824_v9 = vpop.f32.mrf.mxu0  ;;  %v3779_v52 = vld [vmem:[%s7420_s1 + $0xb8] sm:$0xf] }
 0x1c9   :  { %v1558_v27 = vadd.f32 %v1557_v41, %v7546_v57  ;;  %v7550_v41 = vld [vmem:[#allocation23_spill] sm:$0xff] }
 0x1ca   :  { %7545 = vst [vmem:[#allocation21_spill] sm:$0xff] %v5869_v38 }
 0x1cb   :  { %3453 = vst [vmem:[%s7422_s2 + $0x620] sm:$0xff] %v1645_v20  ;;  %v3780_v20 = vor.u32 %v4423_v17, %v3779_v52  ;;  %v7551_v52 = vld [vmem:[#allocation25_spill] sm:$0xff] }
 0x1cd   :  { %2459 = vmatpush.bf16.msrb.mxu0 %v3780_v20 }
 0x1cf   :  { %v1646_v7 = vpop.f32.mrf.mxu2  ;;  %v1735_v24 = vpop.f32.mrf.mxu3 }
 0x1d0   :  { %v1647_v35 = vadd.f32 %v1646_v7, %v1558_v27  ;;  %v5887_v2 = vadd.f32 %v1824_v9, %v1735_v24  ;;  %v1560_v31 = vpop.f32.mrf.mxu1  ;;  %v1827_v38 = vpop.f32.mrf.mxu0  ;;  %v7552_v24 = vld [vmem:[#allocation26_spill] sm:$0xff] }
 0x1d1   :  { %v1561_v49 = vadd.f32 %v1560_v31, %v7551_v52  ;;  %v7553_v52 = vld [vmem:[#allocation29_spill] sm:$0xff] }
 0x1d2   :  { %7547 = vst [vmem:[#allocation22_spill] sm:$0xff] %v5887_v2 }
 0x1d3   :  { %3460 = vst [vmem:[%s7422_s2 + $0x658] sm:$0xff] %v1647_v35  ;;  %1875 = vmatmul.bf16.gmra.mxu1 %v7548_v36  ;;  %2142 = vmatmul.bf16.gmra.mxu0 %v7548_v36 }
 0x1d4   :  { %1964 = vmatmul.bf16.gmra.mxu2 %v7549_v11  ;;  %2053 = vmatmul.bf16.gmra.mxu3 %v7550_v41 }
 0x1d7   :  { %v1649_v17 = vpop.f32.mrf.mxu2  ;;  %v1738_v9 = vpop.f32.mrf.mxu3 }
 0x1d8   :  { %v1650_v57 = vadd.f32 %v1649_v17, %v1561_v49  ;;  %v5897_v27 = vadd.f32 %v1827_v38, %v1738_v9  ;;  %v1562_v20 = vpop.f32.mrf.mxu1  ;;  %v1829_v7 = vpop.f32.mrf.mxu0  ;;  %v7554_v38 = vld [vmem:[#allocation28_spill] sm:$0xff]  ;;  %v7555_v49 = vld [vmem:[#allocation2_spill] sm:$0xff]  ;;  %v4193_v17 = vld [vmem:[%s7420_s1 + $0x414] sm:$0xf0] }
 0x1d9   :  { %v1563_v35 = vadd.f32 %v1562_v20, %v7552_v24 }
 0x1da   :  { %3467 = vst [vmem:[%s7422_s2 + $0x690] sm:$0xff] %v1650_v57 }
 0x1df   :  { %v1651_v36 = vpop.f32.mrf.mxu2  ;;  %v1740_v2 = vpop.f32.mrf.mxu3 }
 0x1e0   :  { %v1652_v11 = vadd.f32 %v1651_v36, %v1563_v35  ;;  %v5903_v42 = vadd.f32 %v1829_v7, %v1740_v2  ;;  %v1841_v41 = vpop.f32.mrf.mxu1  ;;  %v2108_v31 = vpop.f32.mrf.mxu0  ;;  %v7556_v2 = vld [vmem:[#allocation27_spill] sm:$0xff]  ;;  %v4468_v36 = vld [vmem:[%s7420_s1 + $0x23c] sm:$0xf] }
 0x1e1   :  { %v1842_v6 = vadd.f32 %v1841_v41, %v7553_v52 }
 0x1e2   :  { %3474 = vst [vmem:[%s7422_s2 + $0x6c8] sm:$0xff] %v1652_v11  ;;  %v3969_v11 = vld [vmem:[%s7420_s1 + $0x254] sm:$0xf0] }
 0x1e3   :  { %3257 = vst [vmem:[%s7422_s2 + $0x8] sm:$0xff] %v1842_v6  ;;  %1880 = vmatmul.bf16.gmra.mxu1 %v7554_v38  ;;  %2147 = vmatmul.bf16.gmra.mxu0 %v7554_v38  ;;  %v4524_v6 = vld [vmem:[%s7420_s1 + $0x3fc] sm:$0xf]  ;;  %v3972_v41 = vor.u32 %v4468_v36, %v3969_v11  ;;  %v3745_v11 = vld [vmem:[%s7420_s1 + $0x94] sm:$0xf0] }
 0x1e4   :  { %1969 = vmatmul.bf16.gmra.mxu2 %v7555_v49  ;;  %2058 = vmatmul.bf16.gmra.mxu3 %v7556_v2  ;;  %v4196_v9 = vor.u32 %v4524_v6, %v4193_v17  ;;  %v4412_v36 = vld [vmem:[%s7420_s1 + $0x7c] sm:$0xf] }
 0x1e5   :  { %2282 = vmatpush.bf16.msrb.mxu2 %v3972_v41  ;;  %v3748_v6 = vor.u32 %v4412_v36, %v3745_v11 }
 0x1e6   :  { %2371 = vmatpush.bf16.msrb.mxu3 %v4196_v9 }
 0x1e7   :  { %v1930_v57 = vpop.f32.mrf.mxu2  ;;  %v2019_v20 = vpop.f32.mrf.mxu3  ;;  %2193 = vmatpush.bf16.msrb.mxu1 %v3748_v6 }
 0x1e8   :  { %v2020_v7 = vadd.f32 %v2019_v20, %v1930_v57  ;;  %v1843_v24 = vpop.f32.mrf.mxu1  ;;  %v2110_v35 = vpop.f32.mrf.mxu0 }
 0x1e9   :  { %v1844_v52 = vadd.f32 %v1843_v24, %v5397_v53  ;;  %v3751_v53 = vld [vmem:[%s7420_s1 + $0x80] sm:$0xf] }
 0x1ea   :  { %v2109_v38 = vadd.f32 %v2108_v31, %v2020_v7  ;;  %v4416_v31 = vld [vmem:[%s7420_s1 + $0x98] sm:$0xf0] }
 0x1eb   :  { %3265 = vst [vmem:[%s7422_s2 + $0x40] sm:$0xff] %v1844_v52  ;;  %v3752_v41 = vor.u32 %v4416_v31, %v3751_v53 }
 0x1ec   :  { %3258 = vst [vmem:[%s7422_s2 + $0x10] sm:$0xff] %v2109_v38 }
 0x1ed   :  { %2460 = vmatpush.bf16.msrb.mxu0 %v3752_v41 }
 0x1ef   :  { %v1932_v17 = vpop.f32.mrf.mxu2  ;;  %v2021_v38 = vpop.f32.mrf.mxu3 }
 0x1f0   :  { %v2022_v9 = vadd.f32 %v2021_v38, %v1932_v17  ;;  %v1846_v57 = vpop.f32.mrf.mxu1  ;;  %v2113_v20 = vpop.f32.mrf.mxu0 }
 0x1f1   :  { %v1847_v7 = vadd.f32 %v1846_v57, %v5409_v3  ;;  %v7557_v57 = vld [vmem:[#allocation32_spill] sm:$0xff] }
 0x1f2   :  { %v2111_v24 = vadd.f32 %v2110_v35, %v2022_v9 }
 0x1f3   :  { %3272 = vst [vmem:[%s7422_s2 + $0x78] sm:$0xff] %v1847_v7  ;;  %1885 = vmatmul.bf16.gmra.mxu1 %v5399_v51  ;;  %2152 = vmatmul.bf16.gmra.mxu0 %v5399_v51 }
 0x1f4   :  { %3266 = vst [vmem:[%s7422_s2 + $0x48] sm:$0xff] %v2111_v24  ;;  %1974 = vmatmul.bf16.gmra.mxu2 %v4848_v46  ;;  %2063 = vmatmul.bf16.gmra.mxu3 %v5395_v13 }
 0x1f7   :  { %v1935_v52 = vpop.f32.mrf.mxu2  ;;  %v2024_v36 = vpop.f32.mrf.mxu3 }
 0x1f8   :  { %v2025_v3 = vadd.f32 %v2024_v36, %v1935_v52  ;;  %v1848_v35 = vpop.f32.mrf.mxu1  ;;  %v2115_v11 = vpop.f32.mrf.mxu0  ;;  %v7560_v52 = vld [vmem:[#allocation30_spill] sm:$0xff] }
 0x1f9   :  { %v1849_v6 = vadd.f32 %v1848_v35, %v5429_v18  ;;  %v7558_v18 = vld [vmem:[#allocation31_spill] sm:$0xff]  ;;  %v4461_v36 = vld [vmem:[%s7420_s1 + $0x204] sm:$0xf] }
 0x1fa   :  { %v2114_v53 = vadd.f32 %v2113_v20, %v2025_v3  ;;  %v7559_v20 = vld [vmem:[#allocation7_spill] sm:$0xff]  ;;  %v3941_v3 = vld [vmem:[%s7420_s1 + $0x21c] sm:$0xf0] }
 0x1fb   :  { %3279 = vst [vmem:[%s7422_s2 + $0xb0] sm:$0xff] %v1849_v6  ;;  %v3944_v35 = vor.u32 %v4461_v36, %v3941_v3  ;;  %v4165_v6 = vld [vmem:[%s7420_s1 + $0x3dc] sm:$0xf0]  ;;  %v4405_v36 = vld [vmem:[%s7420_s1 + $0x44] sm:$0xf] }
 0x1fc   :  { %3273 = vst [vmem:[%s7422_s2 + $0x80] sm:$0xff] %v2114_v53  ;;  %v3717_v3 = vld [vmem:[%s7420_s1 + $0x5c] sm:$0xf0] }
 0x1fd   :  { %2283 = vmatpush.bf16.msrb.mxu2 %v3944_v35  ;;  %v3720_v35 = vor.u32 %v4405_v36, %v3717_v3 }
 0x1ff   :  { %v1937_v31 = vpop.f32.mrf.mxu2  ;;  %v2026_v41 = vpop.f32.mrf.mxu3  ;;  %2194 = vmatpush.bf16.msrb.mxu1 %v3720_v35 }
 0x200   :  { %v2027_v17 = vadd.f32 %v2026_v41, %v1937_v31  ;;  %v1851_v38 = vpop.f32.mrf.mxu1  ;;  %v2118_v9 = vpop.f32.mrf.mxu0 }
 0x201   :  { %v1852_v7 = vadd.f32 %v1851_v38, %v7557_v57 }
 0x202   :  { %v2116_v24 = vadd.f32 %v2115_v11, %v2027_v17  ;;  %v4517_v11 = vld [vmem:[%s7420_s1 + $0x3c4] sm:$0xf] }
 0x203   :  { %3286 = vst [vmem:[%s7422_s2 + $0xe8] sm:$0xff] %v1852_v7  ;;  %1890 = vmatmul.bf16.gmra.mxu1 %v7558_v18  ;;  %2157 = vmatmul.bf16.gmra.mxu0 %v7558_v18  ;;  %v4168_v53 = vor.u32 %v4517_v11, %v4165_v6 }
 0x204   :  { %3280 = vst [vmem:[%s7422_s2 + $0xb8] sm:$0xff] %v2116_v24  ;;  %1979 = vmatmul.bf16.gmra.mxu2 %v7559_v20  ;;  %2068 = vmatmul.bf16.gmra.mxu3 %v7560_v52 }
 0x205   :  { %2372 = vmatpush.bf16.msrb.mxu3 %v4168_v53 }
 0x207   :  { %v1940_v31 = vpop.f32.mrf.mxu2  ;;  %v2029_v41 = vpop.f32.mrf.mxu3 }
 0x208   :  { %v2030_v17 = vadd.f32 %v2029_v41, %v1940_v31  ;;  %v1853_v38 = vpop.f32.mrf.mxu1  ;;  %v2120_v57 = vpop.f32.mrf.mxu0 }
 0x209   :  { %v1854_v7 = vadd.f32 %v1853_v38, %v5485_v61  ;;  %v3723_v61 = vld [vmem:[%s7420_s1 + $0x48] sm:$0xf] }
 0x20a   :  { %v2119_v24 = vadd.f32 %v2118_v9, %v2030_v17  ;;  %v4409_v9 = vld [vmem:[%s7420_s1 + $0x60] sm:$0xf0] }
 0x20b   :  { %3293 = vst [vmem:[%s7422_s2 + $0x120] sm:$0xff] %v1854_v7  ;;  %v3724_v11 = vor.u32 %v4409_v9, %v3723_v61 }
 0x20c   :  { %3287 = vst [vmem:[%s7422_s2 + $0xf0] sm:$0xff] %v2119_v24 }
 0x20d   :  { %2461 = vmatpush.bf16.msrb.mxu0 %v3724_v11 }
 0x20f   :  { %v1942_v6 = vpop.f32.mrf.mxu2  ;;  %v2031_v53 = vpop.f32.mrf.mxu3 }
 0x210   :  { %v2032_v31 = vadd.f32 %v2031_v53, %v1942_v6  ;;  %v1856_v41 = vpop.f32.mrf.mxu1  ;;  %v2123_v17 = vpop.f32.mrf.mxu0 }
 0x211   :  { %v1857_v38 = vadd.f32 %v1856_v41, %v5497_v25  ;;  %v7561_v41 = vld [vmem:[#allocation36_spill] sm:$0xff] }
 0x212   :  { %v2121_v7 = vadd.f32 %v2120_v57, %v2032_v31 }
 0x213   :  { %3300 = vst [vmem:[%s7422_s2 + $0x158] sm:$0xff] %v1857_v38  ;;  %1895 = vmatmul.bf16.gmra.mxu1 %v5487_v48  ;;  %2162 = vmatmul.bf16.gmra.mxu0 %v5487_v48 }
 0x214   :  { %3294 = vst [vmem:[%s7422_s2 + $0x128] sm:$0xff] %v2121_v7  ;;  %1984 = vmatmul.bf16.gmra.mxu2 %v5004_v62  ;;  %2073 = vmatmul.bf16.gmra.mxu3 %v5483_v54 }
 0x217   :  { %v1945_v24 = vpop.f32.mrf.mxu2  ;;  %v2034_v36 = vpop.f32.mrf.mxu3 }
 0x218   :  { %v2035_v25 = vadd.f32 %v2034_v36, %v1945_v24  ;;  %v1858_v57 = vpop.f32.mrf.mxu1  ;;  %v2125_v3 = vpop.f32.mrf.mxu0  ;;  %v7564_v24 = vld [vmem:[#allocation34_spill] sm:$0xff]  ;;  %v4454_v36 = vld [vmem:[%s7420_s1 + $0x1cc] sm:$0xf] }
 0x219   :  { %v1859_v35 = vadd.f32 %v1858_v57, %v5517_v34  ;;  %v7562_v34 = vld [vmem:[#allocation35_spill] sm:$0xff] }
 0x21a   :  { %v2124_v61 = vadd.f32 %v2123_v17, %v2035_v25  ;;  %v7563_v17 = vld [vmem:[#allocation3_spill] sm:$0xff] }
 0x21b   :  { %3307 = vst [vmem:[%s7422_s2 + $0x190] sm:$0xff] %v1859_v35  ;;  %v3913_v25 = vld [vmem:[%s7420_s1 + $0x1e4] sm:$0xf0] }
 0x21c   :  { %3301 = vst [vmem:[%s7422_s2 + $0x160] sm:$0xff] %v2124_v61  ;;  %v3916_v57 = vor.u32 %v4454_v36, %v3913_v25  ;;  %v4137_v35 = vld [vmem:[%s7420_s1 + $0x3a4] sm:$0xf0]  ;;  %v4398_v36 = vld [vmem:[%s7420_s1 + $0xc] sm:$0xf] }
 0x21d   :  { %v3689_v25 = vld [vmem:[%s7420_s1 + $0x24] sm:$0xf0] }
 0x21e   :  { %2284 = vmatpush.bf16.msrb.mxu2 %v3916_v57  ;;  %v3692_v57 = vor.u32 %v4398_v36, %v3689_v25 }
 0x21f   :  { %v1947_v9 = vpop.f32.mrf.mxu2  ;;  %v2036_v11 = vpop.f32.mrf.mxu3 }
 0x220   :  { %v2037_v6 = vadd.f32 %v2036_v11, %v1947_v9  ;;  %v1861_v53 = vpop.f32.mrf.mxu1  ;;  %v2128_v31 = vpop.f32.mrf.mxu0  ;;  %2195 = vmatpush.bf16.msrb.mxu1 %v3692_v57 }
 0x221   :  { %v1862_v38 = vadd.f32 %v1861_v53, %v7561_v41 }
 0x222   :  { %v2126_v7 = vadd.f32 %v2125_v3, %v2037_v6  ;;  %v4510_v3 = vld [vmem:[%s7420_s1 + $0x38c] sm:$0xf] }
 0x223   :  { %3314 = vst [vmem:[%s7422_s2 + $0x1c8] sm:$0xff] %v1862_v38  ;;  %1900 = vmatmul.bf16.gmra.mxu1 %v7562_v34  ;;  %2167 = vmatmul.bf16.gmra.mxu0 %v7562_v34  ;;  %v4140_v61 = vor.u32 %v4510_v3, %v4137_v35 }
 0x224   :  { %3308 = vst [vmem:[%s7422_s2 + $0x198] sm:$0xff] %v2126_v7  ;;  %1989 = vmatmul.bf16.gmra.mxu2 %v7563_v17  ;;  %2078 = vmatmul.bf16.gmra.mxu3 %v7564_v24 }
 0x225   :  { %2373 = vmatpush.bf16.msrb.mxu3 %v4140_v61 }
 0x227   :  { %v1950_v9 = vpop.f32.mrf.mxu2  ;;  %v2039_v11 = vpop.f32.mrf.mxu3 }
 0x228   :  { %v2040_v6 = vadd.f32 %v2039_v11, %v1950_v9  ;;  %v1863_v53 = vpop.f32.mrf.mxu1  ;;  %v2130_v41 = vpop.f32.mrf.mxu0 }
 0x229   :  { %v1864_v38 = vadd.f32 %v1863_v53, %v5573_v40  ;;  %v3695_v40 = vld [vmem:[%s7420_s1 + $0x10] sm:$0xf] }
 0x22a   :  { %v2129_v7 = vadd.f32 %v2128_v31, %v2040_v6  ;;  %v4402_v31 = vld [vmem:[%s7420_s1 + $0x28] sm:$0xf0] }
 0x22b   :  { %3321 = vst [vmem:[%s7422_s2 + $0x200] sm:$0xff] %v1864_v38  ;;  %v3696_v3 = vor.u32 %v4402_v31, %v3695_v40 }
 0x22c   :  { %3315 = vst [vmem:[%s7422_s2 + $0x1d0] sm:$0xff] %v2129_v7 }
 0x22d   :  { %2462 = vmatpush.bf16.msrb.mxu0 %v3696_v3 }
 0x22f   :  { %v1952_v35 = vpop.f32.mrf.mxu2  ;;  %v2041_v61 = vpop.f32.mrf.mxu3 }
 0x230   :  { %v2042_v9 = vadd.f32 %v2041_v61, %v1952_v35  ;;  %v1866_v11 = vpop.f32.mrf.mxu1  ;;  %v2133_v6 = vpop.f32.mrf.mxu0 }
 0x231   :  { %v1867_v53 = vadd.f32 %v1866_v11, %v5585_v15  ;;  %v7565_v11 = vld [vmem:[#allocation40_spill] sm:$0xff] }
 0x232   :  { %v2131_v38 = vadd.f32 %v2130_v41, %v2042_v9 }
 0x233   :  { %3328 = vst [vmem:[%s7422_s2 + $0x238] sm:$0xff] %v1867_v53  ;;  %1905 = vmatmul.bf16.gmra.mxu1 %v5575_v10  ;;  %2172 = vmatmul.bf16.gmra.mxu0 %v5575_v10 }
 0x234   :  { %3322 = vst [vmem:[%s7422_s2 + $0x208] sm:$0xff] %v2131_v38  ;;  %1994 = vmatmul.bf16.gmra.mxu2 %v4850_v47  ;;  %2083 = vmatmul.bf16.gmra.mxu3 %v5571_v1 }
 0x237   :  { %v1955_v7 = vpop.f32.mrf.mxu2  ;;  %v2044_v36 = vpop.f32.mrf.mxu3 }
 0x238   :  { %v2045_v15 = vadd.f32 %v2044_v36, %v1955_v7  ;;  %v1868_v41 = vpop.f32.mrf.mxu1  ;;  %v2135_v25 = vpop.f32.mrf.mxu0  ;;  %v7568_v7 = vld [vmem:[#allocation38_spill] sm:$0xff]  ;;  %v4339_v36 = vld [vmem:[%s7420_s1 + $0x518] sm:$0xf] }
 0x239   :  { %v1869_v57 = vadd.f32 %v1868_v41, %v5605_v19  ;;  %v7566_v19 = vld [vmem:[#allocation39_spill] sm:$0xff] }
 0x23a   :  { %v2134_v40 = vadd.f32 %v2133_v6, %v2045_v15  ;;  %v7567_v6 = vld [vmem:[#allocation8_spill] sm:$0xff] }
 0x23b   :  { %3335 = vst [vmem:[%s7422_s2 + $0x270] sm:$0xff] %v1869_v57  ;;  %v4563_v15 = vld [vmem:[%s7420_s1 + $0x530] sm:$0xf0]  ;;  %v3893_v57 = vld [vmem:[%s7420_s1 + $0x1b4] sm:$0xf0] }
 0x23c   :  { %3329 = vst [vmem:[%s7422_s2 + $0x240] sm:$0xff] %v2134_v40  ;;  %v4340_v41 = vor.u32 %v4563_v15, %v4339_v36  ;;  %v4115_v36 = vld [vmem:[%s7420_s1 + $0x358] sm:$0xf]  ;;  %v4507_v15 = vld [vmem:[%s7420_s1 + $0x370] sm:$0xf0] }
 0x23e   :  { %2633 = vmatpush.bf16.msra.mxu2 %v4340_v41  ;;  %v4116_v41 = vor.u32 %v4507_v15, %v4115_v36 }
 0x23f   :  { %v1957_v31 = vpop.f32.mrf.mxu2  ;;  %v2046_v3 = vpop.f32.mrf.mxu3 }
 0x240   :  { %v2047_v35 = vadd.f32 %v2046_v3, %v1957_v31  ;;  %v1871_v61 = vpop.f32.mrf.mxu1  ;;  %v2138_v9 = vpop.f32.mrf.mxu0  ;;  %2544 = vmatpush.bf16.msra.mxu1 %v4116_v41 }
 0x241   :  { %v1872_v53 = vadd.f32 %v1871_v61, %v7565_v11 }
 0x242   :  { %v2136_v38 = vadd.f32 %v2135_v25, %v2047_v35  ;;  %v4448_v25 = vld [vmem:[%s7420_s1 + $0x19c] sm:$0xf] }
 0x243   :  { %3342 = vst [vmem:[%s7422_s2 + $0x2a8] sm:$0xff] %v1872_v53  ;;  %1910 = vmatmul.bf16.gmra.mxu1 %v7566_v19  ;;  %2177 = vmatmul.bf16.gmra.mxu0 %v7566_v19  ;;  %v3896_v40 = vor.u32 %v4448_v25, %v3893_v57 }
 0x244   :  { %3336 = vst [vmem:[%s7422_s2 + $0x278] sm:$0xff] %v2136_v38  ;;  %1999 = vmatmul.bf16.gmra.mxu2 %v7567_v6  ;;  %2088 = vmatmul.bf16.gmra.mxu3 %v7568_v7 }
 0x245   :  { %2722 = vmatpush.bf16.msra.mxu3 %v3896_v40 }
 0x247   :  { %v1960_v31 = vpop.f32.mrf.mxu2  ;;  %v2049_v3 = vpop.f32.mrf.mxu3 }
 0x248   :  { %v2050_v35 = vadd.f32 %v2049_v3, %v1960_v31  ;;  %v1873_v61 = vpop.f32.mrf.mxu1  ;;  %v2140_v11 = vpop.f32.mrf.mxu0 }
 0x249   :  { %v1874_v53 = vadd.f32 %v1873_v61, %v5661_v30  ;;  %v4504_v30 = vld [vmem:[%s7420_s1 + $0x35c] sm:$0xf] }
 0x24a   :  { %v2139_v38 = vadd.f32 %v2138_v9, %v2050_v35  ;;  %v4117_v9 = vld [vmem:[%s7420_s1 + $0x374] sm:$0xf0] }
 0x24b   :  { %3349 = vst [vmem:[%s7422_s2 + $0x2e0] sm:$0xff] %v1874_v53  ;;  %v4120_v25 = vor.u32 %v4504_v30, %v4117_v9 }
 0x24c   :  { %3343 = vst [vmem:[%s7422_s2 + $0x2b0] sm:$0xff] %v2139_v38 }
 0x24d   :  { %2811 = vmatpush.bf16.msra.mxu0 %v4120_v25 }
 0x24f   :  { %v1962_v57 = vpop.f32.mrf.mxu2  ;;  %v2051_v40 = vpop.f32.mrf.mxu3 }
 0x250   :  { %v2052_v31 = vadd.f32 %v2051_v40, %v1962_v57  ;;  %v1876_v3 = vpop.f32.mrf.mxu1  ;;  %v2143_v35 = vpop.f32.mrf.mxu0 }
 0x251   :  { %v1877_v61 = vadd.f32 %v1876_v3, %v5673_v0 }
 0x252   :  { %v2141_v53 = vadd.f32 %v2140_v11, %v2052_v31 }
 0x253   :  { %3356 = vst [vmem:[%s7422_s2 + $0x318] sm:$0xff] %v1877_v61  ;;  %1915 = vmatmul.bf16.gmra.mxu1 %v5663_v56  ;;  %2182 = vmatmul.bf16.gmra.mxu0 %v5663_v56 }
 0x254   :  { %3350 = vst [vmem:[%s7422_s2 + $0x2e8] sm:$0xff] %v2141_v53  ;;  %2004 = vmatmul.bf16.gmra.mxu2 %v5006_v63  ;;  %2093 = vmatmul.bf16.gmra.mxu3 %v5659_v55  ;;  %v4441_v53 = vld [vmem:[%s7420_s1 + $0x164] sm:$0xf] }
 0x257   :  { %v1965_v38 = vpop.f32.mrf.mxu2  ;;  %v2054_v36 = vpop.f32.mrf.mxu3 }
 0x258   :  { %v2055_v0 = vadd.f32 %v2054_v36, %v1965_v38  ;;  %v1878_v11 = vpop.f32.mrf.mxu1  ;;  %v2145_v15 = vpop.f32.mrf.mxu0  ;;  %v3865_v38 = vld [vmem:[%s7420_s1 + $0x17c] sm:$0xf0] }
 0x259   :  { %v1879_v41 = vadd.f32 %v1878_v11, %v5679_v8  ;;  %v4311_v8 = vld [vmem:[%s7420_s1 + $0x4e0] sm:$0xf]  ;;  %v3868_v36 = vor.u32 %v4441_v53, %v3865_v38 }
 0x25a   :  { %v2144_v30 = vadd.f32 %v2143_v35, %v2055_v0 }
 0x25b   :  { %3363 = vst [vmem:[%s7422_s2 + $0x350] sm:$0xff] %v1879_v41  ;;  %2723 = vmatpush.bf16.msra.mxu3 %v3868_v36 }
 0x25c   :  { %3357 = vst [vmem:[%s7422_s2 + $0x320] sm:$0xff] %v2144_v30 }
 0x25f   :  { %v1967_v9 = vpop.f32.mrf.mxu2  ;;  %v2056_v25 = vpop.f32.mrf.mxu3 }
 0x260   :  { %v2057_v57 = vadd.f32 %v2056_v25, %v1967_v9  ;;  %v1881_v40 = vpop.f32.mrf.mxu1  ;;  %v2148_v31 = vpop.f32.mrf.mxu0 }
 0x261   :  { %v1882_v3 = vadd.f32 %v1881_v40, %v5701_v21  ;;  %v4556_v21 = vld [vmem:[%s7420_s1 + $0x4f8] sm:$0xf0] }
 0x262   :  { %v2146_v61 = vadd.f32 %v2145_v15, %v2057_v57  ;;  %v4312_v35 = vor.u32 %v4556_v21, %v4311_v8  ;;  %v4087_v57 = vld [vmem:[%s7420_s1 + $0x320] sm:$0xf]  ;;  %v4500_v40 = vld [vmem:[%s7420_s1 + $0x338] sm:$0xf0] }
 0x263   :  { %3370 = vst [vmem:[%s7422_s2 + $0x388] sm:$0xff] %v1882_v3  ;;  %2196 = vmatmul.bf16.vlgmr.msrb.gmra.mxu1 %v4703_v43  ;;  %2463 = vmatmul.bf16.vlgmr.msrb.gmra.mxu0 %v4703_v43  ;;  %v4088_v3 = vor.u32 %v4500_v40, %v4087_v57 }
 0x264   :  { %3364 = vst [vmem:[%s7422_s2 + $0x358] sm:$0xff] %v2146_v61  ;;  %2285 = vmatmul.bf16.vlgmr.msrb.gmra.mxu2 %v5024_v4  ;;  %2374 = vmatmul.bf16.vlgmr.msrb.gmra.mxu3 %v5026_v5 }
 0x265   :  { %2634 = vmatpush.bf16.msra.mxu2 %v4312_v35  ;;  %2545 = vmatpush.bf16.msra.mxu1 %v4088_v3 }
 0x267   :  { %v1970_v0 = vpop.f32.mrf.mxu2  ;;  %v2059_v11 = vpop.f32.mrf.mxu3 }
 0x268   :  { %v2060_v15 = vadd.f32 %v2059_v11, %v1970_v0  ;;  %v1883_v41 = vpop.f32.mrf.mxu1  ;;  %v2150_v30 = vpop.f32.mrf.mxu0 }
 0x269   :  { %v1884_v9 = vadd.f32 %v1883_v41, %v5719_v37  ;;  %v4497_v37 = vld [vmem:[%s7420_s1 + $0x324] sm:$0xf] }
 0x26a   :  { %v2149_v25 = vadd.f32 %v2148_v31, %v2060_v15  ;;  %v4089_v31 = vld [vmem:[%s7420_s1 + $0x33c] sm:$0xf0] }
 0x26b   :  { %3377 = vst [vmem:[%s7422_s2 + $0x3c0] sm:$0xff] %v1884_v9  ;;  %v4092_v61 = vor.u32 %v4497_v37, %v4089_v31 }
 0x26c   :  { %3371 = vst [vmem:[%s7422_s2 + $0x390] sm:$0xff] %v2149_v25 }
 0x26d   :  { %2812 = vmatpush.bf16.msra.mxu0 %v4092_v61 }
 0x26f   :  { %v1972_v8 = vpop.f32.mrf.mxu2  ;;  %v2061_v21 = vpop.f32.mrf.mxu3 }
 0x270   :  { %v2062_v35 = vadd.f32 %v2061_v21, %v1972_v8  ;;  %v1886_v53 = vpop.f32.mrf.mxu1  ;;  %v2153_v38 = vpop.f32.mrf.mxu0 }
 0x271   :  { %v1887_v36 = vadd.f32 %v1886_v53, %v5729_v16  ;;  %v3837_v53 = vld [vmem:[%s7420_s1 + $0x144] sm:$0xf0] }
 0x272   :  { %v2151_v0 = vadd.f32 %v2150_v30, %v2062_v35  ;;  %v4434_v35 = vld [vmem:[%s7420_s1 + $0x12c] sm:$0xf] }
 0x273   :  { %3384 = vst [vmem:[%s7422_s2 + $0x3f8] sm:$0xff] %v1887_v36  ;;  %2201 = vmatmul.bf16.gmra.mxu1 %v4835_v39  ;;  %2468 = vmatmul.bf16.gmra.mxu0 %v4835_v39 }
 0x274   :  { %3378 = vst [vmem:[%s7422_s2 + $0x3c8] sm:$0xff] %v2151_v0  ;;  %2290 = vmatmul.bf16.gmra.mxu2 %v5068_v22  ;;  %2379 = vmatmul.bf16.gmra.mxu3 %v5070_v23 }
 0x277   :  { %v1975_v11 = vpop.f32.mrf.mxu2  ;;  %v2064_v15 = vpop.f32.mrf.mxu3 }
 0x278   :  { %v2065_v16 = vadd.f32 %v2064_v15, %v1975_v11  ;;  %v1888_v41 = vpop.f32.mrf.mxu1  ;;  %v2155_v30 = vpop.f32.mrf.mxu0 }
 0x279   :  { %v1889_v9 = vadd.f32 %v1888_v41, %v5735_v29  ;;  %v4283_v29 = vld [vmem:[%s7420_s1 + $0x4a8] sm:$0xf] }
 0x27a   :  { %v2154_v25 = vadd.f32 %v2153_v38, %v2065_v16  ;;  %v3840_v38 = vor.u32 %v4434_v35, %v3837_v53 }
 0x27b   :  { %3391 = vst [vmem:[%s7422_s2 + $0x430] sm:$0xff] %v1889_v9  ;;  %v4059_v9 = vld [vmem:[%s7420_s1 + $0x2e8] sm:$0xf] }
 0x27c   :  { %3385 = vst [vmem:[%s7422_s2 + $0x400] sm:$0xff] %v2154_v25  ;;  %2724 = vmatpush.bf16.msra.mxu3 %v3840_v38  ;;  %v4493_v25 = vld [vmem:[%s7420_s1 + $0x300] sm:$0xf0] }
 0x27f   :  { %v1977_v57 = vpop.f32.mrf.mxu2  ;;  %v2066_v40 = vpop.f32.mrf.mxu3 }
 0x280   :  { %v2067_v3 = vadd.f32 %v2066_v40, %v1977_v57  ;;  %v1891_v37 = vpop.f32.mrf.mxu1  ;;  %v2158_v31 = vpop.f32.mrf.mxu0  ;;  %v4060_v57 = vor.u32 %v4493_v25, %v4059_v9  ;;  %v4061_v40 = vld [vmem:[%s7420_s1 + $0x304] sm:$0xf0] }
 0x281   :  { %v1892_v61 = vadd.f32 %v1891_v37, %v5757_v45  ;;  %v4549_v45 = vld [vmem:[%s7420_s1 + $0x4c0] sm:$0xf0] }
 0x282   :  { %v2156_v8 = vadd.f32 %v2155_v30, %v2067_v3  ;;  %v4284_v21 = vor.u32 %v4549_v45, %v4283_v29  ;;  %2546 = vmatpush.bf16.msra.mxu1 %v4060_v57 }
 0x283   :  { %3398 = vst [vmem:[%s7422_s2 + $0x468] sm:$0xff] %v1892_v61  ;;  %2206 = vmatmul.bf16.gmra.mxu1 %v4940_v28  ;;  %2473 = vmatmul.bf16.gmra.mxu0 %v4940_v28 }
 0x284   :  { %3392 = vst [vmem:[%s7422_s2 + $0x438] sm:$0xff] %v2156_v8  ;;  %2295 = vmatmul.bf16.gmra.mxu2 %v5088_v32  ;;  %2384 = vmatmul.bf16.gmra.mxu3 %v5090_v33 }
 0x285   :  { %2635 = vmatpush.bf16.msra.mxu2 %v4284_v21 }
 0x287   :  { %v1980_v36 = vpop.f32.mrf.mxu2  ;;  %v2069_v0 = vpop.f32.mrf.mxu3 }
 0x288   :  { %v2070_v11 = vadd.f32 %v2069_v0, %v1980_v36  ;;  %v1893_v15 = vpop.f32.mrf.mxu1  ;;  %v2160_v16 = vpop.f32.mrf.mxu0 }
 0x289   :  { %v1894_v41 = vadd.f32 %v1893_v15, %v5775_v12  ;;  %v4490_v12 = vld [vmem:[%s7420_s1 + $0x2ec] sm:$0xf] }
 0x28a   :  { %v2159_v30 = vadd.f32 %v2158_v31, %v2070_v11  ;;  %v4064_v3 = vor.u32 %v4490_v12, %v4061_v40  ;;  %v7570_v12 = vld [vmem:[#allocation14_spill] sm:$0xff]  ;;  %v4542_v40 = vld [vmem:[%s7420_s1 + $0x488] sm:$0xf0] }
 0x28b   :  { %3405 = vst [vmem:[%s7422_s2 + $0x4a0] sm:$0xff] %v1894_v41 }
 0x28c   :  { %3399 = vst [vmem:[%s7422_s2 + $0x470] sm:$0xff] %v2159_v30  ;;  %2813 = vmatpush.bf16.msra.mxu0 %v4064_v3 }
 0x28f   :  { %v1982_v37 = vpop.f32.mrf.mxu2  ;;  %v2071_v31 = vpop.f32.mrf.mxu3 }
 0x290   :  { %v2072_v61 = vadd.f32 %v2071_v31, %v1982_v37  ;;  %v1896_v8 = vpop.f32.mrf.mxu1  ;;  %v2163_v29 = vpop.f32.mrf.mxu0  ;;  %v4427_v37 = vld [vmem:[%s7420_s1 + $0xf4] sm:$0xf]  ;;  %v3809_v31 = vld [vmem:[%s7420_s1 + $0x10c] sm:$0xf0] }
 0x291   :  { %v1897_v45 = vadd.f32 %v1896_v8, %v5785_v26 }
 0x292   :  { %v2161_v21 = vadd.f32 %v2160_v16, %v2072_v61  ;;  %v3812_v61 = vor.u32 %v4427_v37, %v3809_v31  ;;  %v7573_v31 = vld [vmem:[#allocation4_spill] sm:$0xff] }
 0x293   :  { %3412 = vst [vmem:[%s7422_s2 + $0x4d8] sm:$0xff] %v1897_v45  ;;  %2211 = vmatmul.bf16.gmra.mxu1 %v5000_v60  ;;  %2478 = vmatmul.bf16.gmra.mxu0 %v5000_v60 }
 0x294   :  { %3406 = vst [vmem:[%s7422_s2 + $0x4a8] sm:$0xff] %v2161_v21  ;;  %2300 = vmatmul.bf16.gmra.mxu2 %v5132_v58  ;;  %2389 = vmatmul.bf16.gmra.mxu3 %v5134_v59 }
 0x295   :  { %2725 = vmatpush.bf16.msra.mxu3 %v3812_v61  ;;  %v7574_v61 = vld [vmem:[#allocation15_spill] sm:$0xff] }
 0x297   :  { %v1985_v35 = vpop.f32.mrf.mxu2  ;;  %v2074_v53 = vpop.f32.mrf.mxu3 }
 0x298   :  { %v2075_v26 = vadd.f32 %v2074_v53, %v1985_v35  ;;  %v1898_v38 = vpop.f32.mrf.mxu1  ;;  %v2165_v36 = vpop.f32.mrf.mxu0  ;;  %v7571_v53 = vld [vmem:[#allocation42_spill] sm:$0xff] }
 0x299   :  { %v1899_v0 = vadd.f32 %v1898_v38, %v5791_v14  ;;  %v7569_v14 = vld [vmem:[#allocation13_spill] sm:$0xff] }
 0x29a   :  { %v2164_v11 = vadd.f32 %v2163_v29, %v2075_v26 }
 0x29b   :  { %3419 = vst [vmem:[%s7422_s2 + $0x510] sm:$0xff] %v1899_v0  ;;  %v4486_v0 = vld [vmem:[%s7420_s1 + $0x2c8] sm:$0xf0] }
 0x29c   :  { %3413 = vst [vmem:[%s7422_s2 + $0x4e0] sm:$0xff] %v2164_v11 }
 0x29f   :  { %v1987_v15 = vpop.f32.mrf.mxu2  ;;  %v2076_v16 = vpop.f32.mrf.mxu3 }
 0x2a0   :  { %v2077_v41 = vadd.f32 %v2076_v16, %v1987_v15  ;;  %v1901_v30 = vpop.f32.mrf.mxu1  ;;  %v2168_v9 = vpop.f32.mrf.mxu0  ;;  %v4483_v15 = vld [vmem:[%s7420_s1 + $0x2b4] sm:$0xf]  ;;  %v4033_v16 = vld [vmem:[%s7420_s1 + $0x2cc] sm:$0xf0] }
 0x2a1   :  { %v1902_v25 = vadd.f32 %v1901_v30, %v5813_v50  ;;  %v4255_v50 = vld [vmem:[%s7420_s1 + $0x470] sm:$0xf] }
 0x2a2   :  { %v2166_v57 = vadd.f32 %v2165_v36, %v2077_v41  ;;  %v4256_v3 = vor.u32 %v4542_v40, %v4255_v50  ;;  %v4031_v36 = vld [vmem:[%s7420_s1 + $0x2b0] sm:$0xf]  ;;  %v4036_v41 = vor.u32 %v4483_v15, %v4033_v16  ;;  %v7572_v40 = vld [vmem:[#allocation17_spill] sm:$0xff] }
 0x2a3   :  { %3426 = vst [vmem:[%s7422_s2 + $0x548] sm:$0xff] %v1902_v25  ;;  %2216 = vmatmul.bf16.gmra.mxu1 %v4705_v44  ;;  %2483 = vmatmul.bf16.gmra.mxu0 %v4705_v44  ;;  %v4032_v11 = vor.u32 %v4486_v0, %v4031_v36 }
 0x2a4   :  { %3420 = vst [vmem:[%s7422_s2 + $0x518] sm:$0xff] %v2166_v57  ;;  %2305 = vmatmul.bf16.gmra.mxu2 %v7569_v14  ;;  %2394 = vmatmul.bf16.gmra.mxu3 %v7570_v12 }
 0x2a5   :  { %2636 = vmatpush.bf16.msra.mxu2 %v4256_v3  ;;  %2547 = vmatpush.bf16.msra.mxu1 %v4032_v11 }
 0x2a6   :  { %2814 = vmatpush.bf16.msra.mxu0 %v4036_v41 }
 0x2a7   :  { %v1990_v8 = vpop.f32.mrf.mxu2  ;;  %v2079_v29 = vpop.f32.mrf.mxu3 }
 0x2a8   :  { %v2080_v45 = vadd.f32 %v2079_v29, %v1990_v8  ;;  %v1903_v21 = vpop.f32.mrf.mxu1  ;;  %v2170_v35 = vpop.f32.mrf.mxu0  ;;  %v7575_v8 = vld [vmem:[#allocation16_spill] sm:$0xff] }
 0x2a9   :  { %v1904_v26 = vadd.f32 %v1903_v21, %v7571_v53 }
 0x2aa   :  { %v2169_v38 = vadd.f32 %v2168_v9, %v2080_v45 }
 0x2ab   :  { %3433 = vst [vmem:[%s7422_s2 + $0x580] sm:$0xff] %v1904_v26  ;;  %v7576_v26 = vld [vmem:[#allocation18_spill] sm:$0xff] }
 0x2ac   :  { %3427 = vst [vmem:[%s7422_s2 + $0x550] sm:$0xff] %v2169_v38 }
 0x2af   :  { %v1992_v30 = vpop.f32.mrf.mxu2  ;;  %v2081_v9 = vpop.f32.mrf.mxu3 }
 0x2b0   :  { %v2082_v25 = vadd.f32 %v2081_v9, %v1992_v30  ;;  %v1906_v57 = vpop.f32.mrf.mxu1  ;;  %v2173_v50 = vpop.f32.mrf.mxu0  ;;  %v7577_v30 = vld [vmem:[#allocation21_spill] sm:$0xff] }
 0x2b1   :  { %v1907_v3 = vadd.f32 %v1906_v57, %v7572_v40  ;;  %v7578_v57 = vld [vmem:[#allocation6_spill] sm:$0xff]  ;;  %v7580_v40 = vld [vmem:[#allocation20_spill] sm:$0xff] }
 0x2b2   :  { %v2171_v37 = vadd.f32 %v2170_v35, %v2082_v25 }
 0x2b3   :  { %3440 = vst [vmem:[%s7422_s2 + $0x5b8] sm:$0xff] %v1907_v3  ;;  %2221 = vmatmul.bf16.gmra.mxu1 %v7573_v31  ;;  %2488 = vmatmul.bf16.gmra.mxu0 %v7573_v31  ;;  %v4227_v3 = vld [vmem:[%s7420_s1 + $0x438] sm:$0xf] }
 0x2b4   :  { %3434 = vst [vmem:[%s7422_s2 + $0x588] sm:$0xff] %v2171_v37  ;;  %2310 = vmatmul.bf16.gmra.mxu2 %v7574_v61  ;;  %2399 = vmatmul.bf16.gmra.mxu3 %v7575_v8  ;;  %v4535_v37 = vld [vmem:[%s7420_s1 + $0x450] sm:$0xf0] }
 0x2b7   :  { %v1995_v29 = vpop.f32.mrf.mxu2  ;;  %v2084_v45 = vpop.f32.mrf.mxu3 }
 0x2b8   :  { %v2085_v21 = vadd.f32 %v2084_v45, %v1995_v29  ;;  %v1908_v35 = vpop.f32.mrf.mxu1  ;;  %v2175_v53 = vpop.f32.mrf.mxu0  ;;  %v4228_v29 = vor.u32 %v4535_v37, %v4227_v3  ;;  %v4420_v45 = vld [vmem:[%s7420_s1 + $0xbc] sm:$0xf]  ;;  %v4005_v3 = vld [vmem:[%s7420_s1 + $0x294] sm:$0xf0] }
 0x2b9   :  { %v1909_v38 = vadd.f32 %v1908_v35, %v7576_v26 }
 0x2ba   :  { %v2174_v36 = vadd.f32 %v2173_v50, %v2085_v21  ;;  %v7579_v50 = vld [vmem:[#allocation19_spill] sm:$0xff]  ;;  %v3781_v21 = vld [vmem:[%s7420_s1 + $0xd4] sm:$0xf0]  ;;  %2637 = vmatpush.bf16.msra.mxu2 %v4228_v29 }
 0x2bb   :  { %3447 = vst [vmem:[%s7422_s2 + $0x5f0] sm:$0xff] %v1909_v38  ;;  %v3784_v35 = vor.u32 %v4420_v45, %v3781_v21 }
 0x2bc   :  { %3441 = vst [vmem:[%s7422_s2 + $0x5c0] sm:$0xff] %v2174_v36 }
 0x2bd   :  { %2726 = vmatpush.bf16.msra.mxu3 %v3784_v35 }
 0x2bf   :  { %v1997_v0 = vpop.f32.mrf.mxu2  ;;  %v2086_v11 = vpop.f32.mrf.mxu3 }
 0x2c0   :  { %v2087_v15 = vadd.f32 %v2086_v11, %v1997_v0  ;;  %v1911_v16 = vpop.f32.mrf.mxu1  ;;  %v2178_v41 = vpop.f32.mrf.mxu0  ;;  %v7581_v11 = vld [vmem:[#allocation22_spill] sm:$0xff] }
 0x2c1   :  { %v1912_v9 = vadd.f32 %v1911_v16, %v7577_v30  ;;  %v4003_v30 = vld [vmem:[%s7420_s1 + $0x278] sm:$0xf] }
 0x2c2   :  { %v2176_v25 = vadd.f32 %v2175_v53, %v2087_v15 }
 0x2c3   :  { %3454 = vst [vmem:[%s7422_s2 + $0x628] sm:$0xff] %v1912_v9  ;;  %2226 = vmatmul.bf16.gmra.mxu1 %v7578_v57  ;;  %2493 = vmatmul.bf16.gmra.mxu0 %v7578_v57  ;;  %v4479_v9 = vld [vmem:[%s7420_s1 + $0x290] sm:$0xf0] }
 0x2c4   :  { %3448 = vst [vmem:[%s7422_s2 + $0x5f8] sm:$0xff] %v2176_v25  ;;  %2315 = vmatmul.bf16.gmra.mxu2 %v7579_v50  ;;  %2404 = vmatmul.bf16.gmra.mxu3 %v7580_v40  ;;  %v4004_v25 = vor.u32 %v4479_v9, %v4003_v30 }
 0x2c6   :  { %2548 = vmatpush.bf16.msra.mxu1 %v4004_v25 }
 0x2c7   :  { %v2000_v53 = vpop.f32.mrf.mxu2  ;;  %v2089_v26 = vpop.f32.mrf.mxu3 }
 0x2c8   :  { %v2090_v38 = vadd.f32 %v2089_v26, %v2000_v53  ;;  %v1913_v36 = vpop.f32.mrf.mxu1  ;;  %v2180_v0 = vpop.f32.mrf.mxu0 }
 0x2c9   :  { %v1914_v15 = vadd.f32 %v1913_v36, %v7581_v11  ;;  %v7582_v36 = vld [vmem:[#allocation9_spill] sm:$0xff]  ;;  %v7583_v11 = vld [vmem:[#allocation23_spill] sm:$0xff] }
 0x2ca   :  { %v2179_v16 = vadd.f32 %v2178_v41, %v2090_v38  ;;  %v4476_v41 = vld [vmem:[%s7420_s1 + $0x27c] sm:$0xf] }
 0x2cb   :  { %3461 = vst [vmem:[%s7422_s2 + $0x660] sm:$0xff] %v1914_v15  ;;  %v4008_v37 = vor.u32 %v4476_v41, %v4005_v3  ;;  %v7584_v15 = vld [vmem:[#allocation24_spill] sm:$0xff] }
 0x2cc   :  { %3455 = vst [vmem:[%s7422_s2 + $0x630] sm:$0xff] %v2179_v16 }
 0x2cd   :  { %2815 = vmatpush.bf16.msra.mxu0 %v4008_v37 }
 0x2cf   :  { %v2002_v29 = vpop.f32.mrf.mxu2  ;;  %v2091_v45 = vpop.f32.mrf.mxu3 }
 0x2d0   :  { %v2092_v21 = vadd.f32 %v2091_v45, %v2002_v29  ;;  %v1916_v35 = vpop.f32.mrf.mxu1  ;;  %v2183_v53 = vpop.f32.mrf.mxu0 }
 0x2d1   :  { %v1917_v26 = vadd.f32 %v1916_v35, %v5897_v27 }
 0x2d2   :  { %v2181_v38 = vadd.f32 %v2180_v0, %v2092_v21 }
 0x2d3   :  { %3468 = vst [vmem:[%s7422_s2 + $0x698] sm:$0xff] %v1917_v26  ;;  %2231 = vmatmul.bf16.gmra.mxu1 %v7582_v36  ;;  %2498 = vmatmul.bf16.gmra.mxu0 %v7582_v36  ;;  %v4528_v26 = vld [vmem:[%s7420_s1 + $0x418] sm:$0xf0] }
 0x2d4   :  { %3462 = vst [vmem:[%s7422_s2 + $0x668] sm:$0xff] %v2181_v38  ;;  %2320 = vmatmul.bf16.gmra.mxu2 %v7583_v11  ;;  %2409 = vmatmul.bf16.gmra.mxu3 %v7584_v15 }
 0x2d7   :  { %v2005_v16 = vpop.f32.mrf.mxu2  ;;  %v2094_v30 = vpop.f32.mrf.mxu3 }
 0x2d8   :  { %v2095_v27 = vadd.f32 %v2094_v30, %v2005_v16  ;;  %v1918_v0 = vpop.f32.mrf.mxu1  ;;  %v2185_v9 = vpop.f32.mrf.mxu0  ;;  %v4413_v16 = vld [vmem:[%s7420_s1 + $0x84] sm:$0xf]  ;;  %v3753_v30 = vld [vmem:[%s7420_s1 + $0x9c] sm:$0xf0] }
 0x2d9   :  { %v1919_v25 = vadd.f32 %v1918_v0, %v5903_v42  ;;  %v7585_v42 = vld [vmem:[#allocation28_spill] sm:$0xff] }
 0x2da   :  { %v2184_v41 = vadd.f32 %v2183_v53, %v2095_v27  ;;  %v4199_v53 = vld [vmem:[%s7420_s1 + $0x400] sm:$0xf]  ;;  %v3756_v27 = vor.u32 %v4413_v16, %v3753_v30 }
 0x2db   :  { %3475 = vst [vmem:[%s7422_s2 + $0x6d0] sm:$0xff] %v1919_v25  ;;  %v4200_v38 = vor.u32 %v4528_v26, %v4199_v53  ;;  %v3977_v26 = vld [vmem:[%s7420_s1 + $0x25c] sm:$0xf0] }
 0x2dc   :  { %3469 = vst [vmem:[%s7422_s2 + $0x6a0] sm:$0xff] %v2184_v41  ;;  %2727 = vmatpush.bf16.msra.mxu3 %v3756_v27 }
 0x2dd   :  { %2638 = vmatpush.bf16.msra.mxu2 %v4200_v38 }
 0x2df   :  { %v2007_v3 = vpop.f32.mrf.mxu2  ;;  %v2096_v37 = vpop.f32.mrf.mxu3 }
 0x2e0   :  { %v2097_v29 = vadd.f32 %v2096_v37, %v2007_v3  ;;  %v2197_v45 = vpop.f32.mrf.mxu1  ;;  %v6385_v21 = vpop.f32.mrf.mxu0 }
 0x2e2   :  { %v2186_v35 = vadd.f32 %v2185_v9, %v2097_v29  ;;  %v3975_v29 = vld [vmem:[%s7420_s1 + $0x240] sm:$0xf] }
 0x2e3   :  { %2236 = vmatmul.bf16.gmra.mxu1 %v7555_v49  ;;  %2503 = vmatmul.bf16.gmra.mxu0 %v7555_v49 }
 0x2e4   :  { %3476 = vst [vmem:[%s7422_s2 + $0x6d8] sm:$0xff] %v2186_v35  ;;  %2325 = vmatmul.bf16.gmra.mxu2 %v7556_v2  ;;  %2414 = vmatmul.bf16.gmra.mxu3 %v7585_v42  ;;  %v4472_v35 = vld [vmem:[%s7420_s1 + $0x258] sm:$0xf0] }
 0x2e5   :  { %v3976_v53 = vor.u32 %v4472_v35, %v3975_v29 }
 0x2e7   :  { %v2286_v0 = vpop.f32.mrf.mxu2  ;;  %v2375_v9 = vpop.f32.mrf.mxu3  ;;  %2549 = vmatpush.bf16.msra.mxu1 %v3976_v53 }
 0x2e8   :  { %v2287_v25 = vadd.f32 %v2286_v0, %v2197_v45  ;;  %v2199_v41 = vpop.f32.mrf.mxu1  ;;  %v6406_v3 = vpop.f32.mrf.mxu0  ;;  %v4469_v45 = vld [vmem:[%s7420_s1 + $0x244] sm:$0xf] }
 0x2e9   :  { %v3980_v38 = vor.u32 %v4469_v45, %v3977_v26 }
 0x2ea   :  { %v2376_v37 = vadd.f32 %v2375_v9, %v2287_v25 }
 0x2eb   :  { %2816 = vmatpush.bf16.msra.mxu0 %v3980_v38 }
 0x2ec   :  { %3259 = vst [vmem:[%s7422_s2 + $0x18] sm:$0xff] %v2376_v37 }
 0x2ef   :  { %v2288_v16 = vpop.f32.mrf.mxu2  ;;  %v2377_v30 = vpop.f32.mrf.mxu3 }
 0x2f0   :  { %v2289_v27 = vadd.f32 %v2288_v16, %v2199_v41  ;;  %v2202_v0 = vpop.f32.mrf.mxu1  ;;  %v6423_v9 = vpop.f32.mrf.mxu0 }
 0x2f2   :  { %v2378_v25 = vadd.f32 %v2377_v30, %v2289_v27 }
 0x2f3   :  { %2241 = vmatmul.bf16.gmra.mxu1 %v4848_v46  ;;  %2508 = vmatmul.bf16.gmra.mxu0 %v4848_v46 }
 0x2f4   :  { %3267 = vst [vmem:[%s7422_s2 + $0x50] sm:$0xff] %v2378_v25  ;;  %2330 = vmatmul.bf16.gmra.mxu2 %v5395_v13  ;;  %2419 = vmatmul.bf16.gmra.mxu3 %v5399_v51 }
 0x2f7   :  { %v2291_v37 = vpop.f32.mrf.mxu2  ;;  %v2380_v29 = vpop.f32.mrf.mxu3 }
 0x2f8   :  { %v2292_v41 = vadd.f32 %v2291_v37, %v2202_v0  ;;  %v2204_v35 = vpop.f32.mrf.mxu1  ;;  %v6432_v53 = vpop.f32.mrf.mxu0  ;;  %v4171_v0 = vld [vmem:[%s7420_s1 + $0x3c8] sm:$0xf]  ;;  %v4521_v37 = vld [vmem:[%s7420_s1 + $0x3e0] sm:$0xf0] }
 0x2fa   :  { %v2381_v45 = vadd.f32 %v2380_v29, %v2292_v41  ;;  %v4172_v29 = vor.u32 %v4521_v37, %v4171_v0  ;;  %v4406_v41 = vld [vmem:[%s7420_s1 + $0x4c] sm:$0xf]  ;;  %v3947_v0 = vld [vmem:[%s7420_s1 + $0x208] sm:$0xf]  ;;  %v4465_v37 = vld [vmem:[%s7420_s1 + $0x220] sm:$0xf0] }
 0x2fc   :  { %3274 = vst [vmem:[%s7422_s2 + $0x88] sm:$0xff] %v2381_v45  ;;  %2639 = vmatpush.bf16.msra.mxu2 %v4172_v29  ;;  %v3949_v29 = vld [vmem:[%s7420_s1 + $0x224] sm:$0xf0] }
 0x2ff   :  { %v2293_v26 = vpop.f32.mrf.mxu2  ;;  %v2382_v38 = vpop.f32.mrf.mxu3 }
 0x300   :  { %v2294_v16 = vadd.f32 %v2293_v26, %v2204_v35  ;;  %v2207_v30 = vpop.f32.mrf.mxu1  ;;  %v6437_v27 = vpop.f32.mrf.mxu0  ;;  %v3725_v35 = vld [vmem:[%s7420_s1 + $0x64] sm:$0xf0] }
 0x301   :  { %7586 = vst [vmem:[#allocation25_spill] sm:$0xff] %v6437_v27  ;;  %v3728_v45 = vor.u32 %v4406_v41, %v3725_v35  ;;  %v3948_v41 = vor.u32 %v4465_v37, %v3947_v0 }
 0x302   :  { %v2383_v25 = vadd.f32 %v2382_v38, %v2294_v16 }
 0x303   :  { %2246 = vmatmul.bf16.gmra.mxu1 %v7559_v20  ;;  %2513 = vmatmul.bf16.gmra.mxu0 %v7559_v20 }
 0x304   :  { %3281 = vst [vmem:[%s7422_s2 + $0xc0] sm:$0xff] %v2383_v25  ;;  %2335 = vmatmul.bf16.gmra.mxu2 %v7560_v52  ;;  %2424 = vmatmul.bf16.gmra.mxu3 %v7558_v18 }
 0x305   :  { %2728 = vmatpush.bf16.msra.mxu3 %v3728_v45  ;;  %2550 = vmatpush.bf16.msra.mxu1 %v3948_v41 }
 0x307   :  { %v2296_v26 = vpop.f32.mrf.mxu2  ;;  %v2385_v38 = vpop.f32.mrf.mxu3 }
 0x308   :  { %v2297_v16 = vadd.f32 %v2296_v26, %v2207_v30  ;;  %v2209_v25 = vpop.f32.mrf.mxu1  ;;  %v6458_v27 = vpop.f32.mrf.mxu0  ;;  %v4462_v30 = vld [vmem:[%s7420_s1 + $0x20c] sm:$0xf] }
 0x309   :  { %7587 = vst [vmem:[#allocation26_spill] sm:$0xff] %v6458_v27  ;;  %v3952_v35 = vor.u32 %v4462_v30, %v3949_v29 }
 0x30a   :  { %v2386_v20 = vadd.f32 %v2385_v38, %v2297_v16 }
 0x30b   :  { %2817 = vmatpush.bf16.msra.mxu0 %v3952_v35 }
 0x30c   :  { %3288 = vst [vmem:[%s7422_s2 + $0xf8] sm:$0xff] %v2386_v20 }
 0x30f   :  { %v2298_v45 = vpop.f32.mrf.mxu2  ;;  %v2387_v20 = vpop.f32.mrf.mxu3 }
 0x310   :  { %v2299_v26 = vadd.f32 %v2298_v45, %v2209_v25  ;;  %v2212_v38 = vpop.f32.mrf.mxu1  ;;  %v6475_v16 = vpop.f32.mrf.mxu0 }
 0x311   :  { %7588 = vst [vmem:[#allocation29_spill] sm:$0xff] %v6475_v16 }
 0x312   :  { %v2388_v27 = vadd.f32 %v2387_v20, %v2299_v26 }
 0x313   :  { %2251 = vmatmul.bf16.gmra.mxu1 %v5004_v62  ;;  %2518 = vmatmul.bf16.gmra.mxu0 %v5004_v62 }
 0x314   :  { %3295 = vst [vmem:[%s7422_s2 + $0x130] sm:$0xff] %v2388_v27  ;;  %2340 = vmatmul.bf16.gmra.mxu2 %v5483_v54  ;;  %2429 = vmatmul.bf16.gmra.mxu3 %v5487_v48 }
 0x317   :  { %v2301_v0 = vpop.f32.mrf.mxu2  ;;  %v2390_v37 = vpop.f32.mrf.mxu3 }
 0x318   :  { %v2302_v25 = vadd.f32 %v2301_v0, %v2212_v38  ;;  %v2214_v41 = vpop.f32.mrf.mxu1  ;;  %v6484_v30 = vpop.f32.mrf.mxu0  ;;  %v4143_v38 = vld [vmem:[%s7420_s1 + $0x390] sm:$0xf]  ;;  %v4514_v0 = vld [vmem:[%s7420_s1 + $0x3a8] sm:$0xf0] }
 0x31a   :  { %v2391_v29 = vadd.f32 %v2390_v37, %v2302_v25  ;;  %v4144_v37 = vor.u32 %v4514_v0, %v4143_v38  ;;  %v4399_v25 = vld [vmem:[%s7420_s1 + $0x14] sm:$0xf]  ;;  %v3919_v38 = vld [vmem:[%s7420_s1 + $0x1d0] sm:$0xf]  ;;  %v4458_v0 = vld [vmem:[%s7420_s1 + $0x1e8] sm:$0xf0] }
 0x31c   :  { %3302 = vst [vmem:[%s7422_s2 + $0x168] sm:$0xff] %v2391_v29  ;;  %2640 = vmatpush.bf16.msra.mxu2 %v4144_v37  ;;  %v3921_v37 = vld [vmem:[%s7420_s1 + $0x1ec] sm:$0xf0] }
 0x31f   :  { %v2303_v35 = vpop.f32.mrf.mxu2  ;;  %v2392_v45 = vpop.f32.mrf.mxu3 }
 0x320   :  { %v2304_v20 = vadd.f32 %v2303_v35, %v2214_v41  ;;  %v2217_v26 = vpop.f32.mrf.mxu1  ;;  %v6489_v27 = vpop.f32.mrf.mxu0 }
 0x321   :  { %7589 = vst [vmem:[#allocation32_spill] sm:$0xff] %v6489_v27 }
 0x322   :  { %v2393_v16 = vadd.f32 %v2392_v45, %v2304_v20 }
 0x323   :  { %2256 = vmatmul.bf16.gmra.mxu1 %v7563_v17  ;;  %2523 = vmatmul.bf16.gmra.mxu0 %v7563_v17 }
 0x324   :  { %3309 = vst [vmem:[%s7422_s2 + $0x1a0] sm:$0xff] %v2393_v16  ;;  %2345 = vmatmul.bf16.gmra.mxu2 %v7564_v24  ;;  %2434 = vmatmul.bf16.gmra.mxu3 %v7562_v34  ;;  %v3697_v16 = vld [vmem:[%s7420_s1 + $0x2c] sm:$0xf0] }
 0x325   :  { %v3700_v41 = vor.u32 %v4399_v25, %v3697_v16  ;;  %v3920_v25 = vor.u32 %v4458_v0, %v3919_v38 }
 0x327   :  { %v2306_v29 = vpop.f32.mrf.mxu2  ;;  %v2395_v35 = vpop.f32.mrf.mxu3  ;;  %2729 = vmatpush.bf16.msra.mxu3 %v3700_v41  ;;  %2551 = vmatpush.bf16.msra.mxu1 %v3920_v25 }
 0x328   :  { %v2307_v45 = vadd.f32 %v2306_v29, %v2217_v26  ;;  %v2219_v20 = vpop.f32.mrf.mxu1  ;;  %v6510_v27 = vpop.f32.mrf.mxu0  ;;  %v4455_v26 = vld [vmem:[%s7420_s1 + $0x1d4] sm:$0xf] }
 0x329   :  { %7590 = vst [vmem:[#allocation31_spill] sm:$0xff] %v6510_v27  ;;  %v3924_v16 = vor.u32 %v4455_v26, %v3921_v37 }
 0x32a   :  { %v2396_v17 = vadd.f32 %v2395_v35, %v2307_v45 }
 0x32b   :  { %2818 = vmatpush.bf16.msra.mxu0 %v3924_v16 }
 0x32c   :  { %3316 = vst [vmem:[%s7422_s2 + $0x1d8] sm:$0xff] %v2396_v17 }
 0x32f   :  { %v2308_v41 = vpop.f32.mrf.mxu2  ;;  %v2397_v17 = vpop.f32.mrf.mxu3 }
 0x330   :  { %v2309_v29 = vadd.f32 %v2308_v41, %v2219_v20  ;;  %v2222_v35 = vpop.f32.mrf.mxu1  ;;  %v6527_v45 = vpop.f32.mrf.mxu0 }
 0x331   :  { %7591 = vst [vmem:[#allocation36_spill] sm:$0xff] %v6527_v45 }
 0x332   :  { %v2398_v27 = vadd.f32 %v2397_v17, %v2309_v29 }
 0x333   :  { %2261 = vmatmul.bf16.gmra.mxu1 %v4850_v47  ;;  %2528 = vmatmul.bf16.gmra.mxu0 %v4850_v47 }
 0x334   :  { %3323 = vst [vmem:[%s7422_s2 + $0x210] sm:$0xff] %v2398_v27  ;;  %2350 = vmatmul.bf16.gmra.mxu2 %v5571_v1  ;;  %2439 = vmatmul.bf16.gmra.mxu3 %v5575_v10 }
 0x337   :  { %v2311_v38 = vpop.f32.mrf.mxu2  ;;  %v2400_v0 = vpop.f32.mrf.mxu3 }
 0x338   :  { %v2312_v20 = vadd.f32 %v2311_v38, %v2222_v35  ;;  %v2224_v25 = vpop.f32.mrf.mxu1  ;;  %v6536_v26 = vpop.f32.mrf.mxu0  ;;  %v3899_v35 = vld [vmem:[%s7420_s1 + $0x1a0] sm:$0xf]  ;;  %v4452_v38 = vld [vmem:[%s7420_s1 + $0x1b8] sm:$0xf0] }
 0x33a   :  { %v2401_v37 = vadd.f32 %v2400_v0, %v2312_v20  ;;  %v3900_v0 = vor.u32 %v4452_v38, %v3899_v35  ;;  %v4123_v20 = vld [vmem:[%s7420_s1 + $0x360] sm:$0xf]  ;;  %v4560_v35 = vld [vmem:[%s7420_s1 + $0x51c] sm:$0xf]  ;;  %v4341_v38 = vld [vmem:[%s7420_s1 + $0x534] sm:$0xf0] }
 0x33c   :  { %3330 = vst [vmem:[%s7422_s2 + $0x248] sm:$0xff] %v2401_v37  ;;  %2989 = vmatpush.bf16.msrb.mxu2 %v3900_v0  ;;  %v4564_v0 = vld [vmem:[%s7420_s1 + $0x538] sm:$0xf0] }
 0x33f   :  { %v2313_v16 = vpop.f32.mrf.mxu2  ;;  %v2402_v41 = vpop.f32.mrf.mxu3 }
 0x340   :  { %v2314_v17 = vadd.f32 %v2313_v16, %v2224_v25  ;;  %v2227_v29 = vpop.f32.mrf.mxu1  ;;  %v6541_v27 = vpop.f32.mrf.mxu0 }
 0x341   :  { %7592 = vst [vmem:[#allocation35_spill] sm:$0xff] %v6541_v27 }
 0x342   :  { %v2403_v45 = vadd.f32 %v2402_v41, %v2314_v17 }
 0x343   :  { %2266 = vmatmul.bf16.gmra.mxu1 %v7567_v6  ;;  %2533 = vmatmul.bf16.gmra.mxu0 %v7567_v6 }
 0x344   :  { %3337 = vst [vmem:[%s7422_s2 + $0x280] sm:$0xff] %v2403_v45  ;;  %2355 = vmatmul.bf16.gmra.mxu2 %v7568_v7  ;;  %2444 = vmatmul.bf16.gmra.mxu3 %v7566_v19  ;;  %v4508_v45 = vld [vmem:[%s7420_s1 + $0x378] sm:$0xf0] }
 0x345   :  { %v4124_v25 = vor.u32 %v4508_v45, %v4123_v20  ;;  %v4344_v20 = vor.u32 %v4560_v35, %v4341_v38 }
 0x347   :  { %v2316_v37 = vpop.f32.mrf.mxu2  ;;  %v2405_v16 = vpop.f32.mrf.mxu3  ;;  %3078 = vmatpush.bf16.msrb.mxu3 %v4124_v25  ;;  %2900 = vmatpush.bf16.msrb.mxu1 %v4344_v20 }
 0x348   :  { %v2317_v41 = vadd.f32 %v2316_v37, %v2227_v29  ;;  %v2229_v17 = vpop.f32.mrf.mxu1  ;;  %v6562_v27 = vpop.f32.mrf.mxu0  ;;  %v4347_v29 = vld [vmem:[%s7420_s1 + $0x520] sm:$0xf] }
 0x349   :  { %7593 = vst [vmem:[#allocation40_spill] sm:$0xff] %v6562_v27  ;;  %v4348_v45 = vor.u32 %v4564_v0, %v4347_v29 }
 0x34a   :  { %v2406_v6 = vadd.f32 %v2405_v16, %v2317_v41 }
 0x34b   :  { %3167 = vmatpush.bf16.msrb.mxu0 %v4348_v45 }
 0x34c   :  { %3344 = vst [vmem:[%s7422_s2 + $0x2b8] sm:$0xff] %v2406_v6 }
 0x34f   :  { %v2318_v25 = vpop.f32.mrf.mxu2  ;;  %v2407_v6 = vpop.f32.mrf.mxu3 }
 0x350   :  { %v2319_v37 = vadd.f32 %v2318_v25, %v2229_v17  ;;  %v2232_v16 = vpop.f32.mrf.mxu1  ;;  %v6579_v41 = vpop.f32.mrf.mxu0 }
 0x351   :  { %7594 = vst [vmem:[#allocation14_spill] sm:$0xff] %v6579_v41 }
 0x352   :  { %v2408_v27 = vadd.f32 %v2407_v6, %v2319_v37 }
 0x353   :  { %2271 = vmatmul.bf16.gmra.mxu1 %v5006_v63  ;;  %2538 = vmatmul.bf16.gmra.mxu0 %v5006_v63 }
 0x354   :  { %3351 = vst [vmem:[%s7422_s2 + $0x2f0] sm:$0xff] %v2408_v27  ;;  %2360 = vmatmul.bf16.gmra.mxu2 %v5659_v55  ;;  %2449 = vmatmul.bf16.gmra.mxu3 %v5663_v56 }
 0x357   :  { %v2321_v35 = vpop.f32.mrf.mxu2  ;;  %v2410_v38 = vpop.f32.mrf.mxu3 }
 0x358   :  { %v2322_v17 = vadd.f32 %v2321_v35, %v2232_v16  ;;  %v2234_v20 = vpop.f32.mrf.mxu1  ;;  %v6588_v29 = vpop.f32.mrf.mxu0  ;;  %v3871_v16 = vld [vmem:[%s7420_s1 + $0x168] sm:$0xf]  ;;  %v4445_v35 = vld [vmem:[%s7420_s1 + $0x180] sm:$0xf0] }
 0x35a   :  { %v2411_v0 = vadd.f32 %v2410_v38, %v2322_v17  ;;  %v3872_v38 = vor.u32 %v4445_v35, %v3871_v16  ;;  %v4095_v17 = vld [vmem:[%s7420_s1 + $0x328] sm:$0xf]  ;;  %v4553_v16 = vld [vmem:[%s7420_s1 + $0x4e4] sm:$0xf]  ;;  %v4313_v35 = vld [vmem:[%s7420_s1 + $0x4fc] sm:$0xf0] }
 0x35c   :  { %3358 = vst [vmem:[%s7422_s2 + $0x328] sm:$0xff] %v2411_v0  ;;  %2990 = vmatpush.bf16.msrb.mxu2 %v3872_v38  ;;  %v4557_v38 = vld [vmem:[%s7420_s1 + $0x500] sm:$0xf0] }
 0x35f   :  { %v2323_v45 = vpop.f32.mrf.mxu2  ;;  %v2412_v25 = vpop.f32.mrf.mxu3 }
 0x360   :  { %v2324_v6 = vadd.f32 %v2323_v45, %v2234_v20  ;;  %v2237_v37 = vpop.f32.mrf.mxu1  ;;  %v6593_v27 = vpop.f32.mrf.mxu0 }
 0x361   :  { %7595 = vst [vmem:[#allocation42_spill] sm:$0xff] %v6593_v27 }
 0x362   :  { %v2413_v41 = vadd.f32 %v2412_v25, %v2324_v6 }
 0x363   :  { %2552 = vmatmul.bf16.vlgmr.msra.gmra.mxu1 %v5024_v4  ;;  %2819 = vmatmul.bf16.vlgmr.msra.gmra.mxu0 %v5024_v4 }
 0x364   :  { %3365 = vst [vmem:[%s7422_s2 + $0x360] sm:$0xff] %v2413_v41  ;;  %2641 = vmatmul.bf16.vlgmr.msra.gmra.mxu2 %v5026_v5  ;;  %2730 = vmatmul.bf16.vlgmr.msra.gmra.mxu3 %v4703_v43  ;;  %v4501_v41 = vld [vmem:[%s7420_s1 + $0x340] sm:$0xf0] }
 0x365   :  { %v4096_v20 = vor.u32 %v4501_v41, %v4095_v17  ;;  %v4316_v17 = vor.u32 %v4553_v16, %v4313_v35 }
 0x367   :  { %v2326_v0 = vpop.f32.mrf.mxu2  ;;  %v2415_v45 = vpop.f32.mrf.mxu3  ;;  %3079 = vmatpush.bf16.msrb.mxu3 %v4096_v20  ;;  %2901 = vmatpush.bf16.msrb.mxu1 %v4316_v17 }
 0x368   :  { %v2327_v25 = vadd.f32 %v2326_v0, %v2237_v37  ;;  %v2239_v6 = vpop.f32.mrf.mxu1  ;;  %v6614_v27 = vpop.f32.mrf.mxu0  ;;  %v4319_v37 = vld [vmem:[%s7420_s1 + $0x4e8] sm:$0xf] }
 0x369   :  { %7596 = vst [vmem:[#allocation17_spill] sm:$0xff] %v6614_v27  ;;  %v4320_v41 = vor.u32 %v4557_v38, %v4319_v37 }
 0x36a   :  { %v2416_v4 = vadd.f32 %v2415_v45, %v2327_v25 }
 0x36b   :  { %3168 = vmatpush.bf16.msrb.mxu0 %v4320_v41 }
 0x36c   :  { %3372 = vst [vmem:[%s7422_s2 + $0x398] sm:$0xff] %v2416_v4 }
 0x36f   :  { %v2328_v20 = vpop.f32.mrf.mxu2  ;;  %v2417_v4 = vpop.f32.mrf.mxu3 }
 0x370   :  { %v2329_v0 = vadd.f32 %v2328_v20, %v2239_v6  ;;  %v2242_v45 = vpop.f32.mrf.mxu1  ;;  %v6631_v25 = vpop.f32.mrf.mxu0 }
 0x371   :  { %7597 = vst [vmem:[#allocation4_spill] sm:$0xff] %v6631_v25 }
 0x372   :  { %v2418_v27 = vadd.f32 %v2417_v4, %v2329_v0 }
 0x373   :  { %2557 = vmatmul.bf16.gmra.mxu1 %v5068_v22  ;;  %2824 = vmatmul.bf16.gmra.mxu0 %v5068_v22 }
 0x374   :  { %3379 = vst [vmem:[%s7422_s2 + $0x3d0] sm:$0xff] %v2418_v27  ;;  %2646 = vmatmul.bf16.gmra.mxu2 %v5070_v23  ;;  %2735 = vmatmul.bf16.gmra.mxu3 %v4835_v39 }
 0x377   :  { %v2331_v16 = vpop.f32.mrf.mxu2  ;;  %v2420_v35 = vpop.f32.mrf.mxu3 }
 0x378   :  { %v2332_v6 = vadd.f32 %v2331_v16, %v2242_v45  ;;  %v2244_v17 = vpop.f32.mrf.mxu1  ;;  %v6640_v37 = vpop.f32.mrf.mxu0  ;;  %v3843_v45 = vld [vmem:[%s7420_s1 + $0x130] sm:$0xf]  ;;  %v4438_v16 = vld [vmem:[%s7420_s1 + $0x148] sm:$0xf0] }
 0x37a   :  { %v2421_v38 = vadd.f32 %v2420_v35, %v2332_v6  ;;  %v3844_v35 = vor.u32 %v4438_v16, %v3843_v45  ;;  %v4067_v6 = vld [vmem:[%s7420_s1 + $0x2f0] sm:$0xf]  ;;  %v4546_v45 = vld [vmem:[%s7420_s1 + $0x4ac] sm:$0xf]  ;;  %v4285_v16 = vld [vmem:[%s7420_s1 + $0x4c4] sm:$0xf0] }
 0x37c   :  { %3386 = vst [vmem:[%s7422_s2 + $0x408] sm:$0xff] %v2421_v38  ;;  %2991 = vmatpush.bf16.msrb.mxu2 %v3844_v35  ;;  %v4550_v35 = vld [vmem:[%s7420_s1 + $0x4c8] sm:$0xf0] }
 0x37f   :  { %v2333_v41 = vpop.f32.mrf.mxu2  ;;  %v2422_v20 = vpop.f32.mrf.mxu3 }
 0x380   :  { %v2334_v4 = vadd.f32 %v2333_v41, %v2244_v17  ;;  %v2247_v0 = vpop.f32.mrf.mxu1  ;;  %v6645_v27 = vpop.f32.mrf.mxu0 }
 0x381   :  { %7598 = vst [vmem:[#allocation15_spill] sm:$0xff] %v6645_v27 }
 0x382   :  { %v2423_v25 = vadd.f32 %v2422_v20, %v2334_v4 }
 0x383   :  { %2562 = vmatmul.bf16.gmra.mxu1 %v5088_v32  ;;  %2829 = vmatmul.bf16.gmra.mxu0 %v5088_v32 }
 0x384   :  { %3393 = vst [vmem:[%s7422_s2 + $0x440] sm:$0xff] %v2423_v25  ;;  %2651 = vmatmul.bf16.gmra.mxu2 %v5090_v33  ;;  %2740 = vmatmul.bf16.gmra.mxu3 %v4940_v28  ;;  %v4494_v25 = vld [vmem:[%s7420_s1 + $0x308] sm:$0xf0] }
 0x385   :  { %v4068_v17 = vor.u32 %v4494_v25, %v4067_v6  ;;  %v4288_v6 = vor.u32 %v4546_v45, %v4285_v16 }
 0x387   :  { %v2336_v38 = vpop.f32.mrf.mxu2  ;;  %v2425_v41 = vpop.f32.mrf.mxu3  ;;  %3080 = vmatpush.bf16.msrb.mxu3 %v4068_v17  ;;  %2902 = vmatpush.bf16.msrb.mxu1 %v4288_v6 }
 0x388   :  { %v2337_v20 = vadd.f32 %v2336_v38, %v2247_v0  ;;  %v2249_v4 = vpop.f32.mrf.mxu1  ;;  %v6666_v27 = vpop.f32.mrf.mxu0  ;;  %v4291_v0 = vld [vmem:[%s7420_s1 + $0x4b0] sm:$0xf] }
 0x389   :  { %7599 = vst [vmem:[#allocation16_spill] sm:$0xff] %v6666_v27  ;;  %v4292_v25 = vor.u32 %v4550_v35, %v4291_v0 }
 0x38a   :  { %v2426_v32 = vadd.f32 %v2425_v41, %v2337_v20 }
 0x38b   :  { %3169 = vmatpush.bf16.msrb.mxu0 %v4292_v25 }
 0x38c   :  { %3400 = vst [vmem:[%s7422_s2 + $0x478] sm:$0xff] %v2426_v32 }
 0x38f   :  { %v2338_v17 = vpop.f32.mrf.mxu2  ;;  %v2427_v32 = vpop.f32.mrf.mxu3 }
 0x390   :  { %v2339_v38 = vadd.f32 %v2338_v17, %v2249_v4  ;;  %v2252_v41 = vpop.f32.mrf.mxu1  ;;  %v6683_v20 = vpop.f32.mrf.mxu0 }
 0x391   :  { %7600 = vst [vmem:[#allocation18_spill] sm:$0xff] %v6683_v20 }
 0x392   :  { %v2428_v27 = vadd.f32 %v2427_v32, %v2339_v38 }
 0x393   :  { %2567 = vmatmul.bf16.gmra.mxu1 %v5132_v58  ;;  %2834 = vmatmul.bf16.gmra.mxu0 %v5132_v58 }
 0x394   :  { %3407 = vst [vmem:[%s7422_s2 + $0x4b0] sm:$0xff] %v2428_v27  ;;  %2656 = vmatmul.bf16.gmra.mxu2 %v5134_v59  ;;  %2745 = vmatmul.bf16.gmra.mxu3 %v5000_v60 }
 0x397   :  { %v2341_v45 = vpop.f32.mrf.mxu2  ;;  %v2430_v16 = vpop.f32.mrf.mxu3 }
 0x398   :  { %v2342_v4 = vadd.f32 %v2341_v45, %v2252_v41  ;;  %v2254_v6 = vpop.f32.mrf.mxu1  ;;  %v6692_v0 = vpop.f32.mrf.mxu0  ;;  %v3815_v41 = vld [vmem:[%s7420_s1 + $0xf8] sm:$0xf]  ;;  %v4431_v45 = vld [vmem:[%s7420_s1 + $0x110] sm:$0xf0] }
 0x39a   :  { %v2431_v35 = vadd.f32 %v2430_v16, %v2342_v4  ;;  %v3816_v16 = vor.u32 %v4431_v45, %v3815_v41  ;;  %v4039_v4 = vld [vmem:[%s7420_s1 + $0x2b8] sm:$0xf]  ;;  %v4539_v41 = vld [vmem:[%s7420_s1 + $0x474] sm:$0xf]  ;;  %v4257_v45 = vld [vmem:[%s7420_s1 + $0x48c] sm:$0xf0] }
 0x39c   :  { %3414 = vst [vmem:[%s7422_s2 + $0x4e8] sm:$0xff] %v2431_v35  ;;  %2992 = vmatpush.bf16.msrb.mxu2 %v3816_v16  ;;  %v4543_v16 = vld [vmem:[%s7420_s1 + $0x490] sm:$0xf0] }
 0x39f   :  { %v2343_v25 = vpop.f32.mrf.mxu2  ;;  %v2432_v17 = vpop.f32.mrf.mxu3 }
 0x3a0   :  { %v2344_v32 = vadd.f32 %v2343_v25, %v2254_v6  ;;  %v2257_v38 = vpop.f32.mrf.mxu1  ;;  %v6697_v27 = vpop.f32.mrf.mxu0 }
 0x3a1   :  { %7601 = vst [vmem:[#allocation21_spill] sm:$0xff] %v6697_v27 }
 0x3a2   :  { %v2433_v20 = vadd.f32 %v2432_v17, %v2344_v32 }
 0x3a3   :  { %2572 = vmatmul.bf16.gmra.mxu1 %v7569_v14  ;;  %2839 = vmatmul.bf16.gmra.mxu0 %v7569_v14 }
 0x3a4   :  { %3421 = vst [vmem:[%s7422_s2 + $0x520] sm:$0xff] %v2433_v20  ;;  %2661 = vmatmul.bf16.gmra.mxu2 %v7570_v12  ;;  %2750 = vmatmul.bf16.gmra.mxu3 %v4705_v44  ;;  %v4487_v20 = vld [vmem:[%s7420_s1 + $0x2d0] sm:$0xf0] }
 0x3a5   :  { %v4040_v6 = vor.u32 %v4487_v20, %v4039_v4  ;;  %v4260_v4 = vor.u32 %v4539_v41, %v4257_v45 }
 0x3a7   :  { %v2346_v35 = vpop.f32.mrf.mxu2  ;;  %v2435_v25 = vpop.f32.mrf.mxu3  ;;  %3081 = vmatpush.bf16.msrb.mxu3 %v4040_v6  ;;  %2903 = vmatpush.bf16.msrb.mxu1 %v4260_v4 }
 0x3a8   :  { %v2347_v17 = vadd.f32 %v2346_v35, %v2257_v38  ;;  %v2259_v32 = vpop.f32.mrf.mxu1  ;;  %v6718_v27 = vpop.f32.mrf.mxu0  ;;  %v4263_v38 = vld [vmem:[%s7420_s1 + $0x478] sm:$0xf] }
 0x3a9   :  { %7602 = vst [vmem:[#allocation20_spill] sm:$0xff] %v6718_v27  ;;  %v4264_v20 = vor.u32 %v4543_v16, %v4263_v38 }
 0x3aa   :  { %v2436_v14 = vadd.f32 %v2435_v25, %v2347_v17 }
 0x3ab   :  { %3170 = vmatpush.bf16.msrb.mxu0 %v4264_v20 }
 0x3ac   :  { %3428 = vst [vmem:[%s7422_s2 + $0x558] sm:$0xff] %v2436_v14 }
 0x3af   :  { %v2348_v6 = vpop.f32.mrf.mxu2  ;;  %v2437_v14 = vpop.f32.mrf.mxu3 }
 0x3b0   :  { %v2349_v35 = vadd.f32 %v2348_v6, %v2259_v32  ;;  %v2262_v25 = vpop.f32.mrf.mxu1  ;;  %v6735_v17 = vpop.f32.mrf.mxu0 }
 0x3b1   :  { %7603 = vst [vmem:[#allocation22_spill] sm:$0xff] %v6735_v17 }
 0x3b2   :  { %v2438_v27 = vadd.f32 %v2437_v14, %v2349_v35 }
 0x3b3   :  { %2577 = vmatmul.bf16.gmra.mxu1 %v7574_v61  ;;  %2844 = vmatmul.bf16.gmra.mxu0 %v7574_v61 }
 0x3b4   :  { %3435 = vst [vmem:[%s7422_s2 + $0x590] sm:$0xff] %v2438_v27  ;;  %2666 = vmatmul.bf16.gmra.mxu2 %v7575_v8  ;;  %2755 = vmatmul.bf16.gmra.mxu3 %v7573_v31 }
 0x3b7   :  { %v2351_v41 = vpop.f32.mrf.mxu2  ;;  %v2440_v45 = vpop.f32.mrf.mxu3 }
 0x3b8   :  { %v2352_v32 = vadd.f32 %v2351_v41, %v2262_v25  ;;  %v2264_v4 = vpop.f32.mrf.mxu1  ;;  %v6744_v38 = vpop.f32.mrf.mxu0  ;;  %v3787_v25 = vld [vmem:[%s7420_s1 + $0xc0] sm:$0xf]  ;;  %v4424_v41 = vld [vmem:[%s7420_s1 + $0xd8] sm:$0xf0] }
 0x3ba   :  { %v2441_v16 = vadd.f32 %v2440_v45, %v2352_v32  ;;  %v3788_v45 = vor.u32 %v4424_v41, %v3787_v25  ;;  %v4011_v32 = vld [vmem:[%s7420_s1 + $0x280] sm:$0xf]  ;;  %v4532_v25 = vld [vmem:[%s7420_s1 + $0x43c] sm:$0xf]  ;;  %v4229_v41 = vld [vmem:[%s7420_s1 + $0x454] sm:$0xf0] }
 0x3bc   :  { %3442 = vst [vmem:[%s7422_s2 + $0x5c8] sm:$0xff] %v2441_v16  ;;  %2993 = vmatpush.bf16.msrb.mxu2 %v3788_v45 }
 0x3bf   :  { %v2353_v20 = vpop.f32.mrf.mxu2  ;;  %v2442_v6 = vpop.f32.mrf.mxu3 }
 0x3c0   :  { %v2354_v14 = vadd.f32 %v2353_v20, %v2264_v4  ;;  %v2267_v35 = vpop.f32.mrf.mxu1  ;;  %v6749_v27 = vpop.f32.mrf.mxu0 }
 0x3c1   :  { %7604 = vst [vmem:[#allocation9_spill] sm:$0xff] %v6749_v27 }
 0x3c2   :  { %v2443_v17 = vadd.f32 %v2442_v6, %v2354_v14 }
 0x3c3   :  { %2582 = vmatmul.bf16.gmra.mxu1 %v7579_v50  ;;  %2849 = vmatmul.bf16.gmra.mxu0 %v7579_v50 }
 0x3c4   :  { %3449 = vst [vmem:[%s7422_s2 + $0x600] sm:$0xff] %v2443_v17  ;;  %2671 = vmatmul.bf16.gmra.mxu2 %v7580_v40  ;;  %2760 = vmatmul.bf16.gmra.mxu3 %v7578_v57  ;;  %v4480_v17 = vld [vmem:[%s7420_s1 + $0x298] sm:$0xf0] }
 0x3c5   :  { %v4012_v4 = vor.u32 %v4480_v17, %v4011_v32  ;;  %v4235_v32 = vld [vmem:[%s7420_s1 + $0x440] sm:$0xf]  ;;  %v4232_v17 = vor.u32 %v4532_v25, %v4229_v41 }
 0x3c7   :  { %v2356_v16 = vpop.f32.mrf.mxu2  ;;  %v2445_v20 = vpop.f32.mrf.mxu3  ;;  %3082 = vmatpush.bf16.msrb.mxu3 %v4012_v4  ;;  %2904 = vmatpush.bf16.msrb.mxu1 %v4232_v17 }
 0x3c8   :  { %v2357_v6 = vadd.f32 %v2356_v16, %v2267_v35  ;;  %v2269_v14 = vpop.f32.mrf.mxu1  ;;  %v6770_v27 = vpop.f32.mrf.mxu0  ;;  %v4536_v35 = vld [vmem:[%s7420_s1 + $0x458] sm:$0xf0] }
 0x3c9   :  { %7605 = vst [vmem:[#allocation23_spill] sm:$0xff] %v6770_v27  ;;  %v4236_v45 = vor.u32 %v4536_v35, %v4235_v32 }
 0x3ca   :  { %v2446_v50 = vadd.f32 %v2445_v20, %v2357_v6 }
 0x3cb   :  { %3171 = vmatpush.bf16.msrb.mxu0 %v4236_v45 }
 0x3cc   :  { %3456 = vst [vmem:[%s7422_s2 + $0x638] sm:$0xff] %v2446_v50 }
 0x3cf   :  { %v2358_v4 = vpop.f32.mrf.mxu2  ;;  %v2447_v16 = vpop.f32.mrf.mxu3 }
 0x3d0   :  { %v2359_v20 = vadd.f32 %v2358_v4, %v2269_v14  ;;  %v2272_v6 = vpop.f32.mrf.mxu1  ;;  %v6787_v27 = vpop.f32.mrf.mxu0 }
 0x3d2   :  { %v2448_v57 = vadd.f32 %v2447_v16, %v2359_v20 }
 0x3d3   :  { %2587 = vmatmul.bf16.gmra.mxu1 %v7583_v11  ;;  %2854 = vmatmul.bf16.gmra.mxu0 %v7583_v11 }
 0x3d4   :  { %3463 = vst [vmem:[%s7422_s2 + $0x670] sm:$0xff] %v2448_v57  ;;  %2676 = vmatmul.bf16.gmra.mxu2 %v7584_v15  ;;  %2765 = vmatmul.bf16.gmra.mxu3 %v7582_v36 }
 0x3d7   :  { %v2361_v50 = vpop.f32.mrf.mxu2  ;;  %v2450_v25 = vpop.f32.mrf.mxu3 }
 0x3d8   :  { %v2362_v41 = vadd.f32 %v2361_v50, %v2272_v6  ;;  %v2274_v14 = vpop.f32.mrf.mxu1  ;;  %v6796_v32 = vpop.f32.mrf.mxu0  ;;  %v3759_v6 = vld [vmem:[%s7420_s1 + $0x88] sm:$0xf]  ;;  %v4417_v50 = vld [vmem:[%s7420_s1 + $0xa0] sm:$0xf0] }
 0x3da   :  { %v2451_v17 = vadd.f32 %v2450_v25, %v2362_v41  ;;  %v3760_v25 = vor.u32 %v4417_v50, %v3759_v6  ;;  %v3983_v41 = vld [vmem:[%s7420_s1 + $0x248] sm:$0xf]  ;;  %v4525_v6 = vld [vmem:[%s7420_s1 + $0x404] sm:$0xf] }
 0x3db   :  { %v4529_v50 = vld [vmem:[%s7420_s1 + $0x420] sm:$0xf0] }
 0x3dc   :  { %3470 = vst [vmem:[%s7422_s2 + $0x6a8] sm:$0xff] %v2451_v17  ;;  %2994 = vmatpush.bf16.msrb.mxu2 %v3760_v25 }
 0x3df   :  { %v2363_v35 = vpop.f32.mrf.mxu2  ;;  %v2452_v45 = vpop.f32.mrf.mxu3 }
 0x3e0   :  { %v2364_v4 = vadd.f32 %v2363_v35, %v2274_v14  ;;  %v2553_v16 = vpop.f32.mrf.mxu1  ;;  %v2820_v57 = vpop.f32.mrf.mxu0  ;;  %v4473_v14 = vld [vmem:[%s7420_s1 + $0x260] sm:$0xf0] }
 0x3e1   :  { %v2554_v17 = vadd.f32 %v2553_v16, %v6385_v21  ;;  %v3984_v35 = vor.u32 %v4473_v14, %v3983_v41  ;;  %v4201_v21 = vld [vmem:[%s7420_s1 + $0x41c] sm:$0xf0] }
 0x3e2   :  { %v2453_v20 = vadd.f32 %v2452_v45, %v2364_v4  ;;  %v4204_v16 = vor.u32 %v4525_v6, %v4201_v21 }
 0x3e3   :  { %2592 = vmatmul.bf16.gmra.mxu1 %v7556_v2  ;;  %2859 = vmatmul.bf16.gmra.mxu0 %v7556_v2 }
 0x3e4   :  { %3477 = vst [vmem:[%s7422_s2 + $0x6e0] sm:$0xff] %v2453_v20  ;;  %2681 = vmatmul.bf16.gmra.mxu2 %v7585_v42  ;;  %2770 = vmatmul.bf16.gmra.mxu3 %v7555_v49 }
 0x3e5   :  { %3083 = vmatpush.bf16.msrb.mxu3 %v3984_v35  ;;  %2905 = vmatpush.bf16.msrb.mxu1 %v4204_v16 }
 0x3e7   :  { %v2642_v45 = vpop.f32.mrf.mxu2  ;;  %v2731_v4 = vpop.f32.mrf.mxu3 }
 0x3e8   :  { %v2643_v20 = vadd.f32 %v2642_v45, %v2554_v17  ;;  %v6821_v2 = vadd.f32 %v2820_v57, %v2731_v4  ;;  %v2555_v49 = vpop.f32.mrf.mxu1  ;;  %v2822_v42 = vpop.f32.mrf.mxu0  ;;  %v4207_v57 = vld [vmem:[%s7420_s1 + $0x408] sm:$0xf] }
 0x3e9   :  { %v4208_v25 = vor.u32 %v4529_v50, %v4207_v57  ;;  %v2556_v41 = vadd.f32 %v2555_v49, %v6406_v3 }
 0x3ea   :  { %3260 = vst [vmem:[%s7422_s2 + $0x20] sm:$0xff] %v2643_v20 }
 0x3eb   :  { %3172 = vmatpush.bf16.msrb.mxu0 %v4208_v25 }
 0x3ef   :  { %v2644_v14 = vpop.f32.mrf.mxu2  ;;  %v2733_v17 = vpop.f32.mrf.mxu3 }
 0x3f0   :  { %v2645_v35 = vadd.f32 %v2644_v14, %v2556_v41  ;;  %v6839_v45 = vadd.f32 %v2822_v42, %v2733_v17  ;;  %v2558_v4 = vpop.f32.mrf.mxu1  ;;  %v2825_v20 = vpop.f32.mrf.mxu0 }
 0x3f1   :  { %v2559_v49 = vadd.f32 %v2558_v4, %v6423_v9  ;;  %v7606_v4 = vld [vmem:[#allocation7_spill] sm:$0xff] }
 0x3f2   :  { %3268 = vst [vmem:[%s7422_s2 + $0x58] sm:$0xff] %v2645_v35 }
 0x3f3   :  { %2597 = vmatmul.bf16.gmra.mxu1 %v5395_v13  ;;  %2864 = vmatmul.bf16.gmra.mxu0 %v5395_v13 }
 0x3f4   :  { %2686 = vmatmul.bf16.gmra.mxu2 %v5399_v51  ;;  %2775 = vmatmul.bf16.gmra.mxu3 %v4848_v46 }
 0x3f7   :  { %v2647_v3 = vpop.f32.mrf.mxu2  ;;  %v2736_v6 = vpop.f32.mrf.mxu3 }
 0x3f8   :  { %v2648_v42 = vadd.f32 %v2647_v3, %v2559_v49  ;;  %v6849_v21 = vadd.f32 %v2825_v20, %v2736_v6  ;;  %v2560_v16 = vpop.f32.mrf.mxu1  ;;  %v2827_v57 = vpop.f32.mrf.mxu0  ;;  %v4410_v20 = vld [vmem:[%s7420_s1 + $0x68] sm:$0xf0]  ;;  %v3955_v49 = vld [vmem:[%s7420_s1 + $0x210] sm:$0xf] }
 0x3f9   :  { %v2561_v50 = vadd.f32 %v2560_v16, %v6432_v53  ;;  %v3731_v53 = vld [vmem:[%s7420_s1 + $0x50] sm:$0xf]  ;;  %v4466_v6 = vld [vmem:[%s7420_s1 + $0x228] sm:$0xf0] }
 0x3fa   :  { %3275 = vst [vmem:[%s7422_s2 + $0x90] sm:$0xff] %v2648_v42  ;;  %v3732_v3 = vor.u32 %v4410_v20, %v3731_v53  ;;  %v7607_v42 = vld [vmem:[#allocation25_spill] sm:$0xff]  ;;  %v4518_v53 = vld [vmem:[%s7420_s1 + $0x3cc] sm:$0xf] }
 0x3fc   :  { %2995 = vmatpush.bf16.msrb.mxu2 %v3732_v3 }
 0x3ff   :  { %v2649_v25 = vpop.f32.mrf.mxu2  ;;  %v2738_v41 = vpop.f32.mrf.mxu3 }
 0x400   :  { %v2650_v14 = vadd.f32 %v2649_v25, %v2561_v50  ;;  %v6855_v17 = vadd.f32 %v2827_v57, %v2738_v41  ;;  %v2563_v35 = vpop.f32.mrf.mxu1  ;;  %v2830_v9 = vpop.f32.mrf.mxu0  ;;  %v3956_v57 = vor.u32 %v4466_v6, %v3955_v49  ;;  %v4522_v49 = vld [vmem:[%s7420_s1 + $0x3e8] sm:$0xf0]  ;;  %v7608_v6 = vld [vmem:[#allocation26_spill] sm:$0xff] }
 0x401   :  { %v2564_v16 = vadd.f32 %v2563_v35, %v7607_v42  ;;  %v4173_v35 = vld [vmem:[%s7420_s1 + $0x3e4] sm:$0xf0] }
 0x402   :  { %3282 = vst [vmem:[%s7422_s2 + $0xc8] sm:$0xff] %v2650_v14  ;;  %3084 = vmatpush.bf16.msrb.mxu3 %v3956_v57  ;;  %v4176_v20 = vor.u32 %v4518_v53, %v4173_v35 }
 0x403   :  { %2602 = vmatmul.bf16.gmra.mxu1 %v7560_v52  ;;  %2869 = vmatmul.bf16.gmra.mxu0 %v7560_v52 }
 0x404   :  { %2691 = vmatmul.bf16.gmra.mxu2 %v7558_v18  ;;  %2780 = vmatmul.bf16.gmra.mxu3 %v7606_v4 }
 0x405   :  { %2906 = vmatpush.bf16.msrb.mxu1 %v4176_v20 }
 0x407   :  { %v2652_v50 = vpop.f32.mrf.mxu2  ;;  %v2741_v25 = vpop.f32.mrf.mxu3 }
 0x408   :  { %v2653_v41 = vadd.f32 %v2652_v50, %v2564_v16  ;;  %v6877_v14 = vadd.f32 %v2830_v9, %v2741_v25  ;;  %v2565_v52 = vpop.f32.mrf.mxu1  ;;  %v2832_v4 = vpop.f32.mrf.mxu0  ;;  %v4179_v9 = vld [vmem:[%s7420_s1 + $0x3d0] sm:$0xf] }
 0x409   :  { %v4180_v3 = vor.u32 %v4522_v49, %v4179_v9  ;;  %v2566_v42 = vadd.f32 %v2565_v52, %v7608_v6  ;;  %v7609_v52 = vld [vmem:[#allocation29_spill] sm:$0xff] }
 0x40a   :  { %3289 = vst [vmem:[%s7422_s2 + $0x100] sm:$0xff] %v2653_v41 }
 0x40b   :  { %3173 = vmatpush.bf16.msrb.mxu0 %v4180_v3 }
 0x40f   :  { %v2654_v16 = vpop.f32.mrf.mxu2  ;;  %v2743_v57 = vpop.f32.mrf.mxu3 }
 0x410   :  { %v2655_v50 = vadd.f32 %v2654_v16, %v2566_v42  ;;  %v6895_v25 = vadd.f32 %v2832_v4, %v2743_v57  ;;  %v2568_v41 = vpop.f32.mrf.mxu1  ;;  %v2835_v53 = vpop.f32.mrf.mxu0 }
 0x411   :  { %v2569_v35 = vadd.f32 %v2568_v41, %v7609_v52  ;;  %v4403_v52 = vld [vmem:[%s7420_s1 + $0x30] sm:$0xf0] }
 0x412   :  { %3296 = vst [vmem:[%s7422_s2 + $0x138] sm:$0xff] %v2655_v50 }
 0x413   :  { %2607 = vmatmul.bf16.gmra.mxu1 %v5483_v54  ;;  %2874 = vmatmul.bf16.gmra.mxu0 %v5483_v54 }
 0x414   :  { %2696 = vmatmul.bf16.gmra.mxu2 %v5487_v48  ;;  %2785 = vmatmul.bf16.gmra.mxu3 %v5004_v62 }
 0x417   :  { %v2657_v20 = vpop.f32.mrf.mxu2  ;;  %v2746_v9 = vpop.f32.mrf.mxu3 }
 0x418   :  { %v2658_v4 = vadd.f32 %v2657_v20, %v2569_v35  ;;  %v6905_v49 = vadd.f32 %v2835_v53, %v2746_v9  ;;  %v2570_v3 = vpop.f32.mrf.mxu1  ;;  %v2837_v6 = vpop.f32.mrf.mxu0  ;;  %v7610_v53 = vld [vmem:[#allocation3_spill] sm:$0xff]  ;;  %v3927_v35 = vld [vmem:[%s7420_s1 + $0x1d8] sm:$0xf]  ;;  %v4459_v9 = vld [vmem:[%s7420_s1 + $0x1f0] sm:$0xf0] }
 0x419   :  { %v2571_v42 = vadd.f32 %v2570_v3, %v6484_v30  ;;  %v3703_v30 = vld [vmem:[%s7420_s1 + $0x18] sm:$0xf] }
 0x41a   :  { %3303 = vst [vmem:[%s7422_s2 + $0x170] sm:$0xff] %v2658_v4  ;;  %v3704_v20 = vor.u32 %v4403_v52, %v3703_v30  ;;  %v7611_v4 = vld [vmem:[#allocation32_spill] sm:$0xff] }
 0x41b   :  { %v4511_v30 = vld [vmem:[%s7420_s1 + $0x394] sm:$0xf] }
 0x41c   :  { %2996 = vmatpush.bf16.msrb.mxu2 %v3704_v20 }
 0x41f   :  { %v2659_v16 = vpop.f32.mrf.mxu2  ;;  %v2748_v57 = vpop.f32.mrf.mxu3 }
 0x420   :  { %v2660_v50 = vadd.f32 %v2659_v16, %v2571_v42  ;;  %v6911_v54 = vadd.f32 %v2837_v6, %v2748_v57  ;;  %v2573_v62 = vpop.f32.mrf.mxu1  ;;  %v2840_v41 = vpop.f32.mrf.mxu0  ;;  %v3928_v6 = vor.u32 %v4459_v9, %v3927_v35  ;;  %v4515_v35 = vld [vmem:[%s7420_s1 + $0x3b0] sm:$0xf0]  ;;  %v7612_v9 = vld [vmem:[#allocation31_spill] sm:$0xff] }
 0x421   :  { %v2574_v3 = vadd.f32 %v2573_v62, %v7611_v4  ;;  %v4145_v62 = vld [vmem:[%s7420_s1 + $0x3ac] sm:$0xf0] }
 0x422   :  { %3310 = vst [vmem:[%s7422_s2 + $0x1a8] sm:$0xff] %v2660_v50  ;;  %3085 = vmatpush.bf16.msrb.mxu3 %v3928_v6  ;;  %v4148_v52 = vor.u32 %v4511_v30, %v4145_v62 }
 0x423   :  { %2612 = vmatmul.bf16.gmra.mxu1 %v7564_v24  ;;  %2879 = vmatmul.bf16.gmra.mxu0 %v7564_v24 }
 0x424   :  { %2701 = vmatmul.bf16.gmra.mxu2 %v7562_v34  ;;  %2790 = vmatmul.bf16.gmra.mxu3 %v7610_v53 }
 0x425   :  { %2907 = vmatpush.bf16.msrb.mxu1 %v4148_v52 }
 0x427   :  { %v2662_v42 = vpop.f32.mrf.mxu2  ;;  %v2751_v16 = vpop.f32.mrf.mxu3 }
 0x428   :  { %v2663_v57 = vadd.f32 %v2662_v42, %v2574_v3  ;;  %v6933_v50 = vadd.f32 %v2840_v41, %v2751_v16  ;;  %v2575_v24 = vpop.f32.mrf.mxu1  ;;  %v2842_v53 = vpop.f32.mrf.mxu0  ;;  %v4151_v41 = vld [vmem:[%s7420_s1 + $0x398] sm:$0xf] }
 0x429   :  { %v4152_v20 = vor.u32 %v4515_v35, %v4151_v41  ;;  %v2576_v4 = vadd.f32 %v2575_v24, %v7612_v9  ;;  %v7613_v24 = vld [vmem:[#allocation36_spill] sm:$0xff] }
 0x42a   :  { %3317 = vst [vmem:[%s7422_s2 + $0x1e0] sm:$0xff] %v2663_v57 }
 0x42b   :  { %3174 = vmatpush.bf16.msrb.mxu0 %v4152_v20 }
 0x42f   :  { %v2664_v3 = vpop.f32.mrf.mxu2  ;;  %v2753_v6 = vpop.f32.mrf.mxu3 }
 0x430   :  { %v2665_v42 = vadd.f32 %v2664_v3, %v2576_v4  ;;  %v6951_v16 = vadd.f32 %v2842_v53, %v2753_v6  ;;  %v2578_v57 = vpop.f32.mrf.mxu1  ;;  %v2845_v30 = vpop.f32.mrf.mxu0 }
 0x431   :  { %v2579_v62 = vadd.f32 %v2578_v57, %v7613_v24 }
 0x432   :  { %3324 = vst [vmem:[%s7422_s2 + $0x218] sm:$0xff] %v2665_v42 }
 0x433   :  { %2617 = vmatmul.bf16.gmra.mxu1 %v5571_v1  ;;  %2884 = vmatmul.bf16.gmra.mxu0 %v5571_v1 }
 0x434   :  { %2706 = vmatmul.bf16.gmra.mxu2 %v5575_v10  ;;  %2795 = vmatmul.bf16.gmra.mxu3 %v4850_v47 }
 0x437   :  { %v2667_v52 = vpop.f32.mrf.mxu2  ;;  %v2756_v41 = vpop.f32.mrf.mxu3 }
 0x438   :  { %v2668_v53 = vadd.f32 %v2667_v52, %v2579_v62  ;;  %v6961_v35 = vadd.f32 %v2845_v30, %v2756_v41  ;;  %v2580_v20 = vpop.f32.mrf.mxu1  ;;  %v2847_v9 = vpop.f32.mrf.mxu0  ;;  %v7614_v30 = vld [vmem:[#allocation8_spill] sm:$0xff] }
 0x439   :  { %v2581_v4 = vadd.f32 %v2580_v20, %v6536_v26  ;;  %v7615_v26 = vld [vmem:[#allocation35_spill] sm:$0xff] }
 0x43a   :  { %3331 = vst [vmem:[%s7422_s2 + $0x250] sm:$0xff] %v2668_v53 }
 0x43f   :  { %v2669_v3 = vpop.f32.mrf.mxu2  ;;  %v2758_v6 = vpop.f32.mrf.mxu3 }
 0x440   :  { %v2670_v42 = vadd.f32 %v2669_v3, %v2581_v4  ;;  %v6967_v1 = vadd.f32 %v2847_v9, %v2758_v6  ;;  %v2583_v47 = vpop.f32.mrf.mxu1  ;;  %v2850_v57 = vpop.f32.mrf.mxu0  ;;  %v7616_v4 = vld [vmem:[#allocation40_spill] sm:$0xff] }
 0x441   :  { %v2584_v24 = vadd.f32 %v2583_v47, %v7615_v26 }
 0x442   :  { %3338 = vst [vmem:[%s7422_s2 + $0x288] sm:$0xff] %v2670_v42 }
 0x443   :  { %2622 = vmatmul.bf16.gmra.mxu1 %v7568_v7  ;;  %2889 = vmatmul.bf16.gmra.mxu0 %v7568_v7 }
 0x444   :  { %2711 = vmatmul.bf16.gmra.mxu2 %v7566_v19  ;;  %2800 = vmatmul.bf16.gmra.mxu3 %v7614_v30 }
 0x447   :  { %v2672_v62 = vpop.f32.mrf.mxu2  ;;  %v2761_v52 = vpop.f32.mrf.mxu3 }
 0x448   :  { %v2673_v41 = vadd.f32 %v2672_v62, %v2584_v24  ;;  %v6977_v53 = vadd.f32 %v2850_v57, %v2761_v52  ;;  %v2585_v20 = vpop.f32.mrf.mxu1  ;;  %v2852_v9 = vpop.f32.mrf.mxu0  ;;  %v7617_v57 = vld [vmem:[#allocation14_spill] sm:$0xff] }
 0x449   :  { %v2586_v3 = vadd.f32 %v2585_v20, %v7616_v4 }
 0x44a   :  { %3345 = vst [vmem:[%s7422_s2 + $0x2c0] sm:$0xff] %v2673_v41 }
 0x44f   :  { %v2674_v6 = vpop.f32.mrf.mxu2  ;;  %v2763_v42 = vpop.f32.mrf.mxu3 }
 0x450   :  { %v2675_v7 = vadd.f32 %v2674_v6, %v2586_v3  ;;  %v6983_v19 = vadd.f32 %v2852_v9, %v2763_v42  ;;  %v2588_v30 = vpop.f32.mrf.mxu1  ;;  %v2855_v47 = vpop.f32.mrf.mxu0 }
 0x451   :  { %v2589_v26 = vadd.f32 %v2588_v30, %v7617_v57 }
 0x452   :  { %3352 = vst [vmem:[%s7422_s2 + $0x2f8] sm:$0xff] %v2675_v7 }
 0x453   :  { %2627 = vmatmul.bf16.gmra.mxu1 %v5659_v55  ;;  %2894 = vmatmul.bf16.gmra.mxu0 %v5659_v55 }
 0x454   :  { %2716 = vmatmul.bf16.gmra.mxu2 %v5663_v56  ;;  %2805 = vmatmul.bf16.gmra.mxu3 %v5006_v63 }
 0x457   :  { %v2677_v24 = vpop.f32.mrf.mxu2  ;;  %v2766_v62 = vpop.f32.mrf.mxu3 }
 0x458   :  { %v2678_v52 = vadd.f32 %v2677_v24, %v2589_v26  ;;  %v6993_v41 = vadd.f32 %v2855_v47, %v2766_v62  ;;  %v2590_v20 = vpop.f32.mrf.mxu1  ;;  %v2857_v9 = vpop.f32.mrf.mxu0  ;;  %v7618_v47 = vld [vmem:[#allocation11_spill] sm:$0xff] }
 0x459   :  { %v2591_v7 = vadd.f32 %v2590_v20, %v6588_v29  ;;  %v7619_v29 = vld [vmem:[#allocation42_spill] sm:$0xff] }
 0x45a   :  { %3359 = vst [vmem:[%s7422_s2 + $0x330] sm:$0xff] %v2678_v52 }
 0x45f   :  { %v2679_v4 = vpop.f32.mrf.mxu2  ;;  %v2768_v3 = vpop.f32.mrf.mxu3 }
 0x460   :  { %v2680_v6 = vadd.f32 %v2679_v4, %v2591_v7  ;;  %v6999_v42 = vadd.f32 %v2857_v9, %v2768_v3  ;;  %v2593_v55 = vpop.f32.mrf.mxu1  ;;  %v2860_v30 = vpop.f32.mrf.mxu0  ;;  %v7620_v7 = vld [vmem:[#allocation17_spill] sm:$0xff] }
 0x461   :  { %v2594_v57 = vadd.f32 %v2593_v55, %v7619_v29 }
 0x462   :  { %3366 = vst [vmem:[%s7422_s2 + $0x368] sm:$0xff] %v2680_v6 }
 0x463   :  { %2908 = vmatmul.bf16.vlgmr.msrb.gmra.mxu1 %v5026_v5  ;;  %3175 = vmatmul.bf16.vlgmr.msrb.gmra.mxu0 %v5026_v5 }
 0x464   :  { %2997 = vmatmul.bf16.vlgmr.msrb.gmra.mxu2 %v4703_v43  ;;  %3086 = vmatmul.bf16.vlgmr.msrb.gmra.mxu3 %v7618_v47 }
 0x467   :  { %v2682_v26 = vpop.f32.mrf.mxu2  ;;  %v2771_v24 = vpop.f32.mrf.mxu3 }
 0x468   :  { %v2683_v62 = vadd.f32 %v2682_v26, %v2594_v57  ;;  %v7009_v52 = vadd.f32 %v2860_v30, %v2771_v24  ;;  %v2595_v20 = vpop.f32.mrf.mxu1  ;;  %v2862_v9 = vpop.f32.mrf.mxu0  ;;  %v7621_v30 = vld [vmem:[#allocation4_spill] sm:$0xff] }
 0x469   :  { %v2596_v4 = vadd.f32 %v2595_v20, %v7620_v7 }
 0x46a   :  { %3373 = vst [vmem:[%s7422_s2 + $0x3a0] sm:$0xff] %v2683_v62 }
 0x46f   :  { %v2684_v5 = vpop.f32.mrf.mxu2  ;;  %v2773_v3 = vpop.f32.mrf.mxu3 }
 0x470   :  { %v2685_v43 = vadd.f32 %v2684_v5, %v2596_v4  ;;  %v7015_v6 = vadd.f32 %v2862_v9, %v2773_v3  ;;  %v2598_v47 = vpop.f32.mrf.mxu1  ;;  %v2865_v55 = vpop.f32.mrf.mxu0 }
 0x471   :  { %v2599_v29 = vadd.f32 %v2598_v47, %v7621_v30 }
 0x472   :  { %3380 = vst [vmem:[%s7422_s2 + $0x3d8] sm:$0xff] %v2685_v43  ;;  %v7622_v43 = vld [vmem:[#allocation12_spill] sm:$0xff] }
 0x473   :  { %2913 = vmatmul.bf16.gmra.mxu1 %v5070_v23  ;;  %3180 = vmatmul.bf16.gmra.mxu0 %v5070_v23 }
 0x474   :  { %3002 = vmatmul.bf16.gmra.mxu2 %v4835_v39  ;;  %3091 = vmatmul.bf16.gmra.mxu3 %v5068_v22 }
 0x477   :  { %v2687_v57 = vpop.f32.mrf.mxu2  ;;  %v2776_v26 = vpop.f32.mrf.mxu3 }
 0x478   :  { %v2688_v24 = vadd.f32 %v2687_v57, %v2599_v29  ;;  %v7025_v62 = vadd.f32 %v2865_v55, %v2776_v26  ;;  %v2600_v20 = vpop.f32.mrf.mxu1  ;;  %v2867_v9 = vpop.f32.mrf.mxu0 }
 0x479   :  { %v2601_v7 = vadd.f32 %v2600_v20, %v6640_v37  ;;  %v7623_v37 = vld [vmem:[#allocation15_spill] sm:$0xff]  ;;  %v7624_v20 = vld [vmem:[#allocation16_spill] sm:$0xff] }
 0x47a   :  { %3387 = vst [vmem:[%s7422_s2 + $0x410] sm:$0xff] %v2688_v24 }
 0x47f   :  { %v2689_v23 = vpop.f32.mrf.mxu2  ;;  %v2778_v4 = vpop.f32.mrf.mxu3 }
 0x480   :  { %v2690_v39 = vadd.f32 %v2689_v23, %v2601_v7  ;;  %v7031_v5 = vadd.f32 %v2867_v9, %v2778_v4  ;;  %v2603_v22 = vpop.f32.mrf.mxu1  ;;  %v2870_v3 = vpop.f32.mrf.mxu0 }
 0x481   :  { %v2604_v47 = vadd.f32 %v2603_v22, %v7623_v37  ;;  %v7625_v22 = vld [vmem:[#allocation18_spill] sm:$0xff] }
 0x482   :  { %3394 = vst [vmem:[%s7422_s2 + $0x448] sm:$0xff] %v2690_v39 }
 0x483   :  { %2918 = vmatmul.bf16.gmra.mxu1 %v5090_v33  ;;  %3185 = vmatmul.bf16.gmra.mxu0 %v5090_v33 }
 0x484   :  { %3007 = vmatmul.bf16.gmra.mxu2 %v4940_v28  ;;  %3096 = vmatmul.bf16.gmra.mxu3 %v7622_v43 }
 0x487   :  { %v2692_v55 = vpop.f32.mrf.mxu2  ;;  %v2781_v30 = vpop.f32.mrf.mxu3 }
 0x488   :  { %v2693_v29 = vadd.f32 %v2692_v55, %v2604_v47  ;;  %v7041_v57 = vadd.f32 %v2870_v3, %v2781_v30  ;;  %v2605_v26 = vpop.f32.mrf.mxu1  ;;  %v2872_v24 = vpop.f32.mrf.mxu0 }
 0x489   :  { %v2606_v9 = vadd.f32 %v2605_v26, %v7624_v20 }
 0x48a   :  { %3401 = vst [vmem:[%s7422_s2 + $0x480] sm:$0xff] %v2693_v29 }
 0x48f   :  { %v2694_v33 = vpop.f32.mrf.mxu2  ;;  %v2783_v7 = vpop.f32.mrf.mxu3 }
 0x490   :  { %v2695_v28 = vadd.f32 %v2694_v33, %v2606_v9  ;;  %v7047_v23 = vadd.f32 %v2872_v24, %v2783_v7  ;;  %v2608_v4 = vpop.f32.mrf.mxu1  ;;  %v2875_v39 = vpop.f32.mrf.mxu0  ;;  %v7626_v33 = vld [vmem:[#allocation13_spill] sm:$0xff] }
 0x491   :  { %v2609_v3 = vadd.f32 %v2608_v4, %v7625_v22 }
 0x492   :  { %3408 = vst [vmem:[%s7422_s2 + $0x4b8] sm:$0xff] %v2695_v28 }
 0x493   :  { %2923 = vmatmul.bf16.gmra.mxu1 %v5134_v59  ;;  %3190 = vmatmul.bf16.gmra.mxu0 %v5134_v59 }
 0x494   :  { %3012 = vmatmul.bf16.gmra.mxu2 %v5000_v60  ;;  %3101 = vmatmul.bf16.gmra.mxu3 %v5132_v58 }
 0x497   :  { %v2697_v43 = vpop.f32.mrf.mxu2  ;;  %v2786_v37 = vpop.f32.mrf.mxu3 }
 0x498   :  { %v2698_v47 = vadd.f32 %v2697_v43, %v2609_v3  ;;  %v7057_v55 = vadd.f32 %v2875_v39, %v2786_v37  ;;  %v2610_v30 = vpop.f32.mrf.mxu1  ;;  %v2877_v29 = vpop.f32.mrf.mxu0  ;;  %v7628_v37 = vld [vmem:[#allocation20_spill] sm:$0xff] }
 0x499   :  { %v2611_v26 = vadd.f32 %v2610_v30, %v6692_v0  ;;  %v7627_v0 = vld [vmem:[#allocation21_spill] sm:$0xff] }
 0x49a   :  { %3415 = vst [vmem:[%s7422_s2 + $0x4f0] sm:$0xff] %v2698_v47 }
 0x49f   :  { %v2699_v59 = vpop.f32.mrf.mxu2  ;;  %v2788_v24 = vpop.f32.mrf.mxu3 }
 0x4a0   :  { %v2700_v60 = vadd.f32 %v2699_v59, %v2611_v26  ;;  %v7063_v20 = vadd.f32 %v2877_v29, %v2788_v24  ;;  %v2613_v58 = vpop.f32.mrf.mxu1  ;;  %v2880_v9 = vpop.f32.mrf.mxu0  ;;  %v7629_v24 = vld [vmem:[#allocation22_spill] sm:$0xff] }
 0x4a1   :  { %v2614_v7 = vadd.f32 %v2613_v58, %v7627_v0 }
 0x4a2   :  { %3422 = vst [vmem:[%s7422_s2 + $0x528] sm:$0xff] %v2700_v60 }
 0x4a3   :  { %2928 = vmatmul.bf16.gmra.mxu1 %v7570_v12  ;;  %3195 = vmatmul.bf16.gmra.mxu0 %v7570_v12 }
 0x4a4   :  { %3017 = vmatmul.bf16.gmra.mxu2 %v4705_v44  ;;  %3106 = vmatmul.bf16.gmra.mxu3 %v7626_v33 }
 0x4a7   :  { %v2702_v28 = vpop.f32.mrf.mxu2  ;;  %v2791_v4 = vpop.f32.mrf.mxu3 }
 0x4a8   :  { %v2703_v39 = vadd.f32 %v2702_v28, %v2614_v7  ;;  %v7073_v22 = vadd.f32 %v2880_v9, %v2791_v4  ;;  %v2615_v3 = vpop.f32.mrf.mxu1  ;;  %v2882_v43 = vpop.f32.mrf.mxu0 }
 0x4a9   :  { %v2616_v47 = vadd.f32 %v2615_v3, %v7628_v37  ;;  %v7630_v37 = vld [vmem:[#allocation6_spill] sm:$0xff] }
 0x4aa   :  { %3429 = vst [vmem:[%s7422_s2 + $0x560] sm:$0xff] %v2703_v39 }
 0x4af   :  { %v2704_v12 = vpop.f32.mrf.mxu2  ;;  %v2793_v30 = vpop.f32.mrf.mxu3 }
 0x4b0   :  { %v2705_v44 = vadd.f32 %v2704_v12, %v2616_v47  ;;  %v7079_v29 = vadd.f32 %v2882_v43, %v2793_v30  ;;  %v2618_v26 = vpop.f32.mrf.mxu1  ;;  %v2885_v59 = vpop.f32.mrf.mxu0  ;;  %v7631_v47 = vld [vmem:[#allocation19_spill] sm:$0xff] }
 0x4b1   :  { %v2619_v60 = vadd.f32 %v2618_v26, %v7629_v24 }
 0x4b2   :  { %3436 = vst [vmem:[%s7422_s2 + $0x598] sm:$0xff] %v2705_v44 }
 0x4b3   :  { %2933 = vmatmul.bf16.gmra.mxu1 %v7575_v8  ;;  %3200 = vmatmul.bf16.gmra.mxu0 %v7575_v8 }
 0x4b4   :  { %3022 = vmatmul.bf16.gmra.mxu2 %v7573_v31  ;;  %3111 = vmatmul.bf16.gmra.mxu3 %v7574_v61 }
 0x4b7   :  { %v2707_v58 = vpop.f32.mrf.mxu2  ;;  %v2796_v9 = vpop.f32.mrf.mxu3 }
 0x4b8   :  { %v2708_v33 = vadd.f32 %v2707_v58, %v2619_v60  ;;  %v7089_v0 = vadd.f32 %v2885_v59, %v2796_v9  ;;  %v2620_v7 = vpop.f32.mrf.mxu1  ;;  %v2887_v28 = vpop.f32.mrf.mxu0  ;;  %v7633_v58 = vld [vmem:[#allocation23_spill] sm:$0xff] }
 0x4b9   :  { %v2621_v4 = vadd.f32 %v2620_v7, %v6744_v38  ;;  %v7632_v38 = vld [vmem:[#allocation9_spill] sm:$0xff] }
 0x4ba   :  { %3443 = vst [vmem:[%s7422_s2 + $0x5d0] sm:$0xff] %v2708_v33 }
 0x4bf   :  { %v2709_v8 = vpop.f32.mrf.mxu2  ;;  %v2798_v39 = vpop.f32.mrf.mxu3 }
 0x4c0   :  { %v2710_v31 = vadd.f32 %v2709_v8, %v2621_v4  ;;  %v7095_v3 = vadd.f32 %v2887_v28, %v2798_v39  ;;  %v2623_v61 = vpop.f32.mrf.mxu1  ;;  %v2890_v43 = vpop.f32.mrf.mxu0 }
 0x4c1   :  { %v2624_v12 = vadd.f32 %v2623_v61, %v7632_v38 }
 0x4c2   :  { %3450 = vst [vmem:[%s7422_s2 + $0x608] sm:$0xff] %v2710_v31 }
 0x4c3   :  { %2938 = vmatmul.bf16.gmra.mxu1 %v7580_v40  ;;  %3205 = vmatmul.bf16.gmra.mxu0 %v7580_v40 }
 0x4c4   :  { %3027 = vmatmul.bf16.gmra.mxu2 %v7630_v37  ;;  %3116 = vmatmul.bf16.gmra.mxu3 %v7631_v47 }
 0x4c7   :  { %v2712_v30 = vpop.f32.mrf.mxu2  ;;  %v2801_v44 = vpop.f32.mrf.mxu3 }
 0x4c8   :  { %v2713_v26 = vadd.f32 %v2712_v30, %v2624_v12  ;;  %v7105_v59 = vadd.f32 %v2890_v43, %v2801_v44  ;;  %v2625_v24 = vpop.f32.mrf.mxu1  ;;  %v2892_v60 = vpop.f32.mrf.mxu0 }
 0x4c9   :  { %v2626_v9 = vadd.f32 %v2625_v24, %v7633_v58  ;;  %v7634_v24 = vld [vmem:[#allocation28_spill] sm:$0xff] }
 0x4ca   :  { %3457 = vst [vmem:[%s7422_s2 + $0x640] sm:$0xff] %v2713_v26 }
 0x4cf   :  { %v2714_v40 = vpop.f32.mrf.mxu2  ;;  %v2803_v33 = vpop.f32.mrf.mxu3 }
 0x4d0   :  { %v2715_v7 = vadd.f32 %v2714_v40, %v2626_v9  ;;  %v7111_v28 = vadd.f32 %v2892_v60, %v2803_v33  ;;  %v2628_v4 = vpop.f32.mrf.mxu1  ;;  %v2895_v8 = vpop.f32.mrf.mxu0  ;;  %v7636_v60 = vld [vmem:[#allocation27_spill] sm:$0xff] }
 0x4d1   :  { %v2629_v39 = vadd.f32 %v2628_v4, %v6787_v27 }
 0x4d2   :  { %3464 = vst [vmem:[%s7422_s2 + $0x678] sm:$0xff] %v2715_v7 }
 0x4d3   :  { %2943 = vmatmul.bf16.gmra.mxu1 %v7584_v15  ;;  %3210 = vmatmul.bf16.gmra.mxu0 %v7584_v15 }
 0x4d4   :  { %3032 = vmatmul.bf16.gmra.mxu2 %v7582_v36  ;;  %3121 = vmatmul.bf16.gmra.mxu3 %v7583_v11 }
 0x4d7   :  { %v2717_v31 = vpop.f32.mrf.mxu2  ;;  %v2806_v61 = vpop.f32.mrf.mxu3 }
 0x4d8   :  { %v2718_v43 = vadd.f32 %v2717_v31, %v2629_v39  ;;  %v7121_v37 = vadd.f32 %v2895_v8, %v2806_v61  ;;  %v2630_v47 = vpop.f32.mrf.mxu1  ;;  %v2897_v38 = vpop.f32.mrf.mxu0 }
 0x4d9   :  { %v2631_v12 = vadd.f32 %v2630_v47, %v6796_v32  ;;  %v7635_v32 = vld [vmem:[#allocation2_spill] sm:$0xff] }
 0x4da   :  { %3471 = vst [vmem:[%s7422_s2 + $0x6b0] sm:$0xff] %v2718_v43 }
 0x4df   :  { %v2719_v15 = vpop.f32.mrf.mxu2  ;;  %v2808_v30 = vpop.f32.mrf.mxu3 }
 0x4e0   :  { %v2720_v36 = vadd.f32 %v2719_v15, %v2631_v12  ;;  %v7127_v44 = vadd.f32 %v2897_v38, %v2808_v30  ;;  %v2909_v11 = vpop.f32.mrf.mxu1  ;;  %v3176_v27 = vpop.f32.mrf.mxu0 }
 0x4e1   :  { %v2910_v26 = vadd.f32 %v2909_v11, %v6821_v2 }
 0x4e2   :  { %3478 = vst [vmem:[%s7422_s2 + $0x6e8] sm:$0xff] %v2720_v36 }
 0x4e3   :  { %3261 = vst [vmem:[%s7422_s2 + $0x28] sm:$0xff] %v2910_v26  ;;  %2948 = vmatmul.bf16.gmra.mxu1 %v7634_v24  ;;  %3215 = vmatmul.bf16.gmra.mxu0 %v7634_v24 }
 0x4e4   :  { %3037 = vmatmul.bf16.gmra.mxu2 %v7635_v32  ;;  %3126 = vmatmul.bf16.gmra.mxu3 %v7636_v60  ;;  %v7638_v60 = vld [vmem:[#allocation30_spill] sm:$0xff] }
 0x4e7   :  { %v2998_v58 = vpop.f32.mrf.mxu2  ;;  %v3087_v9 = vpop.f32.mrf.mxu3 }
 0x4e8   :  { %v3088_v40 = vadd.f32 %v3087_v9, %v2998_v58  ;;  %v2911_v2 = vpop.f32.mrf.mxu1  ;;  %v3178_v33 = vpop.f32.mrf.mxu0 }
 0x4e9   :  { %v2912_v7 = vadd.f32 %v2911_v2, %v6839_v45 }
 0x4ea   :  { %v3177_v4 = vadd.f32 %v3176_v27, %v3088_v40 }
 0x4eb   :  { %3269 = vst [vmem:[%s7422_s2 + $0x60] sm:$0xff] %v2912_v7 }
 0x4ec   :  { %3263 = vst.msk [vmem:[%s7422_s2 + $0x30] sm:$0xff] %vm3262_vm0, %v3177_v4 }
 0x4ef   :  { %v3000_v8 = vpop.f32.mrf.mxu2  ;;  %v3089_v39 = vpop.f32.mrf.mxu3 }
 0x4f0   :  { %v3090_v31 = vadd.f32 %v3089_v39, %v3000_v8  ;;  %v2914_v61 = vpop.f32.mrf.mxu1  ;;  %v3181_v43 = vpop.f32.mrf.mxu0 }
 0x4f1   :  { %v2915_v47 = vadd.f32 %v2914_v61, %v6849_v21 }
 0x4f2   :  { %v3179_v38 = vadd.f32 %v3178_v33, %v3090_v31 }
 0x4f3   :  { %3276 = vst [vmem:[%s7422_s2 + $0x98] sm:$0xff] %v2915_v47  ;;  %2953 = vmatmul.bf16.gmra.mxu1 %v5399_v51  ;;  %3220 = vmatmul.bf16.gmra.mxu0 %v5399_v51  ;;  %v7640_v47 = vld [vmem:[#allocation33_spill] sm:$0xff] }
 0x4f4   :  { %3270 = vst.msk [vmem:[%s7422_s2 + $0x68] sm:$0xff] %vm3262_vm0, %v3179_v38  ;;  %3042 = vmatmul.bf16.gmra.mxu2 %v4848_v46  ;;  %3131 = vmatmul.bf16.gmra.mxu3 %v5395_v13 }
 0x4f7   :  { %v3003_v45 = vpop.f32.mrf.mxu2  ;;  %v3092_v21 = vpop.f32.mrf.mxu3 }
 0x4f8   :  { %v3093_v12 = vadd.f32 %v3092_v21, %v3003_v45  ;;  %v2916_v15 = vpop.f32.mrf.mxu1  ;;  %v3183_v30 = vpop.f32.mrf.mxu0 }
 0x4f9   :  { %v2917_v36 = vadd.f32 %v2916_v15, %v6855_v17  ;;  %v7637_v17 = vld [vmem:[#allocation7_spill] sm:$0xff] }
 0x4fa   :  { %v3182_v11 = vadd.f32 %v3181_v43, %v3093_v12 }
 0x4fb   :  { %3283 = vst [vmem:[%s7422_s2 + $0xd0] sm:$0xff] %v2917_v36 }
 0x4fc   :  { %3277 = vst.msk [vmem:[%s7422_s2 + $0xa0] sm:$0xff] %vm3262_vm0, %v3182_v11 }
 0x4ff   :  { %v3005_v46 = vpop.f32.mrf.mxu2  ;;  %v3094_v51 = vpop.f32.mrf.mxu3 }
 0x500   :  { %v3095_v13 = vadd.f32 %v3094_v51, %v3005_v46  ;;  %v2919_v27 = vpop.f32.mrf.mxu1  ;;  %v3186_v26 = vpop.f32.mrf.mxu0 }
 0x501   :  { %v2920_v24 = vadd.f32 %v2919_v27, %v6877_v14 }
 0x502   :  { %v3184_v32 = vadd.f32 %v3183_v30, %v3095_v13 }
 0x503   :  { %3290 = vst [vmem:[%s7422_s2 + $0x108] sm:$0xff] %v2920_v24  ;;  %2958 = vmatmul.bf16.gmra.mxu1 %v7558_v18  ;;  %3225 = vmatmul.bf16.gmra.mxu0 %v7558_v18 }
 0x504   :  { %3284 = vst.msk [vmem:[%s7422_s2 + $0xd8] sm:$0xff] %vm3262_vm0, %v3184_v32  ;;  %3047 = vmatmul.bf16.gmra.mxu2 %v7637_v17  ;;  %3136 = vmatmul.bf16.gmra.mxu3 %v7638_v60 }
 0x507   :  { %v3008_v58 = vpop.f32.mrf.mxu2  ;;  %v3097_v14 = vpop.f32.mrf.mxu3 }
 0x508   :  { %v3098_v9 = vadd.f32 %v3097_v14, %v3008_v58  ;;  %v2921_v40 = vpop.f32.mrf.mxu1  ;;  %v3188_v2 = vpop.f32.mrf.mxu0 }
 0x509   :  { %v2922_v33 = vadd.f32 %v2921_v40, %v6895_v25  ;;  %v7639_v25 = vld [vmem:[#allocation10_spill] sm:$0xff] }
 0x50a   :  { %v3187_v7 = vadd.f32 %v3186_v26, %v3098_v9  ;;  %v7642_v26 = vld [vmem:[#allocation34_spill] sm:$0xff] }
 0x50b   :  { %3297 = vst [vmem:[%s7422_s2 + $0x140] sm:$0xff] %v2922_v33 }
 0x50c   :  { %3291 = vst.msk [vmem:[%s7422_s2 + $0x110] sm:$0xff] %vm3262_vm0, %v3187_v7 }
 0x50f   :  { %v3010_v18 = vpop.f32.mrf.mxu2  ;;  %v3099_v4 = vpop.f32.mrf.mxu3 }
 0x510   :  { %v3100_v8 = vadd.f32 %v3099_v4, %v3010_v18  ;;  %v2924_v39 = vpop.f32.mrf.mxu1  ;;  %v3191_v31 = vpop.f32.mrf.mxu0  ;;  %v7644_v4 = vld [vmem:[#allocation37_spill] sm:$0xff] }
 0x511   :  { %v2925_v61 = vadd.f32 %v2924_v39, %v6905_v49 }
 0x512   :  { %v3189_v43 = vadd.f32 %v3188_v2, %v3100_v8 }
 0x513   :  { %3304 = vst [vmem:[%s7422_s2 + $0x178] sm:$0xff] %v2925_v61  ;;  %2963 = vmatmul.bf16.gmra.mxu1 %v5487_v48  ;;  %3230 = vmatmul.bf16.gmra.mxu0 %v5487_v48 }
 0x514   :  { %3298 = vst.msk [vmem:[%s7422_s2 + $0x148] sm:$0xff] %vm3262_vm0, %v3189_v43  ;;  %3052 = vmatmul.bf16.gmra.mxu2 %v7639_v25  ;;  %3141 = vmatmul.bf16.gmra.mxu3 %v7640_v47 }
 0x517   :  { %v3013_v38 = vpop.f32.mrf.mxu2  ;;  %v3102_v49 = vpop.f32.mrf.mxu3 }
 0x518   :  { %v3103_v45 = vadd.f32 %v3102_v49, %v3013_v38  ;;  %v2926_v21 = vpop.f32.mrf.mxu1  ;;  %v3193_v12 = vpop.f32.mrf.mxu0 }
 0x519   :  { %v2927_v15 = vadd.f32 %v2926_v21, %v6911_v54  ;;  %v7641_v54 = vld [vmem:[#allocation3_spill] sm:$0xff] }
 0x51a   :  { %v3192_v30 = vadd.f32 %v3191_v31, %v3103_v45 }
 0x51b   :  { %3311 = vst [vmem:[%s7422_s2 + $0x1b0] sm:$0xff] %v2927_v15  ;;  %v7646_v15 = vld [vmem:[#allocation8_spill] sm:$0xff] }
 0x51c   :  { %3305 = vst.msk [vmem:[%s7422_s2 + $0x180] sm:$0xff] %vm3262_vm0, %v3192_v30  ;;  %v7647_v30 = vld [vmem:[#allocation38_spill] sm:$0xff] }
 0x51f   :  { %v3015_v48 = vpop.f32.mrf.mxu2  ;;  %v3104_v36 = vpop.f32.mrf.mxu3 }
 0x520   :  { %v3105_v11 = vadd.f32 %v3104_v36, %v3015_v48  ;;  %v2929_v46 = vpop.f32.mrf.mxu1  ;;  %v3196_v51 = vpop.f32.mrf.mxu0 }
 0x521   :  { %v2930_v13 = vadd.f32 %v2929_v46, %v6933_v50 }
 0x522   :  { %v3194_v27 = vadd.f32 %v3193_v12, %v3105_v11 }
 0x523   :  { %3318 = vst [vmem:[%s7422_s2 + $0x1e8] sm:$0xff] %v2930_v13  ;;  %2968 = vmatmul.bf16.gmra.mxu1 %v7562_v34  ;;  %3235 = vmatmul.bf16.gmra.mxu0 %v7562_v34 }
 0x524   :  { %3312 = vst.msk [vmem:[%s7422_s2 + $0x1b8] sm:$0xff] %vm3262_vm0, %v3194_v27  ;;  %3057 = vmatmul.bf16.gmra.mxu2 %v7641_v54  ;;  %3146 = vmatmul.bf16.gmra.mxu3 %v7642_v26 }
 0x527   :  { %v3018_v24 = vpop.f32.mrf.mxu2  ;;  %v3107_v50 = vpop.f32.mrf.mxu3 }
 0x528   :  { %v3108_v32 = vadd.f32 %v3107_v50, %v3018_v24  ;;  %v2931_v17 = vpop.f32.mrf.mxu1  ;;  %v3198_v60 = vpop.f32.mrf.mxu0 }
 0x529   :  { %v2932_v58 = vadd.f32 %v2931_v17, %v6951_v16  ;;  %v7643_v16 = vld [vmem:[#allocation5_spill] sm:$0xff] }
 0x52a   :  { %v3197_v14 = vadd.f32 %v3196_v51, %v3108_v32 }
 0x52b   :  { %3325 = vst [vmem:[%s7422_s2 + $0x220] sm:$0xff] %v2932_v58 }
 0x52c   :  { %3319 = vst.msk [vmem:[%s7422_s2 + $0x1f0] sm:$0xff] %vm3262_vm0, %v3197_v14 }
 0x52f   :  { %v3020_v34 = vpop.f32.mrf.mxu2  ;;  %v3109_v9 = vpop.f32.mrf.mxu3 }
 0x530   :  { %v3110_v40 = vadd.f32 %v3109_v9, %v3020_v34  ;;  %v2934_v2 = vpop.f32.mrf.mxu1  ;;  %v3201_v33 = vpop.f32.mrf.mxu0 }
 0x531   :  { %v2935_v7 = vadd.f32 %v2934_v2, %v6961_v35 }
 0x532   :  { %v3199_v18 = vadd.f32 %v3198_v60, %v3110_v40 }
 0x533   :  { %3332 = vst [vmem:[%s7422_s2 + $0x258] sm:$0xff] %v2935_v7  ;;  %2973 = vmatmul.bf16.gmra.mxu1 %v5575_v10  ;;  %3240 = vmatmul.bf16.gmra.mxu0 %v5575_v10 }
 0x534   :  { %3326 = vst.msk [vmem:[%s7422_s2 + $0x228] sm:$0xff] %vm3262_vm0, %v3199_v18  ;;  %3062 = vmatmul.bf16.gmra.mxu2 %v7643_v16  ;;  %3151 = vmatmul.bf16.gmra.mxu3 %v7644_v4 }
 0x537   :  { %v3023_v8 = vpop.f32.mrf.mxu2  ;;  %v3112_v35 = vpop.f32.mrf.mxu3 }
 0x538   :  { %v3113_v39 = vadd.f32 %v3112_v35, %v3023_v8  ;;  %v2936_v31 = vpop.f32.mrf.mxu1  ;;  %v3203_v61 = vpop.f32.mrf.mxu0 }
 0x539   :  { %v2937_v43 = vadd.f32 %v2936_v31, %v6967_v1  ;;  %v7645_v1 = vld [vmem:[#allocation39_spill] sm:$0xff] }
 0x53a   :  { %v3202_v25 = vadd.f32 %v3201_v33, %v3113_v39 }
 0x53b   :  { %3339 = vst [vmem:[%s7422_s2 + $0x290] sm:$0xff] %v2937_v43 }
 0x53c   :  { %3333 = vst.msk [vmem:[%s7422_s2 + $0x260] sm:$0xff] %vm3262_vm0, %v3202_v25 }
 0x53f   :  { %v3025_v10 = vpop.f32.mrf.mxu2  ;;  %v3114_v47 = vpop.f32.mrf.mxu3 }
 0x540   :  { %v3115_v38 = vadd.f32 %v3114_v47, %v3025_v10  ;;  %v2939_v49 = vpop.f32.mrf.mxu1  ;;  %v3206_v45 = vpop.f32.mrf.mxu0 }
 0x541   :  { %v2940_v21 = vadd.f32 %v2939_v49, %v6977_v53 }
 0x542   :  { %v3204_v12 = vadd.f32 %v3203_v61, %v3115_v38 }
 0x543   :  { %3346 = vst [vmem:[%s7422_s2 + $0x2c8] sm:$0xff] %v2940_v21  ;;  %2978 = vmatmul.bf16.gmra.mxu1 %v7645_v1  ;;  %3245 = vmatmul.bf16.gmra.mxu0 %v7645_v1 }
 0x544   :  { %3340 = vst.msk [vmem:[%s7422_s2 + $0x298] sm:$0xff] %vm3262_vm0, %v3204_v12  ;;  %3067 = vmatmul.bf16.gmra.mxu2 %v7646_v15  ;;  %3156 = vmatmul.bf16.gmra.mxu3 %v7647_v30 }
 0x547   :  { %v3028_v48 = vpop.f32.mrf.mxu2  ;;  %v3117_v53 = vpop.f32.mrf.mxu3 }
 0x548   :  { %v3118_v36 = vadd.f32 %v3117_v53, %v3028_v48  ;;  %v2941_v11 = vpop.f32.mrf.mxu1  ;;  %v3208_v46 = vpop.f32.mrf.mxu0 }
 0x549   :  { %v2942_v51 = vadd.f32 %v2941_v11, %v6983_v19  ;;  %v7648_v19 = vld [vmem:[#allocation41_spill] sm:$0xff] }
 0x54a   :  { %v3207_v13 = vadd.f32 %v3206_v45, %v3118_v36 }
 0x54b   :  { %3353 = vst [vmem:[%s7422_s2 + $0x300] sm:$0xff] %v2942_v51 }
 0x54c   :  { %3347 = vst.msk [vmem:[%s7422_s2 + $0x2d0] sm:$0xff] %vm3262_vm0, %v3207_v13 }
 0x54f   :  { %v3030_v27 = vpop.f32.mrf.mxu2  ;;  %v3119_v54 = vpop.f32.mrf.mxu3 }
 0x550   :  { %v3120_v26 = vadd.f32 %v3119_v54, %v3030_v27  ;;  %v2944_v24 = vpop.f32.mrf.mxu1  ;;  %v3211_v50 = vpop.f32.mrf.mxu0 }
 0x551   :  { %v2945_v32 = vadd.f32 %v2944_v24, %v6993_v41 }
 0x552   :  { %v3209_v17 = vadd.f32 %v3208_v46, %v3120_v26 }
 0x553   :  { %3360 = vst [vmem:[%s7422_s2 + $0x338] sm:$0xff] %v2945_v32  ;;  %2983 = vmatmul.bf16.gmra.mxu1 %v5663_v56  ;;  %3250 = vmatmul.bf16.gmra.mxu0 %v5663_v56 }
 0x554   :  { %3354 = vst.msk [vmem:[%s7422_s2 + $0x308] sm:$0xff] %vm3262_vm0, %v3209_v17  ;;  %3072 = vmatmul.bf16.gmra.mxu2 %v5006_v63  ;;  %3161 = vmatmul.bf16.gmra.mxu3 %v7648_v19 }
 0x557   :  { %v3033_v60 = vpop.f32.mrf.mxu2  ;;  %v3122_v41 = vpop.f32.mrf.mxu3 }
 0x558   :  { %v3123_v58 = vadd.f32 %v3122_v41, %v3033_v60  ;;  %v2946_v14 = vpop.f32.mrf.mxu1  ;;  %v3213_v34 = vpop.f32.mrf.mxu0 }
 0x559   :  { %v2947_v9 = vadd.f32 %v2946_v14, %v6999_v42 }
 0x55a   :  { %v3212_v40 = vadd.f32 %v3211_v50, %v3123_v58 }
 0x55b   :  { %3367 = vst [vmem:[%s7422_s2 + $0x370] sm:$0xff] %v2947_v9 }
 0x55c   :  { %3361 = vst.msk [vmem:[%s7422_s2 + $0x340] sm:$0xff] %vm3262_vm0, %v3212_v40 }
 0x55f   :  { %v3035_v63 = vpop.f32.mrf.mxu2  ;;  %v3124_v56 = vpop.f32.mrf.mxu3 }
 0x560   :  { %v3125_v2 = vadd.f32 %v3124_v56, %v3035_v63  ;;  %v2949_v33 = vpop.f32.mrf.mxu1  ;;  %v3216_v7 = vpop.f32.mrf.mxu0 }
 0x561   :  { %v2950_v18 = vadd.f32 %v2949_v33, %v7009_v52 }
 0x562   :  { %v3214_v16 = vadd.f32 %v3213_v34, %v3125_v2 }
 0x563   :  { %3374 = vst [vmem:[%s7422_s2 + $0x3a8] sm:$0xff] %v2950_v18 }
 0x564   :  { %3368 = vst.msk [vmem:[%s7422_s2 + $0x378] sm:$0xff] %vm3262_vm0, %v3214_v16 }
 0x567   :  { %v3038_v42 = vpop.f32.mrf.mxu2  ;;  %v3127_v4 = vpop.f32.mrf.mxu3 }
 0x568   :  { %v3128_v8 = vadd.f32 %v3127_v4, %v3038_v42  ;;  %v2951_v35 = vpop.f32.mrf.mxu1  ;;  %v3218_v39 = vpop.f32.mrf.mxu0 }
 0x569   :  { %v2952_v31 = vadd.f32 %v2951_v35, %v7015_v6 }
 0x56a   :  { %v3217_v61 = vadd.f32 %v3216_v7, %v3128_v8 }
 0x56b   :  { %3381 = vst [vmem:[%s7422_s2 + $0x3e0] sm:$0xff] %v2952_v31 }
 0x56c   :  { %3375 = vst.msk [vmem:[%s7422_s2 + $0x3b0] sm:$0xff] %vm3262_vm0, %v3217_v61 }
 0x56f   :  { %v3040_v52 = vpop.f32.mrf.mxu2  ;;  %v3129_v43 = vpop.f32.mrf.mxu3 }
 0x570   :  { %v3130_v25 = vadd.f32 %v3129_v43, %v3040_v52  ;;  %v2954_v10 = vpop.f32.mrf.mxu1  ;;  %v3221_v47 = vpop.f32.mrf.mxu0 }
 0x571   :  { %v2955_v38 = vadd.f32 %v2954_v10, %v7025_v62 }
 0x572   :  { %v3219_v49 = vadd.f32 %v3218_v39, %v3130_v25 }
 0x573   :  { %3388 = vst [vmem:[%s7422_s2 + $0x418] sm:$0xff] %v2955_v38 }
 0x574   :  { %3382 = vst.msk [vmem:[%s7422_s2 + $0x3e8] sm:$0xff] %vm3262_vm0, %v3219_v49 }
 0x577   :  { %v3043_v6 = vpop.f32.mrf.mxu2  ;;  %v3132_v45 = vpop.f32.mrf.mxu3 }
 0x578   :  { %v3133_v21 = vadd.f32 %v3132_v45, %v3043_v6  ;;  %v2956_v12 = vpop.f32.mrf.mxu1  ;;  %v3223_v1 = vpop.f32.mrf.mxu0 }
 0x579   :  { %v2957_v15 = vadd.f32 %v2956_v12, %v7031_v5 }
 0x57a   :  { %v3222_v30 = vadd.f32 %v3221_v47, %v3133_v21 }
 0x57b   :  { %3395 = vst [vmem:[%s7422_s2 + $0x450] sm:$0xff] %v2957_v15 }
 0x57c   :  { %3389 = vst.msk [vmem:[%s7422_s2 + $0x420] sm:$0xff] %vm3262_vm0, %v3222_v30 }
 0x57f   :  { %v3045_v62 = vpop.f32.mrf.mxu2  ;;  %v3134_v48 = vpop.f32.mrf.mxu3 }
 0x580   :  { %v3135_v53 = vadd.f32 %v3134_v48, %v3045_v62  ;;  %v2959_v36 = vpop.f32.mrf.mxu1  ;;  %v3226_v11 = vpop.f32.mrf.mxu0 }
 0x581   :  { %v2960_v46 = vadd.f32 %v2959_v36, %v7041_v57 }
 0x582   :  { %v3224_v51 = vadd.f32 %v3223_v1, %v3135_v53 }
 0x583   :  { %3402 = vst [vmem:[%s7422_s2 + $0x488] sm:$0xff] %v2960_v46 }
 0x584   :  { %3396 = vst.msk [vmem:[%s7422_s2 + $0x458] sm:$0xff] %vm3262_vm0, %v3224_v51 }
 0x587   :  { %v3048_v5 = vpop.f32.mrf.mxu2  ;;  %v3137_v13 = vpop.f32.mrf.mxu3 }
 0x588   :  { %v3138_v27 = vadd.f32 %v3137_v13, %v3048_v5  ;;  %v2961_v54 = vpop.f32.mrf.mxu1  ;;  %v3228_v26 = vpop.f32.mrf.mxu0 }
 0x589   :  { %v2962_v24 = vadd.f32 %v2961_v54, %v7047_v23 }
 0x58a   :  { %v3227_v50 = vadd.f32 %v3226_v11, %v3138_v27 }
 0x58b   :  { %3409 = vst [vmem:[%s7422_s2 + $0x4c0] sm:$0xff] %v2962_v24 }
 0x58c   :  { %3403 = vst.msk [vmem:[%s7422_s2 + $0x490] sm:$0xff] %vm3262_vm0, %v3227_v50 }
 0x58f   :  { %v3050_v57 = vpop.f32.mrf.mxu2  ;;  %v3139_v32 = vpop.f32.mrf.mxu3 }
 0x590   :  { %v3140_v17 = vadd.f32 %v3139_v32, %v3050_v57  ;;  %v2964_v19 = vpop.f32.mrf.mxu1  ;;  %v3231_v60 = vpop.f32.mrf.mxu0 }
 0x591   :  { %v2965_v41 = vadd.f32 %v2964_v19, %v7057_v55 }
 0x592   :  { %v3229_v58 = vadd.f32 %v3228_v26, %v3140_v17 }
 0x593   :  { %3416 = vst [vmem:[%s7422_s2 + $0x4f8] sm:$0xff] %v2965_v41 }
 0x594   :  { %3410 = vst.msk [vmem:[%s7422_s2 + $0x4c8] sm:$0xff] %vm3262_vm0, %v3229_v58 }
 0x597   :  { %v3053_v23 = vpop.f32.mrf.mxu2  ;;  %v3142_v14 = vpop.f32.mrf.mxu3 }
 0x598   :  { %v3143_v34 = vadd.f32 %v3142_v14, %v3053_v23  ;;  %v2966_v9 = vpop.f32.mrf.mxu1  ;;  %v3233_v40 = vpop.f32.mrf.mxu0 }
 0x599   :  { %v2967_v63 = vadd.f32 %v2966_v9, %v7063_v20 }
 0x59a   :  { %v3232_v56 = vadd.f32 %v3231_v60, %v3143_v34 }
 0x59b   :  { %3423 = vst [vmem:[%s7422_s2 + $0x530] sm:$0xff] %v2967_v63 }
 0x59c   :  { %3417 = vst.msk [vmem:[%s7422_s2 + $0x500] sm:$0xff] %vm3262_vm0, %v3232_v56 }
 0x59f   :  { %v3055_v55 = vpop.f32.mrf.mxu2  ;;  %v3144_v2 = vpop.f32.mrf.mxu3 }
 0x5a0   :  { %v3145_v33 = vadd.f32 %v3144_v2, %v3055_v55  ;;  %v2969_v7 = vpop.f32.mrf.mxu1  ;;  %v3236_v18 = vpop.f32.mrf.mxu0 }
 0x5a1   :  { %v2970_v16 = vadd.f32 %v2969_v7, %v7073_v22 }
 0x5a2   :  { %v3234_v42 = vadd.f32 %v3233_v40, %v3145_v33 }
 0x5a3   :  { %3430 = vst [vmem:[%s7422_s2 + $0x568] sm:$0xff] %v2970_v16 }
 0x5a4   :  { %3424 = vst.msk [vmem:[%s7422_s2 + $0x538] sm:$0xff] %vm3262_vm0, %v3234_v42 }
 0x5a7   :  { %v3058_v20 = vpop.f32.mrf.mxu2  ;;  %v3147_v4 = vpop.f32.mrf.mxu3 }
 0x5a8   :  { %v3148_v8 = vadd.f32 %v3147_v4, %v3058_v20  ;;  %v2971_v35 = vpop.f32.mrf.mxu1  ;;  %v3238_v39 = vpop.f32.mrf.mxu0 }
 0x5a9   :  { %v2972_v31 = vadd.f32 %v2971_v35, %v7079_v29 }
 0x5aa   :  { %v3237_v61 = vadd.f32 %v3236_v18, %v3148_v8 }
 0x5ab   :  { %3437 = vst [vmem:[%s7422_s2 + $0x5a0] sm:$0xff] %v2972_v31 }
 0x5ac   :  { %3431 = vst.msk [vmem:[%s7422_s2 + $0x570] sm:$0xff] %vm3262_vm0, %v3237_v61 }
 0x5af   :  { %v3060_v22 = vpop.f32.mrf.mxu2  ;;  %v3149_v52 = vpop.f32.mrf.mxu3 }
 0x5b0   :  { %v3150_v43 = vadd.f32 %v3149_v52, %v3060_v22  ;;  %v2974_v25 = vpop.f32.mrf.mxu1  ;;  %v3241_v10 = vpop.f32.mrf.mxu0 }
 0x5b1   :  { %v2975_v47 = vadd.f32 %v2974_v25, %v7089_v0 }
 0x5b2   :  { %v3239_v38 = vadd.f32 %v3238_v39, %v3150_v43 }
 0x5b3   :  { %3444 = vst [vmem:[%s7422_s2 + $0x5d8] sm:$0xff] %v2975_v47 }
 0x5b4   :  { %3438 = vst.msk [vmem:[%s7422_s2 + $0x5a8] sm:$0xff] %vm3262_vm0, %v3239_v38 }
 0x5b7   :  { %v3063_v29 = vpop.f32.mrf.mxu2  ;;  %v3152_v49 = vpop.f32.mrf.mxu3 }
 0x5b8   :  { %v3153_v6 = vadd.f32 %v3152_v49, %v3063_v29  ;;  %v2976_v45 = vpop.f32.mrf.mxu1  ;;  %v3243_v21 = vpop.f32.mrf.mxu0 }
 0x5b9   :  { %v2977_v12 = vadd.f32 %v2976_v45, %v7095_v3 }
 0x5ba   :  { %v3242_v1 = vadd.f32 %v3241_v10, %v3153_v6 }
 0x5bb   :  { %3451 = vst [vmem:[%s7422_s2 + $0x610] sm:$0xff] %v2977_v12 }
 0x5bc   :  { %3445 = vst.msk [vmem:[%s7422_s2 + $0x5e0] sm:$0xff] %vm3262_vm0, %v3242_v1 }
 0x5bf   :  { %v3065_v0 = vpop.f32.mrf.mxu2  ;;  %v3154_v15 = vpop.f32.mrf.mxu3 }
 0x5c0   :  { %v3155_v30 = vadd.f32 %v3154_v15, %v3065_v0  ;;  %v2979_v62 = vpop.f32.mrf.mxu1  ;;  %v3246_v36 = vpop.f32.mrf.mxu0 }
 0x5c1   :  { %v2980_v48 = vadd.f32 %v2979_v62, %v7105_v59 }
 0x5c2   :  { %v3244_v53 = vadd.f32 %v3243_v21, %v3155_v30 }
 0x5c3   :  { %3458 = vst [vmem:[%s7422_s2 + $0x648] sm:$0xff] %v2980_v48 }
 0x5c4   :  { %3452 = vst.msk [vmem:[%s7422_s2 + $0x618] sm:$0xff] %vm3262_vm0, %v3244_v53 }
 0x5c7   :  { %v3068_v3 = vpop.f32.mrf.mxu2  ;;  %v3157_v11 = vpop.f32.mrf.mxu3 }
 0x5c8   :  { %v3158_v46 = vadd.f32 %v3157_v11, %v3068_v3  ;;  %v2981_v51 = vpop.f32.mrf.mxu1  ;;  %v3248_v59 = vpop.f32.mrf.mxu0 }
 0x5c9   :  { %v2982_v5 = vadd.f32 %v2981_v51, %v7111_v28 }
 0x5ca   :  { %v3247_v13 = vadd.f32 %v3246_v36, %v3158_v46 }
 0x5cb   :  { %3465 = vst [vmem:[%s7422_s2 + $0x680] sm:$0xff] %v2982_v5 }
 0x5cc   :  { %3459 = vst.msk [vmem:[%s7422_s2 + $0x650] sm:$0xff] %vm3262_vm0, %v3247_v13 }
 0x5cf   :  { %v3070_v27 = vpop.f32.mrf.mxu2  ;;  %v3159_v54 = vpop.f32.mrf.mxu3 }
 0x5d0   :  { %v3160_v26 = vadd.f32 %v3159_v54, %v3070_v27  ;;  %v2984_v24 = vpop.f32.mrf.mxu1  ;;  %v3251_v28 = vpop.f32.mrf.mxu0 }
 0x5d1   :  { %v2985_v50 = vadd.f32 %v2984_v24, %v7121_v37 }
 0x5d2   :  { %v3249_v57 = vadd.f32 %v3248_v59, %v3160_v26 }
 0x5d3   :  { %3472 = vst [vmem:[%s7422_s2 + $0x6b8] sm:$0xff] %v2985_v50 }
 0x5d4   :  { %3466 = vst.msk [vmem:[%s7422_s2 + $0x688] sm:$0xff] %vm3262_vm0, %v3249_v57 }
 0x5d7   :  { %v3073_v32 = vpop.f32.mrf.mxu2  ;;  %v3162_v17 = vpop.f32.mrf.mxu3 }
 0x5d8   :  { %v3163_v19 = vadd.f32 %v3162_v17, %v3073_v32  ;;  %v2986_v60 = vpop.f32.mrf.mxu1  ;;  %v3253_v34 = vpop.f32.mrf.mxu0 }
 0x5d9   :  { %v2987_v41 = vadd.f32 %v2986_v60, %v7127_v44 }
 0x5da   :  { %v3252_v58 = vadd.f32 %v3251_v28, %v3163_v19 }
 0x5db   :  { %3479 = vst [vmem:[%s7422_s2 + $0x6f0] sm:$0xff] %v2987_v41 }
 0x5dc   :  { %3473 = vst.msk [vmem:[%s7422_s2 + $0x6c0] sm:$0xff] %vm3262_vm0, %v3252_v58 }
 0x5df   :  { %v3075_v37 = vpop.f32.mrf.mxu2  ;;  %v3164_v23 = vpop.f32.mrf.mxu3 }
 0x5e0   :  { %v3165_v14 = vadd.f32 %v3164_v23, %v3075_v37 }
 0x5e2   :  { %v3254_v9 = vadd.f32 %v3253_v34, %v3165_v14 }
 0x5e4   :  { %3480 = vst.msk [vmem:[%s7422_s2 + $0x6f8] sm:$0xff] %vm3262_vm0, %v3254_v9 }

</bundles_post_ra>
